<compile_context>
chip_gen: v7x
topology: tpu7x:2x2x1
jax: 0.10.0
libtpu: 0.0.40
codegen_flags: <defaults>
</compile_context>

<pallas_src>
import functools

import jax
import jax.numpy as jnp
import numpy as np
from jax.experimental import pallas as pl
from jax.experimental.pallas import tpu as pltpu

EPS = 1e-5  # torch.nn.LayerNorm default eps


# ----------------------------- reference helpers -----------------------------

def _layer_norm_ref(z, gamma, beta):
    mu = jnp.mean(z, axis=-1, keepdims=True)
    var = jnp.mean((z - mu) ** 2, axis=-1, keepdims=True)
    return (z - mu) * jax.lax.rsqrt(var + EPS) * gamma + beta


# --------------------------------- the kernel --------------------------------

def _lstm_kernel(lens_ref, x_ref, wih_hbm, whh_hbm,
                 bih_ref, bhh_ref, gih_ref, ghh_ref, beg_ref, gho_ref, beho_ref,
                 y_ref, hy_ref, cy_ref,
                 wih_sc, whh_sc, w_sem, h_sc, c_sc, hy_sc, cy_sc,
                 *, G_true, H_true, two_pass, unroll):
    tc = pl.program_id(1)                 # time-chunk index (serial axis)
    n_tc = pl.num_programs(1)
    TT = y_ref.shape[0]
    Hp = y_ref.shape[2]                   # lane-padded hidden size
    Gp = 4 * Hp

    @pl.when(tc == 0)
    def _():
        # Stage both weight matrices once per batch-block sweep (single-buffered VMEM).
        cp_ih = pltpu.make_async_copy(wih_hbm, wih_sc, w_sem.at[0])
        cp_hh = pltpu.make_async_copy(whh_hbm, whh_sc, w_sem.at[1])
        cp_ih.start()
        cp_hh.start()
        # Hide the weight-DMA latency behind the carry zero-init (perf review item).
        h_sc[...] = jnp.zeros_like(h_sc)    # h0 / c0 are zeros in RDM_Model_V1.forward
        c_sc[...] = jnp.zeros_like(c_sc)
        hy_sc[...] = jnp.zeros_like(hy_sc)
        cy_sc[...] = jnp.zeros_like(cy_sc)
        cp_ih.wait()
        cp_hh.wait()

    # Loop-invariant loads, hoisted out of the per-timestep body.
    w_ih = wih_sc[...]       # (E,  Gp) matmul dtype
    w_hh = whh_sc[...]       # (Hp, Gp) matmul dtype
    b_ih = bih_ref[...]      # (1, Gp) f32
    b_hh = bhh_ref[...]      # (1, Gp)
    g_ih = gih_ref[...]      # (1, Gp)
    g_hh = ghh_ref[...]      # (1, Gp)
    be_g = beg_ref[...]      # (1, Gp)  = be_ih + be_hh
    g_ho = gho_ref[...]      # (1, Hp)
    be_ho = beho_ref[...]    # (1, Hp)
    lens = lens_ref[...]     # (TB, 1) int32
    t_base = tc * TT

    inv_g = jnp.float32(1.0 / G_true)
    inv_h = jnp.float32(1.0 / H_true)

    # Mask of "real" gate lanes (only needed for two-pass variance with lane padding).
    if two_pass and Hp != H_true:
        lane = jax.lax.broadcasted_iota(jnp.int32, (1, Gp), 1)
        g_mask = ((lane % Hp) < H_true).astype(jnp.float32)
    else:
        g_mask = None

    def ln_gate(z):
        # LayerNorm statistics over the *logical* 4*H features; padded lanes of z are exact 0,
        # so plain sums with a 1/(4H) divisor are correct.  Gammas/betas are zero on padded
        # lanes, so the caller's scale/shift keeps those lanes at zero.
        mu = jnp.sum(z, axis=-1, keepdims=True) * inv_g
        d = z - mu
        if two_pass:
            dm = d if g_mask is None else d * g_mask
            var = jnp.sum(dm * dm, axis=-1, keepdims=True) * inv_g
        else:
            var = jnp.sum(z * z, axis=-1, keepdims=True) * inv_g - mu * mu
        return d * jax.lax.rsqrt(var + EPS)

    def step(tt, carry):
        h_prev = h_sc[...]
        c_prev = c_sc[...]

        x_t = x_ref[tt]                                              # (TB, E)
        zi = jnp.dot(x_t.astype(w_ih.dtype), w_ih,
                     preferred_element_type=jnp.float32) + b_ih       # (TB, Gp) f32
        zh = jnp.dot(h_prev.astype(w_hh.dtype), w_hh,
                     preferred_element_type=jnp.float32) + b_hh       # (TB, Gp) f32
        gates = ln_gate(zi) * g_ih + ln_gate(zh) * g_hh + be_g

        i_g = jax.nn.sigmoid(gates[:, 0 * Hp:1 * Hp])
        f_g = jax.nn.sigmoid(gates[:, 1 * Hp:2 * Hp])
        c_g = jnp.tanh(gates[:, 2 * Hp:3 * Hp])
        o_g = jax.nn.sigmoid(gates[:, 3 * Hp:4 * Hp])

        c_new = f_g * c_prev + i_g * c_g
        th = jnp.tanh(c_new)                                          # bounded: one-pass LN safe
        mu_o = jnp.sum(th, axis=-1, keepdims=True) * inv_h
        var_o = jnp.sum(th * th, axis=-1, keepdims=True) * inv_h - mu_o * mu_o
        h_new = o_g * ((th - mu_o) * jax.lax.rsqrt(var_o + EPS) * g_ho + be_ho)

        t_abs = t_base + tt
        mask = (t_abs < lens).astype(jnp.float32)                     # (TB, 1)
        h_new = h_new * mask
        c_new = c_new * mask

        h_sc[...] = h_new
        c_sc[...] = c_new
        y_ref[tt] = h_new.astype(y_ref.dtype)                         # lane-dense (TB, Hp) store

        last = t_abs == lens - 1                                      # (TB, 1) bool
        hy_sc[...] = jnp.where(last, h_new, hy_sc[...])
        cy_sc[...] = jnp.where(last, c_new, cy_sc[...])
        return carry

    jax.lax.fori_loop(0, TT, step, 0, unroll=unroll)

    # hy/cy output blocks are resident (constant index over time); write them once.
    @pl.when(tc == n_tc - 1)
    def _():
        hy_ref[...] = hy_sc[...]
        cy_ref[...] = cy_sc[...]


# --------------------------------- the wrapper --------------------------------

def _pad_last_gatewise(v, H, Hp):
    """Pad the last axis (size 4H) per-gate with zeros to size 4*Hp."""
    if Hp == H:
        return v
    lead = v.shape[:-1]
    v4 = v.reshape(lead + (4, H))
    v4 = jnp.pad(v4, [(0, 0)] * (len(lead) + 1) + [(0, Hp - H)])
    return v4.reshape(lead + (4 * Hp,))


def rdm_model_v1_forward(input_x, seq_lens, params, *, time_block=16, batch_block=None,
                         matmul_dtype=jnp.bfloat16, stream_dtype=jnp.float32, y_dtype=None,
                         pad_lanes=True, ln_two_pass=None, x_buffers=None,
                         vmem_limit_bytes=None):
    """input_x: [B, T, E] f32, seq_lens: [B] int. Returns (y[B,T,H], hy[B,1,H], cy[B,1,H])."""
    B, T, E = input_x.shape
    H = params["w_hh"].shape[1]
    G = 4 * H
    strict_f32 = np.dtype(matmul_dtype) == np.dtype(np.float32)
    if y_dtype is None:
        y_dtype = jnp.float32 if strict_f32 else jnp.bfloat16
    if ln_two_pass is None:
        ln_two_pass = strict_f32

    # ---- lane padding of the hidden/gate dimension (per-gate, zeros) ----
    LANE = 128
    Hp = pl.cdiv(H, LANE) * LANE if pad_lanes else H
    Gp = 4 * Hp

    w_ih_t = _pad_last_gatewise(params["w_ih"].astype(jnp.float32).T, H, Hp)      # (E, Gp)
    w_ih_t = w_ih_t.astype(matmul_dtype)
    w_hh_t = _pad_last_gatewise(params["w_hh"].astype(jnp.float32).T, H, Hp)      # (H, Gp)
    w_hh_t = jnp.pad(w_hh_t, ((0, Hp - H), (0, 0))).astype(matmul_dtype)          # (Hp, Gp)

    b_ih = _pad_last_gatewise(params["b_ih"].astype(jnp.float32), H, Hp).reshape(1, Gp)
    b_hh = _pad_last_gatewise(params["b_hh"].astype(jnp.float32), H, Hp).reshape(1, Gp)
    g_ih = _pad_last_gatewise(params["g_ih"].astype(jnp.float32), H, Hp).reshape(1, Gp)
    g_hh = _pad_last_gatewise(params["g_hh"].astype(jnp.float32), H, Hp).reshape(1, Gp)
    be_g = _pad_last_gatewise((params["be_ih"] + params["be_hh"]).astype(jnp.float32),
                              H, Hp).reshape(1, Gp)
    g_ho = jnp.pad(params["g_ho"].astype(jnp.float32), (0, Hp - H)).reshape(1, Hp)
    be_ho = jnp.pad(params["be_ho"].astype(jnp.float32), (0, Hp - H)).reshape(1, Hp)

    # ---- padding: B -> multiple of 8 (sublanes), T -> multiple of the time chunk ----
    TT = max(1, min(int(time_block), T))
    Tp = pl.cdiv(T, TT) * TT
    Bp = pl.cdiv(B, 8) * 8
    if batch_block is None:
        # v7x megacore: give the leading "parallel" axis extent >= 2 when the batch allows it.
        TB = Bp // 2 if (Bp >= 16 and (Bp // 2) % 8 == 0) else Bp
    else:
        TB = int(batch_block)
    assert Bp % TB == 0 and TB % 8 == 0
    nb = Bp // TB
    Tc = Tp // TT
    unroll = True if TT <= 16 else 8

    x_tm = jnp.transpose(input_x.astype(jnp.float32), (1, 0, 2))                  # (T, B, E)
    x_tm = jnp.pad(x_tm, ((0, Tp - T), (0, Bp - B), (0, 0))).astype(stream_dtype)
    lens = jnp.pad(jnp.asarray(seq_lens, jnp.int32), (0, Bp - B)).reshape(Bp, 1)

    # ---- explicit VMEM budget (v5e 16 MiB / v6e 32/128 / v7x 32/64 scoped defaults) ----
    if vmem_limit_bytes is None:
        s_b = np.dtype(stream_dtype).itemsize
        y_b = np.dtype(y_dtype).itemsize
        m_b = np.dtype(matmul_dtype).itemsize
        need = (2 * TT * TB * E * s_b                 # x chunk, double-buffered
                + 2 * TT * TB * Hp * y_b              # y chunk, double-buffered
                + (E + Hp) * Gp * m_b                 # resident weights
                + 4 * TB * Hp * 4                     # carries + hy/cy snapshots
                + 2 * (5 * Gp + 2 * Hp + TB) * 4)     # small consts / lens
        need = need * 5 // 4 + (4 << 20)
        try:
            cap = int(pltpu.get_tpu_info().vmem_capacity_bytes)
        except Exception:
            cap = 64 << 20
        vmem_limit_bytes = int(max(32 << 20, min(need, (cap * 3) // 4)))

    const = lambda shape: pl.BlockSpec(shape, lambda b, t: (0,) * len(shape))
    if x_buffers is None:
        x_spec = pl.BlockSpec((TT, TB, E), lambda b, t: (t, b, 0))
    else:  # deeper buffering for the x stream (useful on v5e if DMA is exposed)
        x_spec = pl.BlockSpec((TT, TB, E), lambda b, t: (t, b, 0),
                              pipeline_mode=pl.Buffered(int(x_buffers)))

    kernel = functools.partial(_lstm_kernel, G_true=G, H_true=H,
                               two_pass=bool(ln_two_pass), unroll=unroll)

    y_tm, hy, cy = pl.pallas_call(
        kernel,
        out_shape=(
            jax.ShapeDtypeStruct((Tp, Bp, Hp), y_dtype),
            jax.ShapeDtypeStruct((Bp, Hp), jnp.float32),
            jax.ShapeDtypeStruct((Bp, Hp), jnp.float32),
        ),
        grid_spec=pltpu.PrefetchScalarGridSpec(
            num_scalar_prefetch=0,
            grid=(nb, Tc),                                          # (batch blocks, time chunks)
            in_specs=[
                pl.BlockSpec((TB, 1), lambda b, t: (b, 0)),         # seq_lens
                x_spec,                                             # x chunk (time-major)
                pl.BlockSpec(memory_space=pl.ANY),                  # W_ih^T: staged manually
                pl.BlockSpec(memory_space=pl.ANY),                  # W_hh^T: staged manually
                const((1, Gp)), const((1, Gp)),                     # b_ih, b_hh
                const((1, Gp)), const((1, Gp)), const((1, Gp)),     # g_ih, g_hh, be_ih+be_hh
                const((1, Hp)), const((1, Hp)),                     # ln_ho gamma / beta
            ],
            out_specs=[
                pl.BlockSpec((TT, TB, Hp), lambda b, t: (t, b, 0)),  # y chunk
                pl.BlockSpec((TB, Hp), lambda b, t: (b, 0)),         # hy (resident)
                pl.BlockSpec((TB, Hp), lambda b, t: (b, 0)),         # cy (resident)
            ],
            scratch_shapes=[
                pltpu.VMEM((E, Gp), matmul_dtype),                   # single-buffered W_ih^T
                pltpu.VMEM((Hp, Gp), matmul_dtype),                  # single-buffered W_hh^T
                pltpu.SemaphoreType.DMA((2,)),                       # weight-DMA semaphores
                pltpu.VMEM((TB, Hp), jnp.float32),                   # h carry
                pltpu.VMEM((TB, Hp), jnp.float32),                   # c carry
                pltpu.VMEM((TB, Hp), jnp.float32),                   # hy snapshot
                pltpu.VMEM((TB, Hp), jnp.float32),                   # cy snapshot
            ],
        ),
        compiler_params=pltpu.CompilerParams(
            dimension_semantics=("parallel", "arbitrary"),
            vmem_limit_bytes=int(vmem_limit_bytes)),
    )(lens, x_tm, w_ih_t, w_hh_t, b_ih, b_hh, g_ih, g_hh, be_g, g_ho, be_ho)

    # Strip padding; module API returns f32 (kernel-side y writeback stays bf16 in production).
    y = jnp.transpose(y_tm[:T, :B, :H], (1, 0, 2)).astype(jnp.float32)    # [B, T, H]
    return y, hy[:B, :H].reshape(B, 1, H), cy[:B, :H].reshape(B, 1, H)


# --------------------------- params / pure-JAX reference ----------------------

def init_params(key, E, H):
    """Deterministic init mirroring torch defaults: U(-1/sqrt(H), 1/sqrt(H)) for LSTMCell
    weights/biases; LayerNorm weight=1, bias=0."""
    k = 1.0 / float(np.sqrt(H))
    ks = jax.random.split(key, 4)
    return {
        "w_ih": jax.random.uniform(ks[0], (4 * H, E), jnp.float32, -k, k),
        "w_hh": jax.random.uniform(ks[1], (4 * H, H), jnp.float32, -k, k),
        "b_ih": jax.random.uniform(ks[2], (4 * H,), jnp.float32, -k, k),
        "b_hh": jax.random.uniform(ks[3], (4 * H,), jnp.float32, -k, k),
        "g_ih": jnp.ones((4 * H,), jnp.float32),
        "be_ih": jnp.zeros((4 * H,), jnp.float32),
        "g_hh": jnp.ones((4 * H,), jnp.float32),
        "be_hh": jnp.zeros((4 * H,), jnp.float32),
        "g_ho": jnp.ones((H,), jnp.float32),
        "be_ho": jnp.zeros((H,), jnp.float32),
    }


def ref_forward(input_x, seq_lens, params):
    """Pure-JAX reference of the PyTorch forward (eval mode), f32-exact matmuls."""
    B, T, E = input_x.shape
    H = params["w_hh"].shape[1]
    hi = jax.lax.Precision.HIGHEST
    w_ih_t, w_hh_t = params["w_ih"].T, params["w_hh"].T
    h = jnp.zeros((B, H), jnp.float32)
    c = jnp.zeros((B, H), jnp.float32)
    hy = jnp.zeros((B, H), jnp.float32)
    cy = jnp.zeros((B, H), jnp.float32)
    ys = []
    for t in range(T):
        x = input_x[:, t, :]
        gi = _layer_norm_ref(jnp.dot(x, w_ih_t, precision=hi) + params["b_ih"],
                             params["g_ih"], params["be_ih"])
        gh = _layer_norm_ref(jnp.dot(h, w_hh_t, precision=hi) + params["b_hh"],
                             params["g_hh"], params["be_hh"])
        g = gi + gh
        i_g, f_g, c_g, o_g = (jax.nn.sigmoid(g[:, :H]), jax.nn.sigmoid(g[:, H:2 * H]),
                              jnp.tanh(g[:, 2 * H:3 * H]), jax.nn.sigmoid(g[:, 3 * H:]))
        c_new = f_g * c + i_g * c_g
        h_new = o_g * _layer_norm_ref(jnp.tanh(c_new), params["g_ho"], params["be_ho"])
        mask = (t < seq_lens).astype(jnp.float32)[:, None]
        h, c = h_new * mask, c_new * mask
        ys.append(h)
        last = (t == seq_lens - 1)[:, None]
        hy = jnp.where(last, h, hy)
        cy = jnp.where(last, c, cy)
    y = jnp.stack(ys, axis=1)
    return y, hy.reshape(B, 1, H), cy.reshape(B, 1, H)


if __name__ == "__main__":
    B, T, E, H = 2, 8, 16, 32
    key = jax.random.PRNGKey(0)
    k_x, k_p = jax.random.split(key)

    input_x = jax.random.normal(k_x, (B, T, E), jnp.float32)
    seq_lens = jnp.array([5, 8], dtype=jnp.int32)
    params = init_params(k_p, E, H)

    y_r, hy_r, cy_r = ref_forward(input_x, seq_lens, params)

    # Strict path (f32 weights, two-pass LN, f32 y): parity with the PyTorch semantics.
    f32_fwd = jax.jit(lambda x, l: rdm_model_v1_forward(x, l, params, matmul_dtype=jnp.float32))
    y, hy, cy = f32_fwd(input_x, seq_lens)
    jax.block_until_ready((y, hy, cy))
    np.testing.assert_allclose(np.asarray(y), np.asarray(y_r), atol=5e-4, rtol=5e-4)
    np.testing.assert_allclose(np.asarray(hy), np.asarray(hy_r), atol=5e-4, rtol=5e-4)
    np.testing.assert_allclose(np.asarray(cy), np.asarray(cy_r), atol=5e-4, rtol=5e-4)

    # Production path (bf16 weights on the MXU, bf16 y writeback; LN/gates/state in f32):
    # looser tolerance as anticipated by the perf review; strict parity is the f32 path above.
    bf16_fwd = jax.jit(lambda x, l: rdm_model_v1_forward(x, l, params, matmul_dtype=jnp.bfloat16))
    y_b, hy_b, cy_b = bf16_fwd(input_x, seq_lens)
    jax.block_until_ready((y_b, hy_b, cy_b))
    np.testing.assert_allclose(np.asarray(y_b), np.asarray(y_r), atol=1.5e-1, rtol=1.5e-1)
    np.testing.assert_allclose(np.asarray(hy_b), np.asarray(hy_r), atol=1.5e-1, rtol=1.5e-1)
    np.testing.assert_allclose(np.asarray(cy_b), np.asarray(cy_r), atol=1.5e-1, rtol=1.5e-1)

    # TODO(synk): training-mode dropout / weight-dropout not implemented (eval semantics only).
    print("KERNEL_OK")
</pallas_src>

<mosaic_0001>
module attributes {stable_mosaic.version = 11 : i64} {
  func.func @_lstm_kernel(%arg0: i32, %arg1: i32, %arg2: memref<8x1xi32, #tpu.memory_space<vmem>>, %arg3: memref<8x8x16xf32, #tpu.memory_space<vmem>>, %arg4: memref<16x512xf32, #tpu.memory_space<any>>, %arg5: memref<128x512xf32, #tpu.memory_space<any>>, %arg6: memref<1x512xf32, #tpu.memory_space<vmem>>, %arg7: memref<1x512xf32, #tpu.memory_space<vmem>>, %arg8: memref<1x512xf32, #tpu.memory_space<vmem>>, %arg9: memref<1x512xf32, #tpu.memory_space<vmem>>, %arg10: memref<1x512xf32, #tpu.memory_space<vmem>>, %arg11: memref<1x128xf32, #tpu.memory_space<vmem>>, %arg12: memref<1x128xf32, #tpu.memory_space<vmem>>, %arg13: memref<8x8x128xf32, #tpu.memory_space<vmem>>, %arg14: memref<8x128xf32, #tpu.memory_space<vmem>>, %arg15: memref<8x128xf32, #tpu.memory_space<vmem>>, %arg16: memref<16x512xf32, #tpu.memory_space<vmem>>, %arg17: memref<128x512xf32, #tpu.memory_space<vmem>>, %arg18: memref<2x!tpu.dma_semaphore, #tpu.memory_space<semaphore_mem>>, %arg19: memref<8x128xf32, #tpu.memory_space<vmem>>, %arg20: memref<8x128xf32, #tpu.memory_space<vmem>>, %arg21: memref<8x128xf32, #tpu.memory_space<vmem>>, %arg22: memref<8x128xf32, #tpu.memory_space<vmem>>) attributes {dimension_semantics = [#tpu.dimension_semantics<parallel>, #tpu.dimension_semantics<arbitrary>], iteration_bounds = array<i64: 1, 1>, scalar_prefetch = 0 : i64, scratch_operands = 7 : i64, tpu.core_type = #tpu.core_type<tc>, window_params = [{transform_indices = @transform_0, window_bounds = array<i64: 8, 1>}, {transform_indices = @transform_1, window_bounds = array<i64: 8, 8, 16>}, {}, {}, {pipeline_mode = #tpu.pipeline_mode<synchronous>, transform_indices = @transform_4, window_bounds = array<i64: 1, 512>}, {pipeline_mode = #tpu.pipeline_mode<synchronous>, transform_indices = @transform_5, window_bounds = array<i64: 1, 512>}, {pipeline_mode = #tpu.pipeline_mode<synchronous>, transform_indices = @transform_6, window_bounds = array<i64: 1, 512>}, {pipeline_mode = #tpu.pipeline_mode<synchronous>, transform_indices = @transform_7, window_bounds = array<i64: 1, 512>}, {pipeline_mode = #tpu.pipeline_mode<synchronous>, transform_indices = @transform_8, window_bounds = array<i64: 1, 512>}, {pipeline_mode = #tpu.pipeline_mode<synchronous>, transform_indices = @transform_9, window_bounds = array<i64: 1, 128>}, {pipeline_mode = #tpu.pipeline_mode<synchronous>, transform_indices = @transform_10, window_bounds = array<i64: 1, 128>}, {transform_indices = @transform_11, window_bounds = array<i64: 8, 8, 128>}, {transform_indices = @transform_12, window_bounds = array<i64: 8, 128>}, {transform_indices = @transform_13, window_bounds = array<i64: 8, 128>}]} {
    %c0_i32 = arith.constant 0 : i32
    %0 = arith.cmpi eq, %arg1, %c0_i32 : i32
    %1 = arith.extui %0 : i1 to i32
    %c0_i32_0 = arith.constant 0 : i32
    %2 = arith.cmpi ne, %1, %c0_i32_0 : i32
    scf.if %2 {
      %c0_i32_310 = arith.constant 0 : i32
      %1078 = tpu.memref_slice %arg18[%c0_i32_310] : memref<2x!tpu.dma_semaphore, #tpu.memory_space<semaphore_mem>> -> memref<1x!tpu.dma_semaphore, #tpu.memory_space<semaphore_mem>>
      %1079 = tpu.memref_squeeze %1078 : memref<1x!tpu.dma_semaphore, #tpu.memory_space<semaphore_mem>> -> memref<!tpu.dma_semaphore, #tpu.memory_space<semaphore_mem>>
      tpu.enqueue_dma source(%arg4 : memref<16x512xf32, #tpu.memory_space<any>>) target(%arg16 : memref<16x512xf32, #tpu.memory_space<vmem>>) target_semaphore(%1079 : memref<!tpu.dma_semaphore, #tpu.memory_space<semaphore_mem>>)
      %c1_i32_311 = arith.constant 1 : i32
      %1080 = tpu.memref_slice %arg18[%c1_i32_311] : memref<2x!tpu.dma_semaphore, #tpu.memory_space<semaphore_mem>> -> memref<1x!tpu.dma_semaphore, #tpu.memory_space<semaphore_mem>>
      %1081 = tpu.memref_squeeze %1080 : memref<1x!tpu.dma_semaphore, #tpu.memory_space<semaphore_mem>> -> memref<!tpu.dma_semaphore, #tpu.memory_space<semaphore_mem>>
      tpu.enqueue_dma source(%arg5 : memref<128x512xf32, #tpu.memory_space<any>>) target(%arg17 : memref<128x512xf32, #tpu.memory_space<vmem>>) target_semaphore(%1081 : memref<!tpu.dma_semaphore, #tpu.memory_space<semaphore_mem>>)
      %cst_312 = arith.constant 0.000000e+00 : f32
      %1082 = vector.broadcast %cst_312 : f32 to vector<8x128xf32>
      %c0_313 = arith.constant 0 : index
      %c0_314 = arith.constant 0 : index
      %1083 = vector.load %arg19[%c0_313, %c0_314] : memref<8x128xf32, #tpu.memory_space<vmem>>, vector<8x128xf32>
      tpu.vector_store %arg19[%c0_313, %c0_314], %1082 {strides = array<i32>} : memref<8x128xf32, #tpu.memory_space<vmem>>, vector<8x128xf32>,
      %cst_315 = arith.constant 0.000000e+00 : f32
      %1084 = vector.broadcast %cst_315 : f32 to vector<8x128xf32>
      %c0_316 = arith.constant 0 : index
      %c0_317 = arith.constant 0 : index
      %1085 = vector.load %arg20[%c0_316, %c0_317] : memref<8x128xf32, #tpu.memory_space<vmem>>, vector<8x128xf32>
      tpu.vector_store %arg20[%c0_316, %c0_317], %1084 {strides = array<i32>} : memref<8x128xf32, #tpu.memory_space<vmem>>, vector<8x128xf32>,
      %cst_318 = arith.constant 0.000000e+00 : f32
      %1086 = vector.broadcast %cst_318 : f32 to vector<8x128xf32>
      %c0_319 = arith.constant 0 : index
      %c0_320 = arith.constant 0 : index
      %1087 = vector.load %arg21[%c0_319, %c0_320] : memref<8x128xf32, #tpu.memory_space<vmem>>, vector<8x128xf32>
      tpu.vector_store %arg21[%c0_319, %c0_320], %1086 {strides = array<i32>} : memref<8x128xf32, #tpu.memory_space<vmem>>, vector<8x128xf32>,
      %cst_321 = arith.constant 0.000000e+00 : f32
      %1088 = vector.broadcast %cst_321 : f32 to vector<8x128xf32>
      %c0_322 = arith.constant 0 : index
      %c0_323 = arith.constant 0 : index
      %1089 = vector.load %arg22[%c0_322, %c0_323] : memref<8x128xf32, #tpu.memory_space<vmem>>, vector<8x128xf32>
      tpu.vector_store %arg22[%c0_322, %c0_323], %1088 {strides = array<i32>} : memref<8x128xf32, #tpu.memory_space<vmem>>, vector<8x128xf32>,
      %c0_i32_324 = arith.constant 0 : i32
      %1090 = tpu.memref_slice %arg18[%c0_i32_324] : memref<2x!tpu.dma_semaphore, #tpu.memory_space<semaphore_mem>> -> memref<1x!tpu.dma_semaphore, #tpu.memory_space<semaphore_mem>>
      %1091 = tpu.memref_squeeze %1090 : memref<1x!tpu.dma_semaphore, #tpu.memory_space<semaphore_mem>> -> memref<!tpu.dma_semaphore, #tpu.memory_space<semaphore_mem>>
      tpu.wait_dma2 semaphore(%1091 : memref<!tpu.dma_semaphore, #tpu.memory_space<semaphore_mem>>) src(%arg4 : memref<16x512xf32, #tpu.memory_space<any>>) dst(%arg16 : memref<16x512xf32, #tpu.memory_space<vmem>>)
      %c1_i32_325 = arith.constant 1 : i32
      %1092 = tpu.memref_slice %arg18[%c1_i32_325] : memref<2x!tpu.dma_semaphore, #tpu.memory_space<semaphore_mem>> -> memref<1x!tpu.dma_semaphore, #tpu.memory_space<semaphore_mem>>
      %1093 = tpu.memref_squeeze %1092 : memref<1x!tpu.dma_semaphore, #tpu.memory_space<semaphore_mem>> -> memref<!tpu.dma_semaphore, #tpu.memory_space<semaphore_mem>>
      tpu.wait_dma2 semaphore(%1093 : memref<!tpu.dma_semaphore, #tpu.memory_space<semaphore_mem>>) src(%arg5 : memref<128x512xf32, #tpu.memory_space<any>>) dst(%arg17 : memref<128x512xf32, #tpu.memory_space<vmem>>)
    } else {
    }
    %c0 = arith.constant 0 : index
    %c0_1 = arith.constant 0 : index
    %3 = vector.load %arg16[%c0, %c0_1] : memref<16x512xf32, #tpu.memory_space<vmem>>, vector<16x512xf32>
    %c0_2 = arith.constant 0 : index
    %c0_3 = arith.constant 0 : index
    %4 = vector.load %arg17[%c0_2, %c0_3] : memref<128x512xf32, #tpu.memory_space<vmem>>, vector<128x512xf32>
    %c0_4 = arith.constant 0 : index
    %c0_5 = arith.constant 0 : index
    %5 = vector.load %arg6[%c0_4, %c0_5] : memref<1x512xf32, #tpu.memory_space<vmem>>, vector<1x512xf32>
    %c0_6 = arith.constant 0 : index
    %c0_7 = arith.constant 0 : index
    %6 = vector.load %arg7[%c0_6, %c0_7] : memref<1x512xf32, #tpu.memory_space<vmem>>, vector<1x512xf32>
    %c0_8 = arith.constant 0 : index
    %c0_9 = arith.constant 0 : index
    %7 = vector.load %arg8[%c0_8, %c0_9] : memref<1x512xf32, #tpu.memory_space<vmem>>, vector<1x512xf32>
    %c0_10 = arith.constant 0 : index
    %c0_11 = arith.constant 0 : index
    %8 = vector.load %arg9[%c0_10, %c0_11] : memref<1x512xf32, #tpu.memory_space<vmem>>, vector<1x512xf32>
    %c0_12 = arith.constant 0 : index
    %c0_13 = arith.constant 0 : index
    %9 = vector.load %arg10[%c0_12, %c0_13] : memref<1x512xf32, #tpu.memory_space<vmem>>, vector<1x512xf32>
    %c0_14 = arith.constant 0 : index
    %c0_15 = arith.constant 0 : index
    %10 = vector.load %arg11[%c0_14, %c0_15] : memref<1x128xf32, #tpu.memory_space<vmem>>, vector<1x128xf32>
    %c0_16 = arith.constant 0 : index
    %c0_17 = arith.constant 0 : index
    %11 = vector.load %arg12[%c0_16, %c0_17] : memref<1x128xf32, #tpu.memory_space<vmem>>, vector<1x128xf32>
    %c0_18 = arith.constant 0 : index
    %c0_19 = arith.constant 0 : index
    %12 = vector.load %arg2[%c0_18, %c0_19] : memref<8x1xi32, #tpu.memory_space<vmem>>, vector<8x1xi32>
    %c8_i32 = arith.constant 8 : i32
    %13 = arith.muli %arg1, %c8_i32 : i32
    %14 = tpu.iota {dimensions = array<i32: 1>} : vector<1x512xi32>
    %c128_i32 = arith.constant 128 : i32
    %c0_i32_20 = arith.constant 0 : i32
    %15 = arith.cmpi eq, %c128_i32, %c0_i32_20 : i32
    %c1_i32 = arith.constant 1 : i32
    %16 = arith.select %15, %c1_i32, %c128_i32 : i32
    %17 = vector.broadcast %16 : i32 to vector<1x512xi32>
    %18 = arith.remsi %14, %17 : vector<1x512xi32>
    %c0_i32_21 = arith.constant 0 : i32
    %19 = vector.broadcast %c0_i32_21 : i32 to vector<1x512xi32>
    %20 = arith.cmpi ne, %18, %19 : vector<1x512xi32>
    %c0_i32_22 = arith.constant 0 : i32
    %21 = vector.broadcast %c0_i32_22 : i32 to vector<1x512xi32>
    %22 = arith.cmpi slt, %18, %21 : vector<1x512xi32>
    %c0_i32_23 = arith.constant 0 : i32
    %23 = arith.cmpi slt, %16, %c0_i32_23 : i32
    %24 = vector.broadcast %23 : i1 to vector<1x512xi1>
    %25 = vector.broadcast %24 : vector<1x512xi1> to vector<1x512xi1>
    %26 = arith.xori %22, %25 : vector<1x512xi1>
    %27 = arith.andi %26, %20 : vector<1x512xi1>
    %28 = vector.broadcast %16 : i32 to vector<1x512xi32>
    %29 = arith.addi %18, %28 : vector<1x512xi32>
    %30 = arith.select %27, %29, %18 : vector<1x512xi1>, vector<1x512xi32>
    %c32_i32 = arith.constant 32 : i32
    %31 = vector.broadcast %c32_i32 : i32 to vector<1x512xi32>
    %32 = arith.cmpi slt, %30, %31 : vector<1x512xi32>
    %33 = arith.extui %32 : vector<1x512xi1> to vector<1x512xi32>
    %34 = arith.sitofp %33 : vector<1x512xi32> to vector<1x512xf32>
    %cst = arith.constant 7.812500e-03 : f32
    %cst_24 = arith.constant 3.125000e-02 : f32
    %c0_i32_25 = arith.constant 0 : i32
    %c0_26 = arith.constant 0 : index
    %c0_27 = arith.constant 0 : index
    %35 = vector.load %arg19[%c0_26, %c0_27] : memref<8x128xf32, #tpu.memory_space<vmem>>, vector<8x128xf32>
    %c0_28 = arith.constant 0 : index
    %c0_29 = arith.constant 0 : index
    %36 = vector.load %arg20[%c0_28, %c0_29] : memref<8x128xf32, #tpu.memory_space<vmem>>, vector<8x128xf32>
    %37 = arith.index_cast %c0_i32_25 : i32 to index
    %c0_30 = arith.constant 0 : index
    %c0_31 = arith.constant 0 : index
    %38 = vector.load %arg3[%37, %c0_30, %c0_31] : memref<8x8x16xf32, #tpu.memory_space<vmem>>, vector<1x8x16xf32>
    %39 = vector.shape_cast %38 : vector<1x8x16xf32> to vector<8x16xf32>
    %cst_32 = arith.constant dense<0.000000e+00> : vector<8x512xf32>
    %40 = tpu.matmul %39, %3, %cst_32 {dimension_numbers = #tpu.dot_dimension_numbers<[1], [0], [0], [1], [0, 0, 1, 1], [], []>} : vector<8x16xf32>, vector<16x512xf32>, vector<8x512xf32> -> vector<8x512xf32>
    %41 = vector.broadcast %5 : vector<1x512xf32> to vector<8x512xf32>
    %42 = arith.addf %40, %41 : vector<8x512xf32>
    %cst_33 = arith.constant dense<0.000000e+00> : vector<8x512xf32>
    %43 = tpu.matmul %35, %4, %cst_33 {dimension_numbers = #tpu.dot_dimension_numbers<[1], [0], [0], [1], [0, 0, 1, 1], [], []>} : vector<8x128xf32>, vector<128x512xf32>, vector<8x512xf32> -> vector<8x512xf32>
    %44 = vector.broadcast %6 : vector<1x512xf32> to vector<8x512xf32>
    %45 = arith.addf %43, %44 : vector<8x512xf32>
    %cst_34 = arith.constant dense<0.000000e+00> : vector<8xf32>
    %46 = vector.multi_reduction <add>, %42, %cst_34 [1] : vector<8x512xf32> to vector<8xf32>
    %47 = vector.shape_cast %46 : vector<8xf32> to vector<8x1xf32>
    %48 = vector.broadcast %cst : f32 to vector<8x1xf32>
    %49 = arith.mulf %47, %48 : vector<8x1xf32>
    %50 = vector.broadcast %49 : vector<8x1xf32> to vector<8x512xf32>
    %51 = arith.subf %42, %50 : vector<8x512xf32>
    %52 = vector.broadcast %34 : vector<1x512xf32> to vector<8x512xf32>
    %53 = arith.mulf %51, %52 : vector<8x512xf32>
    %54 = arith.mulf %53, %53 : vector<8x512xf32>
    %cst_35 = arith.constant dense<0.000000e+00> : vector<8xf32>
    %55 = vector.multi_reduction <add>, %54, %cst_35 [1] : vector<8x512xf32> to vector<8xf32>
    %56 = vector.shape_cast %55 : vector<8xf32> to vector<8x1xf32>
    %57 = vector.broadcast %cst : f32 to vector<8x1xf32>
    %58 = arith.mulf %56, %57 : vector<8x1xf32>
    %cst_36 = arith.constant 9.99999974E-6 : f32
    %59 = vector.broadcast %cst_36 : f32 to vector<8x1xf32>
    %60 = arith.addf %58, %59 : vector<8x1xf32>
    %61 = math.rsqrt %60 : vector<8x1xf32>
    %62 = vector.broadcast %61 : vector<8x1xf32> to vector<8x512xf32>
    %63 = arith.mulf %51, %62 : vector<8x512xf32>
    %64 = vector.broadcast %7 : vector<1x512xf32> to vector<8x512xf32>
    %65 = arith.mulf %63, %64 : vector<8x512xf32>
    %cst_37 = arith.constant dense<0.000000e+00> : vector<8xf32>
    %66 = vector.multi_reduction <add>, %45, %cst_37 [1] : vector<8x512xf32> to vector<8xf32>
    %67 = vector.shape_cast %66 : vector<8xf32> to vector<8x1xf32>
    %68 = vector.broadcast %cst : f32 to vector<8x1xf32>
    %69 = arith.mulf %67, %68 : vector<8x1xf32>
    %70 = vector.broadcast %69 : vector<8x1xf32> to vector<8x512xf32>
    %71 = arith.subf %45, %70 : vector<8x512xf32>
    %72 = vector.broadcast %34 : vector<1x512xf32> to vector<8x512xf32>
    %73 = arith.mulf %71, %72 : vector<8x512xf32>
    %74 = arith.mulf %73, %73 : vector<8x512xf32>
    %cst_38 = arith.constant dense<0.000000e+00> : vector<8xf32>
    %75 = vector.multi_reduction <add>, %74, %cst_38 [1] : vector<8x512xf32> to vector<8xf32>
    %76 = vector.shape_cast %75 : vector<8xf32> to vector<8x1xf32>
    %77 = vector.broadcast %cst : f32 to vector<8x1xf32>
    %78 = arith.mulf %76, %77 : vector<8x1xf32>
    %cst_39 = arith.constant 9.99999974E-6 : f32
    %79 = vector.broadcast %cst_39 : f32 to vector<8x1xf32>
    %80 = arith.addf %78, %79 : vector<8x1xf32>
    %81 = math.rsqrt %80 : vector<8x1xf32>
    %82 = vector.broadcast %81 : vector<8x1xf32> to vector<8x512xf32>
    %83 = arith.mulf %71, %82 : vector<8x512xf32>
    %84 = vector.broadcast %8 : vector<1x512xf32> to vector<8x512xf32>
    %85 = arith.mulf %83, %84 : vector<8x512xf32>
    %86 = arith.addf %65, %85 : vector<8x512xf32>
    %87 = vector.broadcast %9 : vector<1x512xf32> to vector<8x512xf32>
    %88 = arith.addf %86, %87 : vector<8x512xf32>
    %89 = vector.extract_strided_slice %88 {offsets = [0, 0], sizes = [8, 128], strides = [1, 1]} : vector<8x512xf32> to vector<8x128xf32>
    %90 = arith.negf %89 : vector<8x128xf32>
    %91 = math.exp %90 : vector<8x128xf32>
    %cst_40 = arith.constant 1.000000e+00 : f32
    %92 = vector.broadcast %cst_40 : f32 to vector<8x128xf32>
    %93 = arith.addf %92, %91 : vector<8x128xf32>
    %94 = arith.divf %92, %93 : vector<8x128xf32>
    %95 = vector.extract_strided_slice %88 {offsets = [0, 128], sizes = [8, 128], strides = [1, 1]} : vector<8x512xf32> to vector<8x128xf32>
    %96 = arith.negf %95 : vector<8x128xf32>
    %97 = math.exp %96 : vector<8x128xf32>
    %cst_41 = arith.constant 1.000000e+00 : f32
    %98 = vector.broadcast %cst_41 : f32 to vector<8x128xf32>
    %99 = arith.addf %98, %97 : vector<8x128xf32>
    %100 = arith.divf %98, %99 : vector<8x128xf32>
    %101 = vector.extract_strided_slice %88 {offsets = [0, 256], sizes = [8, 128], strides = [1, 1]} : vector<8x512xf32> to vector<8x128xf32>
    %102 = math.tanh %101 : vector<8x128xf32>
    %103 = vector.extract_strided_slice %88 {offsets = [0, 384], sizes = [8, 128], strides = [1, 1]} : vector<8x512xf32> to vector<8x128xf32>
    %104 = arith.negf %103 : vector<8x128xf32>
    %105 = math.exp %104 : vector<8x128xf32>
    %cst_42 = arith.constant 1.000000e+00 : f32
    %106 = vector.broadcast %cst_42 : f32 to vector<8x128xf32>
    %107 = arith.addf %106, %105 : vector<8x128xf32>
    %108 = arith.divf %106, %107 : vector<8x128xf32>
    %109 = arith.mulf %100, %36 : vector<8x128xf32>
    %110 = arith.mulf %94, %102 : vector<8x128xf32>
    %111 = arith.addf %109, %110 : vector<8x128xf32>
    %112 = math.tanh %111 : vector<8x128xf32>
    %cst_43 = arith.constant dense<0.000000e+00> : vector<8xf32>
    %113 = vector.multi_reduction <add>, %112, %cst_43 [1] : vector<8x128xf32> to vector<8xf32>
    %114 = vector.shape_cast %113 : vector<8xf32> to vector<8x1xf32>
    %115 = vector.broadcast %cst_24 : f32 to vector<8x1xf32>
    %116 = arith.mulf %114, %115 : vector<8x1xf32>
    %117 = arith.mulf %112, %112 : vector<8x128xf32>
    %cst_44 = arith.constant dense<0.000000e+00> : vector<8xf32>
    %118 = vector.multi_reduction <add>, %117, %cst_44 [1] : vector<8x128xf32> to vector<8xf32>
    %119 = vector.shape_cast %118 : vector<8xf32> to vector<8x1xf32>
    %120 = vector.broadcast %cst_24 : f32 to vector<8x1xf32>
    %121 = arith.mulf %119, %120 : vector<8x1xf32>
    %122 = arith.mulf %116, %116 : vector<8x1xf32>
    %123 = arith.subf %121, %122 : vector<8x1xf32>
    %124 = vector.broadcast %116 : vector<8x1xf32> to vector<8x128xf32>
    %125 = arith.subf %112, %124 : vector<8x128xf32>
    %cst_45 = arith.constant 9.99999974E-6 : f32
    %126 = vector.broadcast %cst_45 : f32 to vector<8x1xf32>
    %127 = arith.addf %123, %126 : vector<8x1xf32>
    %128 = math.rsqrt %127 : vector<8x1xf32>
    %129 = vector.broadcast %128 : vector<8x1xf32> to vector<8x128xf32>
    %130 = arith.mulf %125, %129 : vector<8x128xf32>
    %131 = vector.broadcast %10 : vector<1x128xf32> to vector<8x128xf32>
    %132 = arith.mulf %130, %131 : vector<8x128xf32>
    %133 = vector.broadcast %11 : vector<1x128xf32> to vector<8x128xf32>
    %134 = arith.addf %132, %133 : vector<8x128xf32>
    %135 = arith.mulf %108, %134 : vector<8x128xf32>
    %136 = arith.addi %13, %c0_i32_25 : i32
    %137 = vector.broadcast %136 : i32 to vector<8x1xi32>
    %138 = arith.cmpi slt, %137, %12 : vector<8x1xi32>
    %139 = arith.extui %138 : vector<8x1xi1> to vector<8x1xi32>
    %140 = arith.sitofp %139 : vector<8x1xi32> to vector<8x1xf32>
    %141 = vector.broadcast %140 : vector<8x1xf32> to vector<8x128xf32>
    %142 = arith.mulf %135, %141 : vector<8x128xf32>
    %143 = vector.broadcast %140 : vector<8x1xf32> to vector<8x128xf32>
    %144 = arith.mulf %111, %143 : vector<8x128xf32>
    %c0_46 = arith.constant 0 : index
    %c0_47 = arith.constant 0 : index
    %145 = vector.load %arg19[%c0_46, %c0_47] : memref<8x128xf32, #tpu.memory_space<vmem>>, vector<8x128xf32>
    tpu.vector_store %arg19[%c0_46, %c0_47], %142 {strides = array<i32>} : memref<8x128xf32, #tpu.memory_space<vmem>>, vector<8x128xf32>,
    %c0_48 = arith.constant 0 : index
    %c0_49 = arith.constant 0 : index
    %146 = vector.load %arg20[%c0_48, %c0_49] : memref<8x128xf32, #tpu.memory_space<vmem>>, vector<8x128xf32>
    tpu.vector_store %arg20[%c0_48, %c0_49], %144 {strides = array<i32>} : memref<8x128xf32, #tpu.memory_space<vmem>>, vector<8x128xf32>,
    %147 = arith.index_cast %c0_i32_25 : i32 to index
    %c0_50 = arith.constant 0 : index
    %c0_51 = arith.constant 0 : index
    %148 = vector.load %arg13[%147, %c0_50, %c0_51] : memref<8x8x128xf32, #tpu.memory_space<vmem>>, vector<1x8x128xf32>
    %149 = vector.shape_cast %148 : vector<1x8x128xf32> to vector<8x128xf32>
    %150 = vector.shape_cast %142 : vector<8x128xf32> to vector<1x8x128xf32>
    tpu.vector_store %arg13[%147, %c0_50, %c0_51], %150 {strides = array<i32>} : memref<8x8x128xf32, #tpu.memory_space<vmem>>, vector<1x8x128xf32>,
    %c1_i32_52 = arith.constant 1 : i32
    %151 = vector.broadcast %c1_i32_52 : i32 to vector<8x1xi32>
    %152 = arith.subi %12, %151 : vector<8x1xi32>
    %153 = vector.broadcast %136 : i32 to vector<8x1xi32>
    %154 = arith.cmpi eq, %153, %152 : vector<8x1xi32>
    %c0_53 = arith.constant 0 : index
    %c0_54 = arith.constant 0 : index
    %155 = vector.load %arg21[%c0_53, %c0_54] : memref<8x128xf32, #tpu.memory_space<vmem>>, vector<8x128xf32>
    %156 = vector.shape_cast %154 : vector<8x1xi1> to vector<8x1xi1>
    %157 = vector.broadcast %156 : vector<8x1xi1> to vector<8x128xi1>
    %158 = arith.select %157, %142, %155 : vector<8x128xi1>, vector<8x128xf32>
    %c0_55 = arith.constant 0 : index
    %c0_56 = arith.constant 0 : index
    %159 = vector.load %arg21[%c0_55, %c0_56] : memref<8x128xf32, #tpu.memory_space<vmem>>, vector<8x128xf32>
    tpu.vector_store %arg21[%c0_55, %c0_56], %158 {strides = array<i32>} : memref<8x128xf32, #tpu.memory_space<vmem>>, vector<8x128xf32>,
    %c0_57 = arith.constant 0 : index
    %c0_58 = arith.constant 0 : index
    %160 = vector.load %arg22[%c0_57, %c0_58] : memref<8x128xf32, #tpu.memory_space<vmem>>, vector<8x128xf32>
    %161 = vector.shape_cast %154 : vector<8x1xi1> to vector<8x1xi1>
    %162 = vector.broadcast %161 : vector<8x1xi1> to vector<8x128xi1>
    %163 = arith.select %162, %144, %160 : vector<8x128xi1>, vector<8x128xf32>
    %c0_59 = arith.constant 0 : index
    %c0_60 = arith.constant 0 : index
    %164 = vector.load %arg22[%c0_59, %c0_60] : memref<8x128xf32, #tpu.memory_space<vmem>>, vector<8x128xf32>
    tpu.vector_store %arg22[%c0_59, %c0_60], %163 {strides = array<i32>} : memref<8x128xf32, #tpu.memory_space<vmem>>, vector<8x128xf32>,
    %c1_i32_61 = arith.constant 1 : i32
    %c0_62 = arith.constant 0 : index
    %c0_63 = arith.constant 0 : index
    %165 = vector.load %arg19[%c0_62, %c0_63] : memref<8x128xf32, #tpu.memory_space<vmem>>, vector<8x128xf32>
    %c0_64 = arith.constant 0 : index
    %c0_65 = arith.constant 0 : index
    %166 = vector.load %arg20[%c0_64, %c0_65] : memref<8x128xf32, #tpu.memory_space<vmem>>, vector<8x128xf32>
    %167 = arith.index_cast %c1_i32_61 : i32 to index
    %c0_66 = arith.constant 0 : index
    %c0_67 = arith.constant 0 : index
    %168 = vector.load %arg3[%167, %c0_66, %c0_67] : memref<8x8x16xf32, #tpu.memory_space<vmem>>, vector<1x8x16xf32>
    %169 = vector.shape_cast %168 : vector<1x8x16xf32> to vector<8x16xf32>
    %cst_68 = arith.constant dense<0.000000e+00> : vector<8x512xf32>
    %170 = tpu.matmul %169, %3, %cst_68 {dimension_numbers = #tpu.dot_dimension_numbers<[1], [0], [0], [1], [0, 0, 1, 1], [], []>} : vector<8x16xf32>, vector<16x512xf32>, vector<8x512xf32> -> vector<8x512xf32>
    %171 = vector.broadcast %5 : vector<1x512xf32> to vector<8x512xf32>
    %172 = arith.addf %170, %171 : vector<8x512xf32>
    %cst_69 = arith.constant dense<0.000000e+00> : vector<8x512xf32>
    %173 = tpu.matmul %165, %4, %cst_69 {dimension_numbers = #tpu.dot_dimension_numbers<[1], [0], [0], [1], [0, 0, 1, 1], [], []>} : vector<8x128xf32>, vector<128x512xf32>, vector<8x512xf32> -> vector<8x512xf32>
    %174 = vector.broadcast %6 : vector<1x512xf32> to vector<8x512xf32>
    %175 = arith.addf %173, %174 : vector<8x512xf32>
    %cst_70 = arith.constant dense<0.000000e+00> : vector<8xf32>
    %176 = vector.multi_reduction <add>, %172, %cst_70 [1] : vector<8x512xf32> to vector<8xf32>
    %177 = vector.shape_cast %176 : vector<8xf32> to vector<8x1xf32>
    %178 = vector.broadcast %cst : f32 to vector<8x1xf32>
    %179 = arith.mulf %177, %178 : vector<8x1xf32>
    %180 = vector.broadcast %179 : vector<8x1xf32> to vector<8x512xf32>
    %181 = arith.subf %172, %180 : vector<8x512xf32>
    %182 = vector.broadcast %34 : vector<1x512xf32> to vector<8x512xf32>
    %183 = arith.mulf %181, %182 : vector<8x512xf32>
    %184 = arith.mulf %183, %183 : vector<8x512xf32>
    %cst_71 = arith.constant dense<0.000000e+00> : vector<8xf32>
    %185 = vector.multi_reduction <add>, %184, %cst_71 [1] : vector<8x512xf32> to vector<8xf32>
    %186 = vector.shape_cast %185 : vector<8xf32> to vector<8x1xf32>
    %187 = vector.broadcast %cst : f32 to vector<8x1xf32>
    %188 = arith.mulf %186, %187 : vector<8x1xf32>
    %cst_72 = arith.constant 9.99999974E-6 : f32
    %189 = vector.broadcast %cst_72 : f32 to vector<8x1xf32>
    %190 = arith.addf %188, %189 : vector<8x1xf32>
    %191 = math.rsqrt %190 : vector<8x1xf32>
    %192 = vector.broadcast %191 : vector<8x1xf32> to vector<8x512xf32>
    %193 = arith.mulf %181, %192 : vector<8x512xf32>
    %194 = vector.broadcast %7 : vector<1x512xf32> to vector<8x512xf32>
    %195 = arith.mulf %193, %194 : vector<8x512xf32>
    %cst_73 = arith.constant dense<0.000000e+00> : vector<8xf32>
    %196 = vector.multi_reduction <add>, %175, %cst_73 [1] : vector<8x512xf32> to vector<8xf32>
    %197 = vector.shape_cast %196 : vector<8xf32> to vector<8x1xf32>
    %198 = vector.broadcast %cst : f32 to vector<8x1xf32>
    %199 = arith.mulf %197, %198 : vector<8x1xf32>
    %200 = vector.broadcast %199 : vector<8x1xf32> to vector<8x512xf32>
    %201 = arith.subf %175, %200 : vector<8x512xf32>
    %202 = vector.broadcast %34 : vector<1x512xf32> to vector<8x512xf32>
    %203 = arith.mulf %201, %202 : vector<8x512xf32>
    %204 = arith.mulf %203, %203 : vector<8x512xf32>
    %cst_74 = arith.constant dense<0.000000e+00> : vector<8xf32>
    %205 = vector.multi_reduction <add>, %204, %cst_74 [1] : vector<8x512xf32> to vector<8xf32>
    %206 = vector.shape_cast %205 : vector<8xf32> to vector<8x1xf32>
    %207 = vector.broadcast %cst : f32 to vector<8x1xf32>
    %208 = arith.mulf %206, %207 : vector<8x1xf32>
    %cst_75 = arith.constant 9.99999974E-6 : f32
    %209 = vector.broadcast %cst_75 : f32 to vector<8x1xf32>
    %210 = arith.addf %208, %209 : vector<8x1xf32>
    %211 = math.rsqrt %210 : vector<8x1xf32>
    %212 = vector.broadcast %211 : vector<8x1xf32> to vector<8x512xf32>
    %213 = arith.mulf %201, %212 : vector<8x512xf32>
    %214 = vector.broadcast %8 : vector<1x512xf32> to vector<8x512xf32>
    %215 = arith.mulf %213, %214 : vector<8x512xf32>
    %216 = arith.addf %195, %215 : vector<8x512xf32>
    %217 = vector.broadcast %9 : vector<1x512xf32> to vector<8x512xf32>
    %218 = arith.addf %216, %217 : vector<8x512xf32>
    %219 = vector.extract_strided_slice %218 {offsets = [0, 0], sizes = [8, 128], strides = [1, 1]} : vector<8x512xf32> to vector<8x128xf32>
    %220 = arith.negf %219 : vector<8x128xf32>
    %221 = math.exp %220 : vector<8x128xf32>
    %cst_76 = arith.constant 1.000000e+00 : f32
    %222 = vector.broadcast %cst_76 : f32 to vector<8x128xf32>
    %223 = arith.addf %222, %221 : vector<8x128xf32>
    %224 = arith.divf %222, %223 : vector<8x128xf32>
    %225 = vector.extract_strided_slice %218 {offsets = [0, 128], sizes = [8, 128], strides = [1, 1]} : vector<8x512xf32> to vector<8x128xf32>
    %226 = arith.negf %225 : vector<8x128xf32>
    %227 = math.exp %226 : vector<8x128xf32>
    %cst_77 = arith.constant 1.000000e+00 : f32
    %228 = vector.broadcast %cst_77 : f32 to vector<8x128xf32>
    %229 = arith.addf %228, %227 : vector<8x128xf32>
    %230 = arith.divf %228, %229 : vector<8x128xf32>
    %231 = vector.extract_strided_slice %218 {offsets = [0, 256], sizes = [8, 128], strides = [1, 1]} : vector<8x512xf32> to vector<8x128xf32>
    %232 = math.tanh %231 : vector<8x128xf32>
    %233 = vector.extract_strided_slice %218 {offsets = [0, 384], sizes = [8, 128], strides = [1, 1]} : vector<8x512xf32> to vector<8x128xf32>
    %234 = arith.negf %233 : vector<8x128xf32>
    %235 = math.exp %234 : vector<8x128xf32>
    %cst_78 = arith.constant 1.000000e+00 : f32
    %236 = vector.broadcast %cst_78 : f32 to vector<8x128xf32>
    %237 = arith.addf %236, %235 : vector<8x128xf32>
    %238 = arith.divf %236, %237 : vector<8x128xf32>
    %239 = arith.mulf %230, %166 : vector<8x128xf32>
    %240 = arith.mulf %224, %232 : vector<8x128xf32>
    %241 = arith.addf %239, %240 : vector<8x128xf32>
    %242 = math.tanh %241 : vector<8x128xf32>
    %cst_79 = arith.constant dense<0.000000e+00> : vector<8xf32>
    %243 = vector.multi_reduction <add>, %242, %cst_79 [1] : vector<8x128xf32> to vector<8xf32>
    %244 = vector.shape_cast %243 : vector<8xf32> to vector<8x1xf32>
    %245 = vector.broadcast %cst_24 : f32 to vector<8x1xf32>
    %246 = arith.mulf %244, %245 : vector<8x1xf32>
    %247 = arith.mulf %242, %242 : vector<8x128xf32>
    %cst_80 = arith.constant dense<0.000000e+00> : vector<8xf32>
    %248 = vector.multi_reduction <add>, %247, %cst_80 [1] : vector<8x128xf32> to vector<8xf32>
    %249 = vector.shape_cast %248 : vector<8xf32> to vector<8x1xf32>
    %250 = vector.broadcast %cst_24 : f32 to vector<8x1xf32>
    %251 = arith.mulf %249, %250 : vector<8x1xf32>
    %252 = arith.mulf %246, %246 : vector<8x1xf32>
    %253 = arith.subf %251, %252 : vector<8x1xf32>
    %254 = vector.broadcast %246 : vector<8x1xf32> to vector<8x128xf32>
    %255 = arith.subf %242, %254 : vector<8x128xf32>
    %cst_81 = arith.constant 9.99999974E-6 : f32
    %256 = vector.broadcast %cst_81 : f32 to vector<8x1xf32>
    %257 = arith.addf %253, %256 : vector<8x1xf32>
    %258 = math.rsqrt %257 : vector<8x1xf32>
    %259 = vector.broadcast %258 : vector<8x1xf32> to vector<8x128xf32>
    %260 = arith.mulf %255, %259 : vector<8x128xf32>
    %261 = vector.broadcast %10 : vector<1x128xf32> to vector<8x128xf32>
    %262 = arith.mulf %260, %261 : vector<8x128xf32>
    %263 = vector.broadcast %11 : vector<1x128xf32> to vector<8x128xf32>
    %264 = arith.addf %262, %263 : vector<8x128xf32>
    %265 = arith.mulf %238, %264 : vector<8x128xf32>
    %266 = arith.addi %13, %c1_i32_61 : i32
    %267 = vector.broadcast %266 : i32 to vector<8x1xi32>
    %268 = arith.cmpi slt, %267, %12 : vector<8x1xi32>
    %269 = arith.extui %268 : vector<8x1xi1> to vector<8x1xi32>
    %270 = arith.sitofp %269 : vector<8x1xi32> to vector<8x1xf32>
    %271 = vector.broadcast %270 : vector<8x1xf32> to vector<8x128xf32>
    %272 = arith.mulf %265, %271 : vector<8x128xf32>
    %273 = vector.broadcast %270 : vector<8x1xf32> to vector<8x128xf32>
    %274 = arith.mulf %241, %273 : vector<8x128xf32>
    %c0_82 = arith.constant 0 : index
    %c0_83 = arith.constant 0 : index
    %275 = vector.load %arg19[%c0_82, %c0_83] : memref<8x128xf32, #tpu.memory_space<vmem>>, vector<8x128xf32>
    tpu.vector_store %arg19[%c0_82, %c0_83], %272 {strides = array<i32>} : memref<8x128xf32, #tpu.memory_space<vmem>>, vector<8x128xf32>,
    %c0_84 = arith.constant 0 : index
    %c0_85 = arith.constant 0 : index
    %276 = vector.load %arg20[%c0_84, %c0_85] : memref<8x128xf32, #tpu.memory_space<vmem>>, vector<8x128xf32>
    tpu.vector_store %arg20[%c0_84, %c0_85], %274 {strides = array<i32>} : memref<8x128xf32, #tpu.memory_space<vmem>>, vector<8x128xf32>,
    %277 = arith.index_cast %c1_i32_61 : i32 to index
    %c0_86 = arith.constant 0 : index
    %c0_87 = arith.constant 0 : index
    %278 = vector.load %arg13[%277, %c0_86, %c0_87] : memref<8x8x128xf32, #tpu.memory_space<vmem>>, vector<1x8x128xf32>
    %279 = vector.shape_cast %278 : vector<1x8x128xf32> to vector<8x128xf32>
    %280 = vector.shape_cast %272 : vector<8x128xf32> to vector<1x8x128xf32>
    tpu.vector_store %arg13[%277, %c0_86, %c0_87], %280 {strides = array<i32>} : memref<8x8x128xf32, #tpu.memory_space<vmem>>, vector<1x8x128xf32>,
    %c1_i32_88 = arith.constant 1 : i32
    %281 = vector.broadcast %c1_i32_88 : i32 to vector<8x1xi32>
    %282 = arith.subi %12, %281 : vector<8x1xi32>
    %283 = vector.broadcast %266 : i32 to vector<8x1xi32>
    %284 = arith.cmpi eq, %283, %282 : vector<8x1xi32>
    %c0_89 = arith.constant 0 : index
    %c0_90 = arith.constant 0 : index
    %285 = vector.load %arg21[%c0_89, %c0_90] : memref<8x128xf32, #tpu.memory_space<vmem>>, vector<8x128xf32>
    %286 = vector.shape_cast %284 : vector<8x1xi1> to vector<8x1xi1>
    %287 = vector.broadcast %286 : vector<8x1xi1> to vector<8x128xi1>
    %288 = arith.select %287, %272, %285 : vector<8x128xi1>, vector<8x128xf32>
    %c0_91 = arith.constant 0 : index
    %c0_92 = arith.constant 0 : index
    %289 = vector.load %arg21[%c0_91, %c0_92] : memref<8x128xf32, #tpu.memory_space<vmem>>, vector<8x128xf32>
    tpu.vector_store %arg21[%c0_91, %c0_92], %288 {strides = array<i32>} : memref<8x128xf32, #tpu.memory_space<vmem>>, vector<8x128xf32>,
    %c0_93 = arith.constant 0 : index
    %c0_94 = arith.constant 0 : index
    %290 = vector.load %arg22[%c0_93, %c0_94] : memref<8x128xf32, #tpu.memory_space<vmem>>, vector<8x128xf32>
    %291 = vector.shape_cast %284 : vector<8x1xi1> to vector<8x1xi1>
    %292 = vector.broadcast %291 : vector<8x1xi1> to vector<8x128xi1>
    %293 = arith.select %292, %274, %290 : vector<8x128xi1>, vector<8x128xf32>
    %c0_95 = arith.constant 0 : index
    %c0_96 = arith.constant 0 : index
    %294 = vector.load %arg22[%c0_95, %c0_96] : memref<8x128xf32, #tpu.memory_space<vmem>>, vector<8x128xf32>
    tpu.vector_store %arg22[%c0_95, %c0_96], %293 {strides = array<i32>} : memref<8x128xf32, #tpu.memory_space<vmem>>, vector<8x128xf32>,
    %c2_i32 = arith.constant 2 : i32
    %c0_97 = arith.constant 0 : index
    %c0_98 = arith.constant 0 : index
    %295 = vector.load %arg19[%c0_97, %c0_98] : memref<8x128xf32, #tpu.memory_space<vmem>>, vector<8x128xf32>
    %c0_99 = arith.constant 0 : index
    %c0_100 = arith.constant 0 : index
    %296 = vector.load %arg20[%c0_99, %c0_100] : memref<8x128xf32, #tpu.memory_space<vmem>>, vector<8x128xf32>
    %297 = arith.index_cast %c2_i32 : i32 to index
    %c0_101 = arith.constant 0 : index
    %c0_102 = arith.constant 0 : index
    %298 = vector.load %arg3[%297, %c0_101, %c0_102] : memref<8x8x16xf32, #tpu.memory_space<vmem>>, vector<1x8x16xf32>
    %299 = vector.shape_cast %298 : vector<1x8x16xf32> to vector<8x16xf32>
    %cst_103 = arith.constant dense<0.000000e+00> : vector<8x512xf32>
    %300 = tpu.matmul %299, %3, %cst_103 {dimension_numbers = #tpu.dot_dimension_numbers<[1], [0], [0], [1], [0, 0, 1, 1], [], []>} : vector<8x16xf32>, vector<16x512xf32>, vector<8x512xf32> -> vector<8x512xf32>
    %301 = vector.broadcast %5 : vector<1x512xf32> to vector<8x512xf32>
    %302 = arith.addf %300, %301 : vector<8x512xf32>
    %cst_104 = arith.constant dense<0.000000e+00> : vector<8x512xf32>
    %303 = tpu.matmul %295, %4, %cst_104 {dimension_numbers = #tpu.dot_dimension_numbers<[1], [0], [0], [1], [0, 0, 1, 1], [], []>} : vector<8x128xf32>, vector<128x512xf32>, vector<8x512xf32> -> vector<8x512xf32>
    %304 = vector.broadcast %6 : vector<1x512xf32> to vector<8x512xf32>
    %305 = arith.addf %303, %304 : vector<8x512xf32>
    %cst_105 = arith.constant dense<0.000000e+00> : vector<8xf32>
    %306 = vector.multi_reduction <add>, %302, %cst_105 [1] : vector<8x512xf32> to vector<8xf32>
    %307 = vector.shape_cast %306 : vector<8xf32> to vector<8x1xf32>
    %308 = vector.broadcast %cst : f32 to vector<8x1xf32>
    %309 = arith.mulf %307, %308 : vector<8x1xf32>
    %310 = vector.broadcast %309 : vector<8x1xf32> to vector<8x512xf32>
    %311 = arith.subf %302, %310 : vector<8x512xf32>
    %312 = vector.broadcast %34 : vector<1x512xf32> to vector<8x512xf32>
    %313 = arith.mulf %311, %312 : vector<8x512xf32>
    %314 = arith.mulf %313, %313 : vector<8x512xf32>
    %cst_106 = arith.constant dense<0.000000e+00> : vector<8xf32>
    %315 = vector.multi_reduction <add>, %314, %cst_106 [1] : vector<8x512xf32> to vector<8xf32>
    %316 = vector.shape_cast %315 : vector<8xf32> to vector<8x1xf32>
    %317 = vector.broadcast %cst : f32 to vector<8x1xf32>
    %318 = arith.mulf %316, %317 : vector<8x1xf32>
    %cst_107 = arith.constant 9.99999974E-6 : f32
    %319 = vector.broadcast %cst_107 : f32 to vector<8x1xf32>
    %320 = arith.addf %318, %319 : vector<8x1xf32>
    %321 = math.rsqrt %320 : vector<8x1xf32>
    %322 = vector.broadcast %321 : vector<8x1xf32> to vector<8x512xf32>
    %323 = arith.mulf %311, %322 : vector<8x512xf32>
    %324 = vector.broadcast %7 : vector<1x512xf32> to vector<8x512xf32>
    %325 = arith.mulf %323, %324 : vector<8x512xf32>
    %cst_108 = arith.constant dense<0.000000e+00> : vector<8xf32>
    %326 = vector.multi_reduction <add>, %305, %cst_108 [1] : vector<8x512xf32> to vector<8xf32>
    %327 = vector.shape_cast %326 : vector<8xf32> to vector<8x1xf32>
    %328 = vector.broadcast %cst : f32 to vector<8x1xf32>
    %329 = arith.mulf %327, %328 : vector<8x1xf32>
    %330 = vector.broadcast %329 : vector<8x1xf32> to vector<8x512xf32>
    %331 = arith.subf %305, %330 : vector<8x512xf32>
    %332 = vector.broadcast %34 : vector<1x512xf32> to vector<8x512xf32>
    %333 = arith.mulf %331, %332 : vector<8x512xf32>
    %334 = arith.mulf %333, %333 : vector<8x512xf32>
    %cst_109 = arith.constant dense<0.000000e+00> : vector<8xf32>
    %335 = vector.multi_reduction <add>, %334, %cst_109 [1] : vector<8x512xf32> to vector<8xf32>
    %336 = vector.shape_cast %335 : vector<8xf32> to vector<8x1xf32>
    %337 = vector.broadcast %cst : f32 to vector<8x1xf32>
    %338 = arith.mulf %336, %337 : vector<8x1xf32>
    %cst_110 = arith.constant 9.99999974E-6 : f32
    %339 = vector.broadcast %cst_110 : f32 to vector<8x1xf32>
    %340 = arith.addf %338, %339 : vector<8x1xf32>
    %341 = math.rsqrt %340 : vector<8x1xf32>
    %342 = vector.broadcast %341 : vector<8x1xf32> to vector<8x512xf32>
    %343 = arith.mulf %331, %342 : vector<8x512xf32>
    %344 = vector.broadcast %8 : vector<1x512xf32> to vector<8x512xf32>
    %345 = arith.mulf %343, %344 : vector<8x512xf32>
    %346 = arith.addf %325, %345 : vector<8x512xf32>
    %347 = vector.broadcast %9 : vector<1x512xf32> to vector<8x512xf32>
    %348 = arith.addf %346, %347 : vector<8x512xf32>
    %349 = vector.extract_strided_slice %348 {offsets = [0, 0], sizes = [8, 128], strides = [1, 1]} : vector<8x512xf32> to vector<8x128xf32>
    %350 = arith.negf %349 : vector<8x128xf32>
    %351 = math.exp %350 : vector<8x128xf32>
    %cst_111 = arith.constant 1.000000e+00 : f32
    %352 = vector.broadcast %cst_111 : f32 to vector<8x128xf32>
    %353 = arith.addf %352, %351 : vector<8x128xf32>
    %354 = arith.divf %352, %353 : vector<8x128xf32>
    %355 = vector.extract_strided_slice %348 {offsets = [0, 128], sizes = [8, 128], strides = [1, 1]} : vector<8x512xf32> to vector<8x128xf32>
    %356 = arith.negf %355 : vector<8x128xf32>
    %357 = math.exp %356 : vector<8x128xf32>
    %cst_112 = arith.constant 1.000000e+00 : f32
    %358 = vector.broadcast %cst_112 : f32 to vector<8x128xf32>
    %359 = arith.addf %358, %357 : vector<8x128xf32>
    %360 = arith.divf %358, %359 : vector<8x128xf32>
    %361 = vector.extract_strided_slice %348 {offsets = [0, 256], sizes = [8, 128], strides = [1, 1]} : vector<8x512xf32> to vector<8x128xf32>
    %362 = math.tanh %361 : vector<8x128xf32>
    %363 = vector.extract_strided_slice %348 {offsets = [0, 384], sizes = [8, 128], strides = [1, 1]} : vector<8x512xf32> to vector<8x128xf32>
    %364 = arith.negf %363 : vector<8x128xf32>
    %365 = math.exp %364 : vector<8x128xf32>
    %cst_113 = arith.constant 1.000000e+00 : f32
    %366 = vector.broadcast %cst_113 : f32 to vector<8x128xf32>
    %367 = arith.addf %366, %365 : vector<8x128xf32>
    %368 = arith.divf %366, %367 : vector<8x128xf32>
    %369 = arith.mulf %360, %296 : vector<8x128xf32>
    %370 = arith.mulf %354, %362 : vector<8x128xf32>
    %371 = arith.addf %369, %370 : vector<8x128xf32>
    %372 = math.tanh %371 : vector<8x128xf32>
    %cst_114 = arith.constant dense<0.000000e+00> : vector<8xf32>
    %373 = vector.multi_reduction <add>, %372, %cst_114 [1] : vector<8x128xf32> to vector<8xf32>
    %374 = vector.shape_cast %373 : vector<8xf32> to vector<8x1xf32>
    %375 = vector.broadcast %cst_24 : f32 to vector<8x1xf32>
    %376 = arith.mulf %374, %375 : vector<8x1xf32>
    %377 = arith.mulf %372, %372 : vector<8x128xf32>
    %cst_115 = arith.constant dense<0.000000e+00> : vector<8xf32>
    %378 = vector.multi_reduction <add>, %377, %cst_115 [1] : vector<8x128xf32> to vector<8xf32>
    %379 = vector.shape_cast %378 : vector<8xf32> to vector<8x1xf32>
    %380 = vector.broadcast %cst_24 : f32 to vector<8x1xf32>
    %381 = arith.mulf %379, %380 : vector<8x1xf32>
    %382 = arith.mulf %376, %376 : vector<8x1xf32>
    %383 = arith.subf %381, %382 : vector<8x1xf32>
    %384 = vector.broadcast %376 : vector<8x1xf32> to vector<8x128xf32>
    %385 = arith.subf %372, %384 : vector<8x128xf32>
    %cst_116 = arith.constant 9.99999974E-6 : f32
    %386 = vector.broadcast %cst_116 : f32 to vector<8x1xf32>
    %387 = arith.addf %383, %386 : vector<8x1xf32>
    %388 = math.rsqrt %387 : vector<8x1xf32>
    %389 = vector.broadcast %388 : vector<8x1xf32> to vector<8x128xf32>
    %390 = arith.mulf %385, %389 : vector<8x128xf32>
    %391 = vector.broadcast %10 : vector<1x128xf32> to vector<8x128xf32>
    %392 = arith.mulf %390, %391 : vector<8x128xf32>
    %393 = vector.broadcast %11 : vector<1x128xf32> to vector<8x128xf32>
    %394 = arith.addf %392, %393 : vector<8x128xf32>
    %395 = arith.mulf %368, %394 : vector<8x128xf32>
    %396 = arith.addi %13, %c2_i32 : i32
    %397 = vector.broadcast %396 : i32 to vector<8x1xi32>
    %398 = arith.cmpi slt, %397, %12 : vector<8x1xi32>
    %399 = arith.extui %398 : vector<8x1xi1> to vector<8x1xi32>
    %400 = arith.sitofp %399 : vector<8x1xi32> to vector<8x1xf32>
    %401 = vector.broadcast %400 : vector<8x1xf32> to vector<8x128xf32>
    %402 = arith.mulf %395, %401 : vector<8x128xf32>
    %403 = vector.broadcast %400 : vector<8x1xf32> to vector<8x128xf32>
    %404 = arith.mulf %371, %403 : vector<8x128xf32>
    %c0_117 = arith.constant 0 : index
    %c0_118 = arith.constant 0 : index
    %405 = vector.load %arg19[%c0_117, %c0_118] : memref<8x128xf32, #tpu.memory_space<vmem>>, vector<8x128xf32>
    tpu.vector_store %arg19[%c0_117, %c0_118], %402 {strides = array<i32>} : memref<8x128xf32, #tpu.memory_space<vmem>>, vector<8x128xf32>,
    %c0_119 = arith.constant 0 : index
    %c0_120 = arith.constant 0 : index
    %406 = vector.load %arg20[%c0_119, %c0_120] : memref<8x128xf32, #tpu.memory_space<vmem>>, vector<8x128xf32>
    tpu.vector_store %arg20[%c0_119, %c0_120], %404 {strides = array<i32>} : memref<8x128xf32, #tpu.memory_space<vmem>>, vector<8x128xf32>,
    %407 = arith.index_cast %c2_i32 : i32 to index
    %c0_121 = arith.constant 0 : index
    %c0_122 = arith.constant 0 : index
    %408 = vector.load %arg13[%407, %c0_121, %c0_122] : memref<8x8x128xf32, #tpu.memory_space<vmem>>, vector<1x8x128xf32>
    %409 = vector.shape_cast %408 : vector<1x8x128xf32> to vector<8x128xf32>
    %410 = vector.shape_cast %402 : vector<8x128xf32> to vector<1x8x128xf32>
    tpu.vector_store %arg13[%407, %c0_121, %c0_122], %410 {strides = array<i32>} : memref<8x8x128xf32, #tpu.memory_space<vmem>>, vector<1x8x128xf32>,
    %c1_i32_123 = arith.constant 1 : i32
    %411 = vector.broadcast %c1_i32_123 : i32 to vector<8x1xi32>
    %412 = arith.subi %12, %411 : vector<8x1xi32>
    %413 = vector.broadcast %396 : i32 to vector<8x1xi32>
    %414 = arith.cmpi eq, %413, %412 : vector<8x1xi32>
    %c0_124 = arith.constant 0 : index
    %c0_125 = arith.constant 0 : index
    %415 = vector.load %arg21[%c0_124, %c0_125] : memref<8x128xf32, #tpu.memory_space<vmem>>, vector<8x128xf32>
    %416 = vector.shape_cast %414 : vector<8x1xi1> to vector<8x1xi1>
    %417 = vector.broadcast %416 : vector<8x1xi1> to vector<8x128xi1>
    %418 = arith.select %417, %402, %415 : vector<8x128xi1>, vector<8x128xf32>
    %c0_126 = arith.constant 0 : index
    %c0_127 = arith.constant 0 : index
    %419 = vector.load %arg21[%c0_126, %c0_127] : memref<8x128xf32, #tpu.memory_space<vmem>>, vector<8x128xf32>
    tpu.vector_store %arg21[%c0_126, %c0_127], %418 {strides = array<i32>} : memref<8x128xf32, #tpu.memory_space<vmem>>, vector<8x128xf32>,
    %c0_128 = arith.constant 0 : index
    %c0_129 = arith.constant 0 : index
    %420 = vector.load %arg22[%c0_128, %c0_129] : memref<8x128xf32, #tpu.memory_space<vmem>>, vector<8x128xf32>
    %421 = vector.shape_cast %414 : vector<8x1xi1> to vector<8x1xi1>
    %422 = vector.broadcast %421 : vector<8x1xi1> to vector<8x128xi1>
    %423 = arith.select %422, %404, %420 : vector<8x128xi1>, vector<8x128xf32>
    %c0_130 = arith.constant 0 : index
    %c0_131 = arith.constant 0 : index
    %424 = vector.load %arg22[%c0_130, %c0_131] : memref<8x128xf32, #tpu.memory_space<vmem>>, vector<8x128xf32>
    tpu.vector_store %arg22[%c0_130, %c0_131], %423 {strides = array<i32>} : memref<8x128xf32, #tpu.memory_space<vmem>>, vector<8x128xf32>,
    %c3_i32 = arith.constant 3 : i32
    %c0_132 = arith.constant 0 : index
    %c0_133 = arith.constant 0 : index
    %425 = vector.load %arg19[%c0_132, %c0_133] : memref<8x128xf32, #tpu.memory_space<vmem>>, vector<8x128xf32>
    %c0_134 = arith.constant 0 : index
    %c0_135 = arith.constant 0 : index
    %426 = vector.load %arg20[%c0_134, %c0_135] : memref<8x128xf32, #tpu.memory_space<vmem>>, vector<8x128xf32>
    %427 = arith.index_cast %c3_i32 : i32 to index
    %c0_136 = arith.constant 0 : index
    %c0_137 = arith.constant 0 : index
    %428 = vector.load %arg3[%427, %c0_136, %c0_137] : memref<8x8x16xf32, #tpu.memory_space<vmem>>, vector<1x8x16xf32>
    %429 = vector.shape_cast %428 : vector<1x8x16xf32> to vector<8x16xf32>
    %cst_138 = arith.constant dense<0.000000e+00> : vector<8x512xf32>
    %430 = tpu.matmul %429, %3, %cst_138 {dimension_numbers = #tpu.dot_dimension_numbers<[1], [0], [0], [1], [0, 0, 1, 1], [], []>} : vector<8x16xf32>, vector<16x512xf32>, vector<8x512xf32> -> vector<8x512xf32>
    %431 = vector.broadcast %5 : vector<1x512xf32> to vector<8x512xf32>
    %432 = arith.addf %430, %431 : vector<8x512xf32>
    %cst_139 = arith.constant dense<0.000000e+00> : vector<8x512xf32>
    %433 = tpu.matmul %425, %4, %cst_139 {dimension_numbers = #tpu.dot_dimension_numbers<[1], [0], [0], [1], [0, 0, 1, 1], [], []>} : vector<8x128xf32>, vector<128x512xf32>, vector<8x512xf32> -> vector<8x512xf32>
    %434 = vector.broadcast %6 : vector<1x512xf32> to vector<8x512xf32>
    %435 = arith.addf %433, %434 : vector<8x512xf32>
    %cst_140 = arith.constant dense<0.000000e+00> : vector<8xf32>
    %436 = vector.multi_reduction <add>, %432, %cst_140 [1] : vector<8x512xf32> to vector<8xf32>
    %437 = vector.shape_cast %436 : vector<8xf32> to vector<8x1xf32>
    %438 = vector.broadcast %cst : f32 to vector<8x1xf32>
    %439 = arith.mulf %437, %438 : vector<8x1xf32>
    %440 = vector.broadcast %439 : vector<8x1xf32> to vector<8x512xf32>
    %441 = arith.subf %432, %440 : vector<8x512xf32>
    %442 = vector.broadcast %34 : vector<1x512xf32> to vector<8x512xf32>
    %443 = arith.mulf %441, %442 : vector<8x512xf32>
    %444 = arith.mulf %443, %443 : vector<8x512xf32>
    %cst_141 = arith.constant dense<0.000000e+00> : vector<8xf32>
    %445 = vector.multi_reduction <add>, %444, %cst_141 [1] : vector<8x512xf32> to vector<8xf32>
    %446 = vector.shape_cast %445 : vector<8xf32> to vector<8x1xf32>
    %447 = vector.broadcast %cst : f32 to vector<8x1xf32>
    %448 = arith.mulf %446, %447 : vector<8x1xf32>
    %cst_142 = arith.constant 9.99999974E-6 : f32
    %449 = vector.broadcast %cst_142 : f32 to vector<8x1xf32>
    %450 = arith.addf %448, %449 : vector<8x1xf32>
    %451 = math.rsqrt %450 : vector<8x1xf32>
    %452 = vector.broadcast %451 : vector<8x1xf32> to vector<8x512xf32>
    %453 = arith.mulf %441, %452 : vector<8x512xf32>
    %454 = vector.broadcast %7 : vector<1x512xf32> to vector<8x512xf32>
    %455 = arith.mulf %453, %454 : vector<8x512xf32>
    %cst_143 = arith.constant dense<0.000000e+00> : vector<8xf32>
    %456 = vector.multi_reduction <add>, %435, %cst_143 [1] : vector<8x512xf32> to vector<8xf32>
    %457 = vector.shape_cast %456 : vector<8xf32> to vector<8x1xf32>
    %458 = vector.broadcast %cst : f32 to vector<8x1xf32>
    %459 = arith.mulf %457, %458 : vector<8x1xf32>
    %460 = vector.broadcast %459 : vector<8x1xf32> to vector<8x512xf32>
    %461 = arith.subf %435, %460 : vector<8x512xf32>
    %462 = vector.broadcast %34 : vector<1x512xf32> to vector<8x512xf32>
    %463 = arith.mulf %461, %462 : vector<8x512xf32>
    %464 = arith.mulf %463, %463 : vector<8x512xf32>
    %cst_144 = arith.constant dense<0.000000e+00> : vector<8xf32>
    %465 = vector.multi_reduction <add>, %464, %cst_144 [1] : vector<8x512xf32> to vector<8xf32>
    %466 = vector.shape_cast %465 : vector<8xf32> to vector<8x1xf32>
    %467 = vector.broadcast %cst : f32 to vector<8x1xf32>
    %468 = arith.mulf %466, %467 : vector<8x1xf32>
    %cst_145 = arith.constant 9.99999974E-6 : f32
    %469 = vector.broadcast %cst_145 : f32 to vector<8x1xf32>
    %470 = arith.addf %468, %469 : vector<8x1xf32>
    %471 = math.rsqrt %470 : vector<8x1xf32>
    %472 = vector.broadcast %471 : vector<8x1xf32> to vector<8x512xf32>
    %473 = arith.mulf %461, %472 : vector<8x512xf32>
    %474 = vector.broadcast %8 : vector<1x512xf32> to vector<8x512xf32>
    %475 = arith.mulf %473, %474 : vector<8x512xf32>
    %476 = arith.addf %455, %475 : vector<8x512xf32>
    %477 = vector.broadcast %9 : vector<1x512xf32> to vector<8x512xf32>
    %478 = arith.addf %476, %477 : vector<8x512xf32>
    %479 = vector.extract_strided_slice %478 {offsets = [0, 0], sizes = [8, 128], strides = [1, 1]} : vector<8x512xf32> to vector<8x128xf32>
    %480 = arith.negf %479 : vector<8x128xf32>
    %481 = math.exp %480 : vector<8x128xf32>
    %cst_146 = arith.constant 1.000000e+00 : f32
    %482 = vector.broadcast %cst_146 : f32 to vector<8x128xf32>
    %483 = arith.addf %482, %481 : vector<8x128xf32>
    %484 = arith.divf %482, %483 : vector<8x128xf32>
    %485 = vector.extract_strided_slice %478 {offsets = [0, 128], sizes = [8, 128], strides = [1, 1]} : vector<8x512xf32> to vector<8x128xf32>
    %486 = arith.negf %485 : vector<8x128xf32>
    %487 = math.exp %486 : vector<8x128xf32>
    %cst_147 = arith.constant 1.000000e+00 : f32
    %488 = vector.broadcast %cst_147 : f32 to vector<8x128xf32>
    %489 = arith.addf %488, %487 : vector<8x128xf32>
    %490 = arith.divf %488, %489 : vector<8x128xf32>
    %491 = vector.extract_strided_slice %478 {offsets = [0, 256], sizes = [8, 128], strides = [1, 1]} : vector<8x512xf32> to vector<8x128xf32>
    %492 = math.tanh %491 : vector<8x128xf32>
    %493 = vector.extract_strided_slice %478 {offsets = [0, 384], sizes = [8, 128], strides = [1, 1]} : vector<8x512xf32> to vector<8x128xf32>
    %494 = arith.negf %493 : vector<8x128xf32>
    %495 = math.exp %494 : vector<8x128xf32>
    %cst_148 = arith.constant 1.000000e+00 : f32
    %496 = vector.broadcast %cst_148 : f32 to vector<8x128xf32>
    %497 = arith.addf %496, %495 : vector<8x128xf32>
    %498 = arith.divf %496, %497 : vector<8x128xf32>
    %499 = arith.mulf %490, %426 : vector<8x128xf32>
    %500 = arith.mulf %484, %492 : vector<8x128xf32>
    %501 = arith.addf %499, %500 : vector<8x128xf32>
    %502 = math.tanh %501 : vector<8x128xf32>
    %cst_149 = arith.constant dense<0.000000e+00> : vector<8xf32>
    %503 = vector.multi_reduction <add>, %502, %cst_149 [1] : vector<8x128xf32> to vector<8xf32>
    %504 = vector.shape_cast %503 : vector<8xf32> to vector<8x1xf32>
    %505 = vector.broadcast %cst_24 : f32 to vector<8x1xf32>
    %506 = arith.mulf %504, %505 : vector<8x1xf32>
    %507 = arith.mulf %502, %502 : vector<8x128xf32>
    %cst_150 = arith.constant dense<0.000000e+00> : vector<8xf32>
    %508 = vector.multi_reduction <add>, %507, %cst_150 [1] : vector<8x128xf32> to vector<8xf32>
    %509 = vector.shape_cast %508 : vector<8xf32> to vector<8x1xf32>
    %510 = vector.broadcast %cst_24 : f32 to vector<8x1xf32>
    %511 = arith.mulf %509, %510 : vector<8x1xf32>
    %512 = arith.mulf %506, %506 : vector<8x1xf32>
    %513 = arith.subf %511, %512 : vector<8x1xf32>
    %514 = vector.broadcast %506 : vector<8x1xf32> to vector<8x128xf32>
    %515 = arith.subf %502, %514 : vector<8x128xf32>
    %cst_151 = arith.constant 9.99999974E-6 : f32
    %516 = vector.broadcast %cst_151 : f32 to vector<8x1xf32>
    %517 = arith.addf %513, %516 : vector<8x1xf32>
    %518 = math.rsqrt %517 : vector<8x1xf32>
    %519 = vector.broadcast %518 : vector<8x1xf32> to vector<8x128xf32>
    %520 = arith.mulf %515, %519 : vector<8x128xf32>
    %521 = vector.broadcast %10 : vector<1x128xf32> to vector<8x128xf32>
    %522 = arith.mulf %520, %521 : vector<8x128xf32>
    %523 = vector.broadcast %11 : vector<1x128xf32> to vector<8x128xf32>
    %524 = arith.addf %522, %523 : vector<8x128xf32>
    %525 = arith.mulf %498, %524 : vector<8x128xf32>
    %526 = arith.addi %13, %c3_i32 : i32
    %527 = vector.broadcast %526 : i32 to vector<8x1xi32>
    %528 = arith.cmpi slt, %527, %12 : vector<8x1xi32>
    %529 = arith.extui %528 : vector<8x1xi1> to vector<8x1xi32>
    %530 = arith.sitofp %529 : vector<8x1xi32> to vector<8x1xf32>
    %531 = vector.broadcast %530 : vector<8x1xf32> to vector<8x128xf32>
    %532 = arith.mulf %525, %531 : vector<8x128xf32>
    %533 = vector.broadcast %530 : vector<8x1xf32> to vector<8x128xf32>
    %534 = arith.mulf %501, %533 : vector<8x128xf32>
    %c0_152 = arith.constant 0 : index
    %c0_153 = arith.constant 0 : index
    %535 = vector.load %arg19[%c0_152, %c0_153] : memref<8x128xf32, #tpu.memory_space<vmem>>, vector<8x128xf32>
    tpu.vector_store %arg19[%c0_152, %c0_153], %532 {strides = array<i32>} : memref<8x128xf32, #tpu.memory_space<vmem>>, vector<8x128xf32>,
    %c0_154 = arith.constant 0 : index
    %c0_155 = arith.constant 0 : index
    %536 = vector.load %arg20[%c0_154, %c0_155] : memref<8x128xf32, #tpu.memory_space<vmem>>, vector<8x128xf32>
    tpu.vector_store %arg20[%c0_154, %c0_155], %534 {strides = array<i32>} : memref<8x128xf32, #tpu.memory_space<vmem>>, vector<8x128xf32>,
    %537 = arith.index_cast %c3_i32 : i32 to index
    %c0_156 = arith.constant 0 : index
    %c0_157 = arith.constant 0 : index
    %538 = vector.load %arg13[%537, %c0_156, %c0_157] : memref<8x8x128xf32, #tpu.memory_space<vmem>>, vector<1x8x128xf32>
    %539 = vector.shape_cast %538 : vector<1x8x128xf32> to vector<8x128xf32>
    %540 = vector.shape_cast %532 : vector<8x128xf32> to vector<1x8x128xf32>
    tpu.vector_store %arg13[%537, %c0_156, %c0_157], %540 {strides = array<i32>} : memref<8x8x128xf32, #tpu.memory_space<vmem>>, vector<1x8x128xf32>,
    %c1_i32_158 = arith.constant 1 : i32
    %541 = vector.broadcast %c1_i32_158 : i32 to vector<8x1xi32>
    %542 = arith.subi %12, %541 : vector<8x1xi32>
    %543 = vector.broadcast %526 : i32 to vector<8x1xi32>
    %544 = arith.cmpi eq, %543, %542 : vector<8x1xi32>
    %c0_159 = arith.constant 0 : index
    %c0_160 = arith.constant 0 : index
    %545 = vector.load %arg21[%c0_159, %c0_160] : memref<8x128xf32, #tpu.memory_space<vmem>>, vector<8x128xf32>
    %546 = vector.shape_cast %544 : vector<8x1xi1> to vector<8x1xi1>
    %547 = vector.broadcast %546 : vector<8x1xi1> to vector<8x128xi1>
    %548 = arith.select %547, %532, %545 : vector<8x128xi1>, vector<8x128xf32>
    %c0_161 = arith.constant 0 : index
    %c0_162 = arith.constant 0 : index
    %549 = vector.load %arg21[%c0_161, %c0_162] : memref<8x128xf32, #tpu.memory_space<vmem>>, vector<8x128xf32>
    tpu.vector_store %arg21[%c0_161, %c0_162], %548 {strides = array<i32>} : memref<8x128xf32, #tpu.memory_space<vmem>>, vector<8x128xf32>,
    %c0_163 = arith.constant 0 : index
    %c0_164 = arith.constant 0 : index
    %550 = vector.load %arg22[%c0_163, %c0_164] : memref<8x128xf32, #tpu.memory_space<vmem>>, vector<8x128xf32>
    %551 = vector.shape_cast %544 : vector<8x1xi1> to vector<8x1xi1>
    %552 = vector.broadcast %551 : vector<8x1xi1> to vector<8x128xi1>
    %553 = arith.select %552, %534, %550 : vector<8x128xi1>, vector<8x128xf32>
    %c0_165 = arith.constant 0 : index
    %c0_166 = arith.constant 0 : index
    %554 = vector.load %arg22[%c0_165, %c0_166] : memref<8x128xf32, #tpu.memory_space<vmem>>, vector<8x128xf32>
    tpu.vector_store %arg22[%c0_165, %c0_166], %553 {strides = array<i32>} : memref<8x128xf32, #tpu.memory_space<vmem>>, vector<8x128xf32>,
    %c4_i32 = arith.constant 4 : i32
    %c0_167 = arith.constant 0 : index
    %c0_168 = arith.constant 0 : index
    %555 = vector.load %arg19[%c0_167, %c0_168] : memref<8x128xf32, #tpu.memory_space<vmem>>, vector<8x128xf32>
    %c0_169 = arith.constant 0 : index
    %c0_170 = arith.constant 0 : index
    %556 = vector.load %arg20[%c0_169, %c0_170] : memref<8x128xf32, #tpu.memory_space<vmem>>, vector<8x128xf32>
    %557 = arith.index_cast %c4_i32 : i32 to index
    %c0_171 = arith.constant 0 : index
    %c0_172 = arith.constant 0 : index
    %558 = vector.load %arg3[%557, %c0_171, %c0_172] : memref<8x8x16xf32, #tpu.memory_space<vmem>>, vector<1x8x16xf32>
    %559 = vector.shape_cast %558 : vector<1x8x16xf32> to vector<8x16xf32>
    %cst_173 = arith.constant dense<0.000000e+00> : vector<8x512xf32>
    %560 = tpu.matmul %559, %3, %cst_173 {dimension_numbers = #tpu.dot_dimension_numbers<[1], [0], [0], [1], [0, 0, 1, 1], [], []>} : vector<8x16xf32>, vector<16x512xf32>, vector<8x512xf32> -> vector<8x512xf32>
    %561 = vector.broadcast %5 : vector<1x512xf32> to vector<8x512xf32>
    %562 = arith.addf %560, %561 : vector<8x512xf32>
    %cst_174 = arith.constant dense<0.000000e+00> : vector<8x512xf32>
    %563 = tpu.matmul %555, %4, %cst_174 {dimension_numbers = #tpu.dot_dimension_numbers<[1], [0], [0], [1], [0, 0, 1, 1], [], []>} : vector<8x128xf32>, vector<128x512xf32>, vector<8x512xf32> -> vector<8x512xf32>
    %564 = vector.broadcast %6 : vector<1x512xf32> to vector<8x512xf32>
    %565 = arith.addf %563, %564 : vector<8x512xf32>
    %cst_175 = arith.constant dense<0.000000e+00> : vector<8xf32>
    %566 = vector.multi_reduction <add>, %562, %cst_175 [1] : vector<8x512xf32> to vector<8xf32>
    %567 = vector.shape_cast %566 : vector<8xf32> to vector<8x1xf32>
    %568 = vector.broadcast %cst : f32 to vector<8x1xf32>
    %569 = arith.mulf %567, %568 : vector<8x1xf32>
    %570 = vector.broadcast %569 : vector<8x1xf32> to vector<8x512xf32>
    %571 = arith.subf %562, %570 : vector<8x512xf32>
    %572 = vector.broadcast %34 : vector<1x512xf32> to vector<8x512xf32>
    %573 = arith.mulf %571, %572 : vector<8x512xf32>
    %574 = arith.mulf %573, %573 : vector<8x512xf32>
    %cst_176 = arith.constant dense<0.000000e+00> : vector<8xf32>
    %575 = vector.multi_reduction <add>, %574, %cst_176 [1] : vector<8x512xf32> to vector<8xf32>
    %576 = vector.shape_cast %575 : vector<8xf32> to vector<8x1xf32>
    %577 = vector.broadcast %cst : f32 to vector<8x1xf32>
    %578 = arith.mulf %576, %577 : vector<8x1xf32>
    %cst_177 = arith.constant 9.99999974E-6 : f32
    %579 = vector.broadcast %cst_177 : f32 to vector<8x1xf32>
    %580 = arith.addf %578, %579 : vector<8x1xf32>
    %581 = math.rsqrt %580 : vector<8x1xf32>
    %582 = vector.broadcast %581 : vector<8x1xf32> to vector<8x512xf32>
    %583 = arith.mulf %571, %582 : vector<8x512xf32>
    %584 = vector.broadcast %7 : vector<1x512xf32> to vector<8x512xf32>
    %585 = arith.mulf %583, %584 : vector<8x512xf32>
    %cst_178 = arith.constant dense<0.000000e+00> : vector<8xf32>
    %586 = vector.multi_reduction <add>, %565, %cst_178 [1] : vector<8x512xf32> to vector<8xf32>
    %587 = vector.shape_cast %586 : vector<8xf32> to vector<8x1xf32>
    %588 = vector.broadcast %cst : f32 to vector<8x1xf32>
    %589 = arith.mulf %587, %588 : vector<8x1xf32>
    %590 = vector.broadcast %589 : vector<8x1xf32> to vector<8x512xf32>
    %591 = arith.subf %565, %590 : vector<8x512xf32>
    %592 = vector.broadcast %34 : vector<1x512xf32> to vector<8x512xf32>
    %593 = arith.mulf %591, %592 : vector<8x512xf32>
    %594 = arith.mulf %593, %593 : vector<8x512xf32>
    %cst_179 = arith.constant dense<0.000000e+00> : vector<8xf32>
    %595 = vector.multi_reduction <add>, %594, %cst_179 [1] : vector<8x512xf32> to vector<8xf32>
    %596 = vector.shape_cast %595 : vector<8xf32> to vector<8x1xf32>
    %597 = vector.broadcast %cst : f32 to vector<8x1xf32>
    %598 = arith.mulf %596, %597 : vector<8x1xf32>
    %cst_180 = arith.constant 9.99999974E-6 : f32
    %599 = vector.broadcast %cst_180 : f32 to vector<8x1xf32>
    %600 = arith.addf %598, %599 : vector<8x1xf32>
    %601 = math.rsqrt %600 : vector<8x1xf32>
    %602 = vector.broadcast %601 : vector<8x1xf32> to vector<8x512xf32>
    %603 = arith.mulf %591, %602 : vector<8x512xf32>
    %604 = vector.broadcast %8 : vector<1x512xf32> to vector<8x512xf32>
    %605 = arith.mulf %603, %604 : vector<8x512xf32>
    %606 = arith.addf %585, %605 : vector<8x512xf32>
    %607 = vector.broadcast %9 : vector<1x512xf32> to vector<8x512xf32>
    %608 = arith.addf %606, %607 : vector<8x512xf32>
    %609 = vector.extract_strided_slice %608 {offsets = [0, 0], sizes = [8, 128], strides = [1, 1]} : vector<8x512xf32> to vector<8x128xf32>
    %610 = arith.negf %609 : vector<8x128xf32>
    %611 = math.exp %610 : vector<8x128xf32>
    %cst_181 = arith.constant 1.000000e+00 : f32
    %612 = vector.broadcast %cst_181 : f32 to vector<8x128xf32>
    %613 = arith.addf %612, %611 : vector<8x128xf32>
    %614 = arith.divf %612, %613 : vector<8x128xf32>
    %615 = vector.extract_strided_slice %608 {offsets = [0, 128], sizes = [8, 128], strides = [1, 1]} : vector<8x512xf32> to vector<8x128xf32>
    %616 = arith.negf %615 : vector<8x128xf32>
    %617 = math.exp %616 : vector<8x128xf32>
    %cst_182 = arith.constant 1.000000e+00 : f32
    %618 = vector.broadcast %cst_182 : f32 to vector<8x128xf32>
    %619 = arith.addf %618, %617 : vector<8x128xf32>
    %620 = arith.divf %618, %619 : vector<8x128xf32>
    %621 = vector.extract_strided_slice %608 {offsets = [0, 256], sizes = [8, 128], strides = [1, 1]} : vector<8x512xf32> to vector<8x128xf32>
    %622 = math.tanh %621 : vector<8x128xf32>
    %623 = vector.extract_strided_slice %608 {offsets = [0, 384], sizes = [8, 128], strides = [1, 1]} : vector<8x512xf32> to vector<8x128xf32>
    %624 = arith.negf %623 : vector<8x128xf32>
    %625 = math.exp %624 : vector<8x128xf32>
    %cst_183 = arith.constant 1.000000e+00 : f32
    %626 = vector.broadcast %cst_183 : f32 to vector<8x128xf32>
    %627 = arith.addf %626, %625 : vector<8x128xf32>
    %628 = arith.divf %626, %627 : vector<8x128xf32>
    %629 = arith.mulf %620, %556 : vector<8x128xf32>
    %630 = arith.mulf %614, %622 : vector<8x128xf32>
    %631 = arith.addf %629, %630 : vector<8x128xf32>
    %632 = math.tanh %631 : vector<8x128xf32>
    %cst_184 = arith.constant dense<0.000000e+00> : vector<8xf32>
    %633 = vector.multi_reduction <add>, %632, %cst_184 [1] : vector<8x128xf32> to vector<8xf32>
    %634 = vector.shape_cast %633 : vector<8xf32> to vector<8x1xf32>
    %635 = vector.broadcast %cst_24 : f32 to vector<8x1xf32>
    %636 = arith.mulf %634, %635 : vector<8x1xf32>
    %637 = arith.mulf %632, %632 : vector<8x128xf32>
    %cst_185 = arith.constant dense<0.000000e+00> : vector<8xf32>
    %638 = vector.multi_reduction <add>, %637, %cst_185 [1] : vector<8x128xf32> to vector<8xf32>
    %639 = vector.shape_cast %638 : vector<8xf32> to vector<8x1xf32>
    %640 = vector.broadcast %cst_24 : f32 to vector<8x1xf32>
    %641 = arith.mulf %639, %640 : vector<8x1xf32>
    %642 = arith.mulf %636, %636 : vector<8x1xf32>
    %643 = arith.subf %641, %642 : vector<8x1xf32>
    %644 = vector.broadcast %636 : vector<8x1xf32> to vector<8x128xf32>
    %645 = arith.subf %632, %644 : vector<8x128xf32>
    %cst_186 = arith.constant 9.99999974E-6 : f32
    %646 = vector.broadcast %cst_186 : f32 to vector<8x1xf32>
    %647 = arith.addf %643, %646 : vector<8x1xf32>
    %648 = math.rsqrt %647 : vector<8x1xf32>
    %649 = vector.broadcast %648 : vector<8x1xf32> to vector<8x128xf32>
    %650 = arith.mulf %645, %649 : vector<8x128xf32>
    %651 = vector.broadcast %10 : vector<1x128xf32> to vector<8x128xf32>
    %652 = arith.mulf %650, %651 : vector<8x128xf32>
    %653 = vector.broadcast %11 : vector<1x128xf32> to vector<8x128xf32>
    %654 = arith.addf %652, %653 : vector<8x128xf32>
    %655 = arith.mulf %628, %654 : vector<8x128xf32>
    %656 = arith.addi %13, %c4_i32 : i32
    %657 = vector.broadcast %656 : i32 to vector<8x1xi32>
    %658 = arith.cmpi slt, %657, %12 : vector<8x1xi32>
    %659 = arith.extui %658 : vector<8x1xi1> to vector<8x1xi32>
    %660 = arith.sitofp %659 : vector<8x1xi32> to vector<8x1xf32>
    %661 = vector.broadcast %660 : vector<8x1xf32> to vector<8x128xf32>
    %662 = arith.mulf %655, %661 : vector<8x128xf32>
    %663 = vector.broadcast %660 : vector<8x1xf32> to vector<8x128xf32>
    %664 = arith.mulf %631, %663 : vector<8x128xf32>
    %c0_187 = arith.constant 0 : index
    %c0_188 = arith.constant 0 : index
    %665 = vector.load %arg19[%c0_187, %c0_188] : memref<8x128xf32, #tpu.memory_space<vmem>>, vector<8x128xf32>
    tpu.vector_store %arg19[%c0_187, %c0_188], %662 {strides = array<i32>} : memref<8x128xf32, #tpu.memory_space<vmem>>, vector<8x128xf32>,
    %c0_189 = arith.constant 0 : index
    %c0_190 = arith.constant 0 : index
    %666 = vector.load %arg20[%c0_189, %c0_190] : memref<8x128xf32, #tpu.memory_space<vmem>>, vector<8x128xf32>
    tpu.vector_store %arg20[%c0_189, %c0_190], %664 {strides = array<i32>} : memref<8x128xf32, #tpu.memory_space<vmem>>, vector<8x128xf32>,
    %667 = arith.index_cast %c4_i32 : i32 to index
    %c0_191 = arith.constant 0 : index
    %c0_192 = arith.constant 0 : index
    %668 = vector.load %arg13[%667, %c0_191, %c0_192] : memref<8x8x128xf32, #tpu.memory_space<vmem>>, vector<1x8x128xf32>
    %669 = vector.shape_cast %668 : vector<1x8x128xf32> to vector<8x128xf32>
    %670 = vector.shape_cast %662 : vector<8x128xf32> to vector<1x8x128xf32>
    tpu.vector_store %arg13[%667, %c0_191, %c0_192], %670 {strides = array<i32>} : memref<8x8x128xf32, #tpu.memory_space<vmem>>, vector<1x8x128xf32>,
    %c1_i32_193 = arith.constant 1 : i32
    %671 = vector.broadcast %c1_i32_193 : i32 to vector<8x1xi32>
    %672 = arith.subi %12, %671 : vector<8x1xi32>
    %673 = vector.broadcast %656 : i32 to vector<8x1xi32>
    %674 = arith.cmpi eq, %673, %672 : vector<8x1xi32>
    %c0_194 = arith.constant 0 : index
    %c0_195 = arith.constant 0 : index
    %675 = vector.load %arg21[%c0_194, %c0_195] : memref<8x128xf32, #tpu.memory_space<vmem>>, vector<8x128xf32>
    %676 = vector.shape_cast %674 : vector<8x1xi1> to vector<8x1xi1>
    %677 = vector.broadcast %676 : vector<8x1xi1> to vector<8x128xi1>
    %678 = arith.select %677, %662, %675 : vector<8x128xi1>, vector<8x128xf32>
    %c0_196 = arith.constant 0 : index
    %c0_197 = arith.constant 0 : index
    %679 = vector.load %arg21[%c0_196, %c0_197] : memref<8x128xf32, #tpu.memory_space<vmem>>, vector<8x128xf32>
    tpu.vector_store %arg21[%c0_196, %c0_197], %678 {strides = array<i32>} : memref<8x128xf32, #tpu.memory_space<vmem>>, vector<8x128xf32>,
    %c0_198 = arith.constant 0 : index
    %c0_199 = arith.constant 0 : index
    %680 = vector.load %arg22[%c0_198, %c0_199] : memref<8x128xf32, #tpu.memory_space<vmem>>, vector<8x128xf32>
    %681 = vector.shape_cast %674 : vector<8x1xi1> to vector<8x1xi1>
    %682 = vector.broadcast %681 : vector<8x1xi1> to vector<8x128xi1>
    %683 = arith.select %682, %664, %680 : vector<8x128xi1>, vector<8x128xf32>
    %c0_200 = arith.constant 0 : index
    %c0_201 = arith.constant 0 : index
    %684 = vector.load %arg22[%c0_200, %c0_201] : memref<8x128xf32, #tpu.memory_space<vmem>>, vector<8x128xf32>
    tpu.vector_store %arg22[%c0_200, %c0_201], %683 {strides = array<i32>} : memref<8x128xf32, #tpu.memory_space<vmem>>, vector<8x128xf32>,
    %c5_i32 = arith.constant 5 : i32
    %c0_202 = arith.constant 0 : index
    %c0_203 = arith.constant 0 : index
    %685 = vector.load %arg19[%c0_202, %c0_203] : memref<8x128xf32, #tpu.memory_space<vmem>>, vector<8x128xf32>
    %c0_204 = arith.constant 0 : index
    %c0_205 = arith.constant 0 : index
    %686 = vector.load %arg20[%c0_204, %c0_205] : memref<8x128xf32, #tpu.memory_space<vmem>>, vector<8x128xf32>
    %687 = arith.index_cast %c5_i32 : i32 to index
    %c0_206 = arith.constant 0 : index
    %c0_207 = arith.constant 0 : index
    %688 = vector.load %arg3[%687, %c0_206, %c0_207] : memref<8x8x16xf32, #tpu.memory_space<vmem>>, vector<1x8x16xf32>
    %689 = vector.shape_cast %688 : vector<1x8x16xf32> to vector<8x16xf32>
    %cst_208 = arith.constant dense<0.000000e+00> : vector<8x512xf32>
    %690 = tpu.matmul %689, %3, %cst_208 {dimension_numbers = #tpu.dot_dimension_numbers<[1], [0], [0], [1], [0, 0, 1, 1], [], []>} : vector<8x16xf32>, vector<16x512xf32>, vector<8x512xf32> -> vector<8x512xf32>
    %691 = vector.broadcast %5 : vector<1x512xf32> to vector<8x512xf32>
    %692 = arith.addf %690, %691 : vector<8x512xf32>
    %cst_209 = arith.constant dense<0.000000e+00> : vector<8x512xf32>
    %693 = tpu.matmul %685, %4, %cst_209 {dimension_numbers = #tpu.dot_dimension_numbers<[1], [0], [0], [1], [0, 0, 1, 1], [], []>} : vector<8x128xf32>, vector<128x512xf32>, vector<8x512xf32> -> vector<8x512xf32>
    %694 = vector.broadcast %6 : vector<1x512xf32> to vector<8x512xf32>
    %695 = arith.addf %693, %694 : vector<8x512xf32>
    %cst_210 = arith.constant dense<0.000000e+00> : vector<8xf32>
    %696 = vector.multi_reduction <add>, %692, %cst_210 [1] : vector<8x512xf32> to vector<8xf32>
    %697 = vector.shape_cast %696 : vector<8xf32> to vector<8x1xf32>
    %698 = vector.broadcast %cst : f32 to vector<8x1xf32>
    %699 = arith.mulf %697, %698 : vector<8x1xf32>
    %700 = vector.broadcast %699 : vector<8x1xf32> to vector<8x512xf32>
    %701 = arith.subf %692, %700 : vector<8x512xf32>
    %702 = vector.broadcast %34 : vector<1x512xf32> to vector<8x512xf32>
    %703 = arith.mulf %701, %702 : vector<8x512xf32>
    %704 = arith.mulf %703, %703 : vector<8x512xf32>
    %cst_211 = arith.constant dense<0.000000e+00> : vector<8xf32>
    %705 = vector.multi_reduction <add>, %704, %cst_211 [1] : vector<8x512xf32> to vector<8xf32>
    %706 = vector.shape_cast %705 : vector<8xf32> to vector<8x1xf32>
    %707 = vector.broadcast %cst : f32 to vector<8x1xf32>
    %708 = arith.mulf %706, %707 : vector<8x1xf32>
    %cst_212 = arith.constant 9.99999974E-6 : f32
    %709 = vector.broadcast %cst_212 : f32 to vector<8x1xf32>
    %710 = arith.addf %708, %709 : vector<8x1xf32>
    %711 = math.rsqrt %710 : vector<8x1xf32>
    %712 = vector.broadcast %711 : vector<8x1xf32> to vector<8x512xf32>
    %713 = arith.mulf %701, %712 : vector<8x512xf32>
    %714 = vector.broadcast %7 : vector<1x512xf32> to vector<8x512xf32>
    %715 = arith.mulf %713, %714 : vector<8x512xf32>
    %cst_213 = arith.constant dense<0.000000e+00> : vector<8xf32>
    %716 = vector.multi_reduction <add>, %695, %cst_213 [1] : vector<8x512xf32> to vector<8xf32>
    %717 = vector.shape_cast %716 : vector<8xf32> to vector<8x1xf32>
    %718 = vector.broadcast %cst : f32 to vector<8x1xf32>
    %719 = arith.mulf %717, %718 : vector<8x1xf32>
    %720 = vector.broadcast %719 : vector<8x1xf32> to vector<8x512xf32>
    %721 = arith.subf %695, %720 : vector<8x512xf32>
    %722 = vector.broadcast %34 : vector<1x512xf32> to vector<8x512xf32>
    %723 = arith.mulf %721, %722 : vector<8x512xf32>
    %724 = arith.mulf %723, %723 : vector<8x512xf32>
    %cst_214 = arith.constant dense<0.000000e+00> : vector<8xf32>
    %725 = vector.multi_reduction <add>, %724, %cst_214 [1] : vector<8x512xf32> to vector<8xf32>
    %726 = vector.shape_cast %725 : vector<8xf32> to vector<8x1xf32>
    %727 = vector.broadcast %cst : f32 to vector<8x1xf32>
    %728 = arith.mulf %726, %727 : vector<8x1xf32>
    %cst_215 = arith.constant 9.99999974E-6 : f32
    %729 = vector.broadcast %cst_215 : f32 to vector<8x1xf32>
    %730 = arith.addf %728, %729 : vector<8x1xf32>
    %731 = math.rsqrt %730 : vector<8x1xf32>
    %732 = vector.broadcast %731 : vector<8x1xf32> to vector<8x512xf32>
    %733 = arith.mulf %721, %732 : vector<8x512xf32>
    %734 = vector.broadcast %8 : vector<1x512xf32> to vector<8x512xf32>
    %735 = arith.mulf %733, %734 : vector<8x512xf32>
    %736 = arith.addf %715, %735 : vector<8x512xf32>
    %737 = vector.broadcast %9 : vector<1x512xf32> to vector<8x512xf32>
    %738 = arith.addf %736, %737 : vector<8x512xf32>
    %739 = vector.extract_strided_slice %738 {offsets = [0, 0], sizes = [8, 128], strides = [1, 1]} : vector<8x512xf32> to vector<8x128xf32>
    %740 = arith.negf %739 : vector<8x128xf32>
    %741 = math.exp %740 : vector<8x128xf32>
    %cst_216 = arith.constant 1.000000e+00 : f32
    %742 = vector.broadcast %cst_216 : f32 to vector<8x128xf32>
    %743 = arith.addf %742, %741 : vector<8x128xf32>
    %744 = arith.divf %742, %743 : vector<8x128xf32>
    %745 = vector.extract_strided_slice %738 {offsets = [0, 128], sizes = [8, 128], strides = [1, 1]} : vector<8x512xf32> to vector<8x128xf32>
    %746 = arith.negf %745 : vector<8x128xf32>
    %747 = math.exp %746 : vector<8x128xf32>
    %cst_217 = arith.constant 1.000000e+00 : f32
    %748 = vector.broadcast %cst_217 : f32 to vector<8x128xf32>
    %749 = arith.addf %748, %747 : vector<8x128xf32>
    %750 = arith.divf %748, %749 : vector<8x128xf32>
    %751 = vector.extract_strided_slice %738 {offsets = [0, 256], sizes = [8, 128], strides = [1, 1]} : vector<8x512xf32> to vector<8x128xf32>
    %752 = math.tanh %751 : vector<8x128xf32>
    %753 = vector.extract_strided_slice %738 {offsets = [0, 384], sizes = [8, 128], strides = [1, 1]} : vector<8x512xf32> to vector<8x128xf32>
    %754 = arith.negf %753 : vector<8x128xf32>
    %755 = math.exp %754 : vector<8x128xf32>
    %cst_218 = arith.constant 1.000000e+00 : f32
    %756 = vector.broadcast %cst_218 : f32 to vector<8x128xf32>
    %757 = arith.addf %756, %755 : vector<8x128xf32>
    %758 = arith.divf %756, %757 : vector<8x128xf32>
    %759 = arith.mulf %750, %686 : vector<8x128xf32>
    %760 = arith.mulf %744, %752 : vector<8x128xf32>
    %761 = arith.addf %759, %760 : vector<8x128xf32>
    %762 = math.tanh %761 : vector<8x128xf32>
    %cst_219 = arith.constant dense<0.000000e+00> : vector<8xf32>
    %763 = vector.multi_reduction <add>, %762, %cst_219 [1] : vector<8x128xf32> to vector<8xf32>
    %764 = vector.shape_cast %763 : vector<8xf32> to vector<8x1xf32>
    %765 = vector.broadcast %cst_24 : f32 to vector<8x1xf32>
    %766 = arith.mulf %764, %765 : vector<8x1xf32>
    %767 = arith.mulf %762, %762 : vector<8x128xf32>
    %cst_220 = arith.constant dense<0.000000e+00> : vector<8xf32>
    %768 = vector.multi_reduction <add>, %767, %cst_220 [1] : vector<8x128xf32> to vector<8xf32>
    %769 = vector.shape_cast %768 : vector<8xf32> to vector<8x1xf32>
    %770 = vector.broadcast %cst_24 : f32 to vector<8x1xf32>
    %771 = arith.mulf %769, %770 : vector<8x1xf32>
    %772 = arith.mulf %766, %766 : vector<8x1xf32>
    %773 = arith.subf %771, %772 : vector<8x1xf32>
    %774 = vector.broadcast %766 : vector<8x1xf32> to vector<8x128xf32>
    %775 = arith.subf %762, %774 : vector<8x128xf32>
    %cst_221 = arith.constant 9.99999974E-6 : f32
    %776 = vector.broadcast %cst_221 : f32 to vector<8x1xf32>
    %777 = arith.addf %773, %776 : vector<8x1xf32>
    %778 = math.rsqrt %777 : vector<8x1xf32>
    %779 = vector.broadcast %778 : vector<8x1xf32> to vector<8x128xf32>
    %780 = arith.mulf %775, %779 : vector<8x128xf32>
    %781 = vector.broadcast %10 : vector<1x128xf32> to vector<8x128xf32>
    %782 = arith.mulf %780, %781 : vector<8x128xf32>
    %783 = vector.broadcast %11 : vector<1x128xf32> to vector<8x128xf32>
    %784 = arith.addf %782, %783 : vector<8x128xf32>
    %785 = arith.mulf %758, %784 : vector<8x128xf32>
    %786 = arith.addi %13, %c5_i32 : i32
    %787 = vector.broadcast %786 : i32 to vector<8x1xi32>
    %788 = arith.cmpi slt, %787, %12 : vector<8x1xi32>
    %789 = arith.extui %788 : vector<8x1xi1> to vector<8x1xi32>
    %790 = arith.sitofp %789 : vector<8x1xi32> to vector<8x1xf32>
    %791 = vector.broadcast %790 : vector<8x1xf32> to vector<8x128xf32>
    %792 = arith.mulf %785, %791 : vector<8x128xf32>
    %793 = vector.broadcast %790 : vector<8x1xf32> to vector<8x128xf32>
    %794 = arith.mulf %761, %793 : vector<8x128xf32>
    %c0_222 = arith.constant 0 : index
    %c0_223 = arith.constant 0 : index
    %795 = vector.load %arg19[%c0_222, %c0_223] : memref<8x128xf32, #tpu.memory_space<vmem>>, vector<8x128xf32>
    tpu.vector_store %arg19[%c0_222, %c0_223], %792 {strides = array<i32>} : memref<8x128xf32, #tpu.memory_space<vmem>>, vector<8x128xf32>,
    %c0_224 = arith.constant 0 : index
    %c0_225 = arith.constant 0 : index
    %796 = vector.load %arg20[%c0_224, %c0_225] : memref<8x128xf32, #tpu.memory_space<vmem>>, vector<8x128xf32>
    tpu.vector_store %arg20[%c0_224, %c0_225], %794 {strides = array<i32>} : memref<8x128xf32, #tpu.memory_space<vmem>>, vector<8x128xf32>,
    %797 = arith.index_cast %c5_i32 : i32 to index
    %c0_226 = arith.constant 0 : index
    %c0_227 = arith.constant 0 : index
    %798 = vector.load %arg13[%797, %c0_226, %c0_227] : memref<8x8x128xf32, #tpu.memory_space<vmem>>, vector<1x8x128xf32>
    %799 = vector.shape_cast %798 : vector<1x8x128xf32> to vector<8x128xf32>
    %800 = vector.shape_cast %792 : vector<8x128xf32> to vector<1x8x128xf32>
    tpu.vector_store %arg13[%797, %c0_226, %c0_227], %800 {strides = array<i32>} : memref<8x8x128xf32, #tpu.memory_space<vmem>>, vector<1x8x128xf32>,
    %c1_i32_228 = arith.constant 1 : i32
    %801 = vector.broadcast %c1_i32_228 : i32 to vector<8x1xi32>
    %802 = arith.subi %12, %801 : vector<8x1xi32>
    %803 = vector.broadcast %786 : i32 to vector<8x1xi32>
    %804 = arith.cmpi eq, %803, %802 : vector<8x1xi32>
    %c0_229 = arith.constant 0 : index
    %c0_230 = arith.constant 0 : index
    %805 = vector.load %arg21[%c0_229, %c0_230] : memref<8x128xf32, #tpu.memory_space<vmem>>, vector<8x128xf32>
    %806 = vector.shape_cast %804 : vector<8x1xi1> to vector<8x1xi1>
    %807 = vector.broadcast %806 : vector<8x1xi1> to vector<8x128xi1>
    %808 = arith.select %807, %792, %805 : vector<8x128xi1>, vector<8x128xf32>
    %c0_231 = arith.constant 0 : index
    %c0_232 = arith.constant 0 : index
    %809 = vector.load %arg21[%c0_231, %c0_232] : memref<8x128xf32, #tpu.memory_space<vmem>>, vector<8x128xf32>
    tpu.vector_store %arg21[%c0_231, %c0_232], %808 {strides = array<i32>} : memref<8x128xf32, #tpu.memory_space<vmem>>, vector<8x128xf32>,
    %c0_233 = arith.constant 0 : index
    %c0_234 = arith.constant 0 : index
    %810 = vector.load %arg22[%c0_233, %c0_234] : memref<8x128xf32, #tpu.memory_space<vmem>>, vector<8x128xf32>
    %811 = vector.shape_cast %804 : vector<8x1xi1> to vector<8x1xi1>
    %812 = vector.broadcast %811 : vector<8x1xi1> to vector<8x128xi1>
    %813 = arith.select %812, %794, %810 : vector<8x128xi1>, vector<8x128xf32>
    %c0_235 = arith.constant 0 : index
    %c0_236 = arith.constant 0 : index
    %814 = vector.load %arg22[%c0_235, %c0_236] : memref<8x128xf32, #tpu.memory_space<vmem>>, vector<8x128xf32>
    tpu.vector_store %arg22[%c0_235, %c0_236], %813 {strides = array<i32>} : memref<8x128xf32, #tpu.memory_space<vmem>>, vector<8x128xf32>,
    %c6_i32 = arith.constant 6 : i32
    %c0_237 = arith.constant 0 : index
    %c0_238 = arith.constant 0 : index
    %815 = vector.load %arg19[%c0_237, %c0_238] : memref<8x128xf32, #tpu.memory_space<vmem>>, vector<8x128xf32>
    %c0_239 = arith.constant 0 : index
    %c0_240 = arith.constant 0 : index
    %816 = vector.load %arg20[%c0_239, %c0_240] : memref<8x128xf32, #tpu.memory_space<vmem>>, vector<8x128xf32>
    %817 = arith.index_cast %c6_i32 : i32 to index
    %c0_241 = arith.constant 0 : index
    %c0_242 = arith.constant 0 : index
    %818 = vector.load %arg3[%817, %c0_241, %c0_242] : memref<8x8x16xf32, #tpu.memory_space<vmem>>, vector<1x8x16xf32>
    %819 = vector.shape_cast %818 : vector<1x8x16xf32> to vector<8x16xf32>
    %cst_243 = arith.constant dense<0.000000e+00> : vector<8x512xf32>
    %820 = tpu.matmul %819, %3, %cst_243 {dimension_numbers = #tpu.dot_dimension_numbers<[1], [0], [0], [1], [0, 0, 1, 1], [], []>} : vector<8x16xf32>, vector<16x512xf32>, vector<8x512xf32> -> vector<8x512xf32>
    %821 = vector.broadcast %5 : vector<1x512xf32> to vector<8x512xf32>
    %822 = arith.addf %820, %821 : vector<8x512xf32>
    %cst_244 = arith.constant dense<0.000000e+00> : vector<8x512xf32>
    %823 = tpu.matmul %815, %4, %cst_244 {dimension_numbers = #tpu.dot_dimension_numbers<[1], [0], [0], [1], [0, 0, 1, 1], [], []>} : vector<8x128xf32>, vector<128x512xf32>, vector<8x512xf32> -> vector<8x512xf32>
    %824 = vector.broadcast %6 : vector<1x512xf32> to vector<8x512xf32>
    %825 = arith.addf %823, %824 : vector<8x512xf32>
    %cst_245 = arith.constant dense<0.000000e+00> : vector<8xf32>
    %826 = vector.multi_reduction <add>, %822, %cst_245 [1] : vector<8x512xf32> to vector<8xf32>
    %827 = vector.shape_cast %826 : vector<8xf32> to vector<8x1xf32>
    %828 = vector.broadcast %cst : f32 to vector<8x1xf32>
    %829 = arith.mulf %827, %828 : vector<8x1xf32>
    %830 = vector.broadcast %829 : vector<8x1xf32> to vector<8x512xf32>
    %831 = arith.subf %822, %830 : vector<8x512xf32>
    %832 = vector.broadcast %34 : vector<1x512xf32> to vector<8x512xf32>
    %833 = arith.mulf %831, %832 : vector<8x512xf32>
    %834 = arith.mulf %833, %833 : vector<8x512xf32>
    %cst_246 = arith.constant dense<0.000000e+00> : vector<8xf32>
    %835 = vector.multi_reduction <add>, %834, %cst_246 [1] : vector<8x512xf32> to vector<8xf32>
    %836 = vector.shape_cast %835 : vector<8xf32> to vector<8x1xf32>
    %837 = vector.broadcast %cst : f32 to vector<8x1xf32>
    %838 = arith.mulf %836, %837 : vector<8x1xf32>
    %cst_247 = arith.constant 9.99999974E-6 : f32
    %839 = vector.broadcast %cst_247 : f32 to vector<8x1xf32>
    %840 = arith.addf %838, %839 : vector<8x1xf32>
    %841 = math.rsqrt %840 : vector<8x1xf32>
    %842 = vector.broadcast %841 : vector<8x1xf32> to vector<8x512xf32>
    %843 = arith.mulf %831, %842 : vector<8x512xf32>
    %844 = vector.broadcast %7 : vector<1x512xf32> to vector<8x512xf32>
    %845 = arith.mulf %843, %844 : vector<8x512xf32>
    %cst_248 = arith.constant dense<0.000000e+00> : vector<8xf32>
    %846 = vector.multi_reduction <add>, %825, %cst_248 [1] : vector<8x512xf32> to vector<8xf32>
    %847 = vector.shape_cast %846 : vector<8xf32> to vector<8x1xf32>
    %848 = vector.broadcast %cst : f32 to vector<8x1xf32>
    %849 = arith.mulf %847, %848 : vector<8x1xf32>
    %850 = vector.broadcast %849 : vector<8x1xf32> to vector<8x512xf32>
    %851 = arith.subf %825, %850 : vector<8x512xf32>
    %852 = vector.broadcast %34 : vector<1x512xf32> to vector<8x512xf32>
    %853 = arith.mulf %851, %852 : vector<8x512xf32>
    %854 = arith.mulf %853, %853 : vector<8x512xf32>
    %cst_249 = arith.constant dense<0.000000e+00> : vector<8xf32>
    %855 = vector.multi_reduction <add>, %854, %cst_249 [1] : vector<8x512xf32> to vector<8xf32>
    %856 = vector.shape_cast %855 : vector<8xf32> to vector<8x1xf32>
    %857 = vector.broadcast %cst : f32 to vector<8x1xf32>
    %858 = arith.mulf %856, %857 : vector<8x1xf32>
    %cst_250 = arith.constant 9.99999974E-6 : f32
    %859 = vector.broadcast %cst_250 : f32 to vector<8x1xf32>
    %860 = arith.addf %858, %859 : vector<8x1xf32>
    %861 = math.rsqrt %860 : vector<8x1xf32>
    %862 = vector.broadcast %861 : vector<8x1xf32> to vector<8x512xf32>
    %863 = arith.mulf %851, %862 : vector<8x512xf32>
    %864 = vector.broadcast %8 : vector<1x512xf32> to vector<8x512xf32>
    %865 = arith.mulf %863, %864 : vector<8x512xf32>
    %866 = arith.addf %845, %865 : vector<8x512xf32>
    %867 = vector.broadcast %9 : vector<1x512xf32> to vector<8x512xf32>
    %868 = arith.addf %866, %867 : vector<8x512xf32>
    %869 = vector.extract_strided_slice %868 {offsets = [0, 0], sizes = [8, 128], strides = [1, 1]} : vector<8x512xf32> to vector<8x128xf32>
    %870 = arith.negf %869 : vector<8x128xf32>
    %871 = math.exp %870 : vector<8x128xf32>
    %cst_251 = arith.constant 1.000000e+00 : f32
    %872 = vector.broadcast %cst_251 : f32 to vector<8x128xf32>
    %873 = arith.addf %872, %871 : vector<8x128xf32>
    %874 = arith.divf %872, %873 : vector<8x128xf32>
    %875 = vector.extract_strided_slice %868 {offsets = [0, 128], sizes = [8, 128], strides = [1, 1]} : vector<8x512xf32> to vector<8x128xf32>
    %876 = arith.negf %875 : vector<8x128xf32>
    %877 = math.exp %876 : vector<8x128xf32>
    %cst_252 = arith.constant 1.000000e+00 : f32
    %878 = vector.broadcast %cst_252 : f32 to vector<8x128xf32>
    %879 = arith.addf %878, %877 : vector<8x128xf32>
    %880 = arith.divf %878, %879 : vector<8x128xf32>
    %881 = vector.extract_strided_slice %868 {offsets = [0, 256], sizes = [8, 128], strides = [1, 1]} : vector<8x512xf32> to vector<8x128xf32>
    %882 = math.tanh %881 : vector<8x128xf32>
    %883 = vector.extract_strided_slice %868 {offsets = [0, 384], sizes = [8, 128], strides = [1, 1]} : vector<8x512xf32> to vector<8x128xf32>
    %884 = arith.negf %883 : vector<8x128xf32>
    %885 = math.exp %884 : vector<8x128xf32>
    %cst_253 = arith.constant 1.000000e+00 : f32
    %886 = vector.broadcast %cst_253 : f32 to vector<8x128xf32>
    %887 = arith.addf %886, %885 : vector<8x128xf32>
    %888 = arith.divf %886, %887 : vector<8x128xf32>
    %889 = arith.mulf %880, %816 : vector<8x128xf32>
    %890 = arith.mulf %874, %882 : vector<8x128xf32>
    %891 = arith.addf %889, %890 : vector<8x128xf32>
    %892 = math.tanh %891 : vector<8x128xf32>
    %cst_254 = arith.constant dense<0.000000e+00> : vector<8xf32>
    %893 = vector.multi_reduction <add>, %892, %cst_254 [1] : vector<8x128xf32> to vector<8xf32>
    %894 = vector.shape_cast %893 : vector<8xf32> to vector<8x1xf32>
    %895 = vector.broadcast %cst_24 : f32 to vector<8x1xf32>
    %896 = arith.mulf %894, %895 : vector<8x1xf32>
    %897 = arith.mulf %892, %892 : vector<8x128xf32>
    %cst_255 = arith.constant dense<0.000000e+00> : vector<8xf32>
    %898 = vector.multi_reduction <add>, %897, %cst_255 [1] : vector<8x128xf32> to vector<8xf32>
    %899 = vector.shape_cast %898 : vector<8xf32> to vector<8x1xf32>
    %900 = vector.broadcast %cst_24 : f32 to vector<8x1xf32>
    %901 = arith.mulf %899, %900 : vector<8x1xf32>
    %902 = arith.mulf %896, %896 : vector<8x1xf32>
    %903 = arith.subf %901, %902 : vector<8x1xf32>
    %904 = vector.broadcast %896 : vector<8x1xf32> to vector<8x128xf32>
    %905 = arith.subf %892, %904 : vector<8x128xf32>
    %cst_256 = arith.constant 9.99999974E-6 : f32
    %906 = vector.broadcast %cst_256 : f32 to vector<8x1xf32>
    %907 = arith.addf %903, %906 : vector<8x1xf32>
    %908 = math.rsqrt %907 : vector<8x1xf32>
    %909 = vector.broadcast %908 : vector<8x1xf32> to vector<8x128xf32>
    %910 = arith.mulf %905, %909 : vector<8x128xf32>
    %911 = vector.broadcast %10 : vector<1x128xf32> to vector<8x128xf32>
    %912 = arith.mulf %910, %911 : vector<8x128xf32>
    %913 = vector.broadcast %11 : vector<1x128xf32> to vector<8x128xf32>
    %914 = arith.addf %912, %913 : vector<8x128xf32>
    %915 = arith.mulf %888, %914 : vector<8x128xf32>
    %916 = arith.addi %13, %c6_i32 : i32
    %917 = vector.broadcast %916 : i32 to vector<8x1xi32>
    %918 = arith.cmpi slt, %917, %12 : vector<8x1xi32>
    %919 = arith.extui %918 : vector<8x1xi1> to vector<8x1xi32>
    %920 = arith.sitofp %919 : vector<8x1xi32> to vector<8x1xf32>
    %921 = vector.broadcast %920 : vector<8x1xf32> to vector<8x128xf32>
    %922 = arith.mulf %915, %921 : vector<8x128xf32>
    %923 = vector.broadcast %920 : vector<8x1xf32> to vector<8x128xf32>
    %924 = arith.mulf %891, %923 : vector<8x128xf32>
    %c0_257 = arith.constant 0 : index
    %c0_258 = arith.constant 0 : index
    %925 = vector.load %arg19[%c0_257, %c0_258] : memref<8x128xf32, #tpu.memory_space<vmem>>, vector<8x128xf32>
    tpu.vector_store %arg19[%c0_257, %c0_258], %922 {strides = array<i32>} : memref<8x128xf32, #tpu.memory_space<vmem>>, vector<8x128xf32>,
    %c0_259 = arith.constant 0 : index
    %c0_260 = arith.constant 0 : index
    %926 = vector.load %arg20[%c0_259, %c0_260] : memref<8x128xf32, #tpu.memory_space<vmem>>, vector<8x128xf32>
    tpu.vector_store %arg20[%c0_259, %c0_260], %924 {strides = array<i32>} : memref<8x128xf32, #tpu.memory_space<vmem>>, vector<8x128xf32>,
    %927 = arith.index_cast %c6_i32 : i32 to index
    %c0_261 = arith.constant 0 : index
    %c0_262 = arith.constant 0 : index
    %928 = vector.load %arg13[%927, %c0_261, %c0_262] : memref<8x8x128xf32, #tpu.memory_space<vmem>>, vector<1x8x128xf32>
    %929 = vector.shape_cast %928 : vector<1x8x128xf32> to vector<8x128xf32>
    %930 = vector.shape_cast %922 : vector<8x128xf32> to vector<1x8x128xf32>
    tpu.vector_store %arg13[%927, %c0_261, %c0_262], %930 {strides = array<i32>} : memref<8x8x128xf32, #tpu.memory_space<vmem>>, vector<1x8x128xf32>,
    %c1_i32_263 = arith.constant 1 : i32
    %931 = vector.broadcast %c1_i32_263 : i32 to vector<8x1xi32>
    %932 = arith.subi %12, %931 : vector<8x1xi32>
    %933 = vector.broadcast %916 : i32 to vector<8x1xi32>
    %934 = arith.cmpi eq, %933, %932 : vector<8x1xi32>
    %c0_264 = arith.constant 0 : index
    %c0_265 = arith.constant 0 : index
    %935 = vector.load %arg21[%c0_264, %c0_265] : memref<8x128xf32, #tpu.memory_space<vmem>>, vector<8x128xf32>
    %936 = vector.shape_cast %934 : vector<8x1xi1> to vector<8x1xi1>
    %937 = vector.broadcast %936 : vector<8x1xi1> to vector<8x128xi1>
    %938 = arith.select %937, %922, %935 : vector<8x128xi1>, vector<8x128xf32>
    %c0_266 = arith.constant 0 : index
    %c0_267 = arith.constant 0 : index
    %939 = vector.load %arg21[%c0_266, %c0_267] : memref<8x128xf32, #tpu.memory_space<vmem>>, vector<8x128xf32>
    tpu.vector_store %arg21[%c0_266, %c0_267], %938 {strides = array<i32>} : memref<8x128xf32, #tpu.memory_space<vmem>>, vector<8x128xf32>,
    %c0_268 = arith.constant 0 : index
    %c0_269 = arith.constant 0 : index
    %940 = vector.load %arg22[%c0_268, %c0_269] : memref<8x128xf32, #tpu.memory_space<vmem>>, vector<8x128xf32>
    %941 = vector.shape_cast %934 : vector<8x1xi1> to vector<8x1xi1>
    %942 = vector.broadcast %941 : vector<8x1xi1> to vector<8x128xi1>
    %943 = arith.select %942, %924, %940 : vector<8x128xi1>, vector<8x128xf32>
    %c0_270 = arith.constant 0 : index
    %c0_271 = arith.constant 0 : index
    %944 = vector.load %arg22[%c0_270, %c0_271] : memref<8x128xf32, #tpu.memory_space<vmem>>, vector<8x128xf32>
    tpu.vector_store %arg22[%c0_270, %c0_271], %943 {strides = array<i32>} : memref<8x128xf32, #tpu.memory_space<vmem>>, vector<8x128xf32>,
    %c7_i32 = arith.constant 7 : i32
    %c0_272 = arith.constant 0 : index
    %c0_273 = arith.constant 0 : index
    %945 = vector.load %arg19[%c0_272, %c0_273] : memref<8x128xf32, #tpu.memory_space<vmem>>, vector<8x128xf32>
    %c0_274 = arith.constant 0 : index
    %c0_275 = arith.constant 0 : index
    %946 = vector.load %arg20[%c0_274, %c0_275] : memref<8x128xf32, #tpu.memory_space<vmem>>, vector<8x128xf32>
    %947 = arith.index_cast %c7_i32 : i32 to index
    %c0_276 = arith.constant 0 : index
    %c0_277 = arith.constant 0 : index
    %948 = vector.load %arg3[%947, %c0_276, %c0_277] : memref<8x8x16xf32, #tpu.memory_space<vmem>>, vector<1x8x16xf32>
    %949 = vector.shape_cast %948 : vector<1x8x16xf32> to vector<8x16xf32>
    %cst_278 = arith.constant dense<0.000000e+00> : vector<8x512xf32>
    %950 = tpu.matmul %949, %3, %cst_278 {dimension_numbers = #tpu.dot_dimension_numbers<[1], [0], [0], [1], [0, 0, 1, 1], [], []>} : vector<8x16xf32>, vector<16x512xf32>, vector<8x512xf32> -> vector<8x512xf32>
    %951 = vector.broadcast %5 : vector<1x512xf32> to vector<8x512xf32>
    %952 = arith.addf %950, %951 : vector<8x512xf32>
    %cst_279 = arith.constant dense<0.000000e+00> : vector<8x512xf32>
    %953 = tpu.matmul %945, %4, %cst_279 {dimension_numbers = #tpu.dot_dimension_numbers<[1], [0], [0], [1], [0, 0, 1, 1], [], []>} : vector<8x128xf32>, vector<128x512xf32>, vector<8x512xf32> -> vector<8x512xf32>
    %954 = vector.broadcast %6 : vector<1x512xf32> to vector<8x512xf32>
    %955 = arith.addf %953, %954 : vector<8x512xf32>
    %cst_280 = arith.constant dense<0.000000e+00> : vector<8xf32>
    %956 = vector.multi_reduction <add>, %952, %cst_280 [1] : vector<8x512xf32> to vector<8xf32>
    %957 = vector.shape_cast %956 : vector<8xf32> to vector<8x1xf32>
    %958 = vector.broadcast %cst : f32 to vector<8x1xf32>
    %959 = arith.mulf %957, %958 : vector<8x1xf32>
    %960 = vector.broadcast %959 : vector<8x1xf32> to vector<8x512xf32>
    %961 = arith.subf %952, %960 : vector<8x512xf32>
    %962 = vector.broadcast %34 : vector<1x512xf32> to vector<8x512xf32>
    %963 = arith.mulf %961, %962 : vector<8x512xf32>
    %964 = arith.mulf %963, %963 : vector<8x512xf32>
    %cst_281 = arith.constant dense<0.000000e+00> : vector<8xf32>
    %965 = vector.multi_reduction <add>, %964, %cst_281 [1] : vector<8x512xf32> to vector<8xf32>
    %966 = vector.shape_cast %965 : vector<8xf32> to vector<8x1xf32>
    %967 = vector.broadcast %cst : f32 to vector<8x1xf32>
    %968 = arith.mulf %966, %967 : vector<8x1xf32>
    %cst_282 = arith.constant 9.99999974E-6 : f32
    %969 = vector.broadcast %cst_282 : f32 to vector<8x1xf32>
    %970 = arith.addf %968, %969 : vector<8x1xf32>
    %971 = math.rsqrt %970 : vector<8x1xf32>
    %972 = vector.broadcast %971 : vector<8x1xf32> to vector<8x512xf32>
    %973 = arith.mulf %961, %972 : vector<8x512xf32>
    %974 = vector.broadcast %7 : vector<1x512xf32> to vector<8x512xf32>
    %975 = arith.mulf %973, %974 : vector<8x512xf32>
    %cst_283 = arith.constant dense<0.000000e+00> : vector<8xf32>
    %976 = vector.multi_reduction <add>, %955, %cst_283 [1] : vector<8x512xf32> to vector<8xf32>
    %977 = vector.shape_cast %976 : vector<8xf32> to vector<8x1xf32>
    %978 = vector.broadcast %cst : f32 to vector<8x1xf32>
    %979 = arith.mulf %977, %978 : vector<8x1xf32>
    %980 = vector.broadcast %979 : vector<8x1xf32> to vector<8x512xf32>
    %981 = arith.subf %955, %980 : vector<8x512xf32>
    %982 = vector.broadcast %34 : vector<1x512xf32> to vector<8x512xf32>
    %983 = arith.mulf %981, %982 : vector<8x512xf32>
    %984 = arith.mulf %983, %983 : vector<8x512xf32>
    %cst_284 = arith.constant dense<0.000000e+00> : vector<8xf32>
    %985 = vector.multi_reduction <add>, %984, %cst_284 [1] : vector<8x512xf32> to vector<8xf32>
    %986 = vector.shape_cast %985 : vector<8xf32> to vector<8x1xf32>
    %987 = vector.broadcast %cst : f32 to vector<8x1xf32>
    %988 = arith.mulf %986, %987 : vector<8x1xf32>
    %cst_285 = arith.constant 9.99999974E-6 : f32
    %989 = vector.broadcast %cst_285 : f32 to vector<8x1xf32>
    %990 = arith.addf %988, %989 : vector<8x1xf32>
    %991 = math.rsqrt %990 : vector<8x1xf32>
    %992 = vector.broadcast %991 : vector<8x1xf32> to vector<8x512xf32>
    %993 = arith.mulf %981, %992 : vector<8x512xf32>
    %994 = vector.broadcast %8 : vector<1x512xf32> to vector<8x512xf32>
    %995 = arith.mulf %993, %994 : vector<8x512xf32>
    %996 = arith.addf %975, %995 : vector<8x512xf32>
    %997 = vector.broadcast %9 : vector<1x512xf32> to vector<8x512xf32>
    %998 = arith.addf %996, %997 : vector<8x512xf32>
    %999 = vector.extract_strided_slice %998 {offsets = [0, 0], sizes = [8, 128], strides = [1, 1]} : vector<8x512xf32> to vector<8x128xf32>
    %1000 = arith.negf %999 : vector<8x128xf32>
    %1001 = math.exp %1000 : vector<8x128xf32>
    %cst_286 = arith.constant 1.000000e+00 : f32
    %1002 = vector.broadcast %cst_286 : f32 to vector<8x128xf32>
    %1003 = arith.addf %1002, %1001 : vector<8x128xf32>
    %1004 = arith.divf %1002, %1003 : vector<8x128xf32>
    %1005 = vector.extract_strided_slice %998 {offsets = [0, 128], sizes = [8, 128], strides = [1, 1]} : vector<8x512xf32> to vector<8x128xf32>
    %1006 = arith.negf %1005 : vector<8x128xf32>
    %1007 = math.exp %1006 : vector<8x128xf32>
    %cst_287 = arith.constant 1.000000e+00 : f32
    %1008 = vector.broadcast %cst_287 : f32 to vector<8x128xf32>
    %1009 = arith.addf %1008, %1007 : vector<8x128xf32>
    %1010 = arith.divf %1008, %1009 : vector<8x128xf32>
    %1011 = vector.extract_strided_slice %998 {offsets = [0, 256], sizes = [8, 128], strides = [1, 1]} : vector<8x512xf32> to vector<8x128xf32>
    %1012 = math.tanh %1011 : vector<8x128xf32>
    %1013 = vector.extract_strided_slice %998 {offsets = [0, 384], sizes = [8, 128], strides = [1, 1]} : vector<8x512xf32> to vector<8x128xf32>
    %1014 = arith.negf %1013 : vector<8x128xf32>
    %1015 = math.exp %1014 : vector<8x128xf32>
    %cst_288 = arith.constant 1.000000e+00 : f32
    %1016 = vector.broadcast %cst_288 : f32 to vector<8x128xf32>
    %1017 = arith.addf %1016, %1015 : vector<8x128xf32>
    %1018 = arith.divf %1016, %1017 : vector<8x128xf32>
    %1019 = arith.mulf %1010, %946 : vector<8x128xf32>
    %1020 = arith.mulf %1004, %1012 : vector<8x128xf32>
    %1021 = arith.addf %1019, %1020 : vector<8x128xf32>
    %1022 = math.tanh %1021 : vector<8x128xf32>
    %cst_289 = arith.constant dense<0.000000e+00> : vector<8xf32>
    %1023 = vector.multi_reduction <add>, %1022, %cst_289 [1] : vector<8x128xf32> to vector<8xf32>
    %1024 = vector.shape_cast %1023 : vector<8xf32> to vector<8x1xf32>
    %1025 = vector.broadcast %cst_24 : f32 to vector<8x1xf32>
    %1026 = arith.mulf %1024, %1025 : vector<8x1xf32>
    %1027 = arith.mulf %1022, %1022 : vector<8x128xf32>
    %cst_290 = arith.constant dense<0.000000e+00> : vector<8xf32>
    %1028 = vector.multi_reduction <add>, %1027, %cst_290 [1] : vector<8x128xf32> to vector<8xf32>
    %1029 = vector.shape_cast %1028 : vector<8xf32> to vector<8x1xf32>
    %1030 = vector.broadcast %cst_24 : f32 to vector<8x1xf32>
    %1031 = arith.mulf %1029, %1030 : vector<8x1xf32>
    %1032 = arith.mulf %1026, %1026 : vector<8x1xf32>
    %1033 = arith.subf %1031, %1032 : vector<8x1xf32>
    %1034 = vector.broadcast %1026 : vector<8x1xf32> to vector<8x128xf32>
    %1035 = arith.subf %1022, %1034 : vector<8x128xf32>
    %cst_291 = arith.constant 9.99999974E-6 : f32
    %1036 = vector.broadcast %cst_291 : f32 to vector<8x1xf32>
    %1037 = arith.addf %1033, %1036 : vector<8x1xf32>
    %1038 = math.rsqrt %1037 : vector<8x1xf32>
    %1039 = vector.broadcast %1038 : vector<8x1xf32> to vector<8x128xf32>
    %1040 = arith.mulf %1035, %1039 : vector<8x128xf32>
    %1041 = vector.broadcast %10 : vector<1x128xf32> to vector<8x128xf32>
    %1042 = arith.mulf %1040, %1041 : vector<8x128xf32>
    %1043 = vector.broadcast %11 : vector<1x128xf32> to vector<8x128xf32>
    %1044 = arith.addf %1042, %1043 : vector<8x128xf32>
    %1045 = arith.mulf %1018, %1044 : vector<8x128xf32>
    %1046 = arith.addi %13, %c7_i32 : i32
    %1047 = vector.broadcast %1046 : i32 to vector<8x1xi32>
    %1048 = arith.cmpi slt, %1047, %12 : vector<8x1xi32>
    %1049 = arith.extui %1048 : vector<8x1xi1> to vector<8x1xi32>
    %1050 = arith.sitofp %1049 : vector<8x1xi32> to vector<8x1xf32>
    %1051 = vector.broadcast %1050 : vector<8x1xf32> to vector<8x128xf32>
    %1052 = arith.mulf %1045, %1051 : vector<8x128xf32>
    %1053 = vector.broadcast %1050 : vector<8x1xf32> to vector<8x128xf32>
    %1054 = arith.mulf %1021, %1053 : vector<8x128xf32>
    %c0_292 = arith.constant 0 : index
    %c0_293 = arith.constant 0 : index
    %1055 = vector.load %arg19[%c0_292, %c0_293] : memref<8x128xf32, #tpu.memory_space<vmem>>, vector<8x128xf32>
    tpu.vector_store %arg19[%c0_292, %c0_293], %1052 {strides = array<i32>} : memref<8x128xf32, #tpu.memory_space<vmem>>, vector<8x128xf32>,
    %c0_294 = arith.constant 0 : index
    %c0_295 = arith.constant 0 : index
    %1056 = vector.load %arg20[%c0_294, %c0_295] : memref<8x128xf32, #tpu.memory_space<vmem>>, vector<8x128xf32>
    tpu.vector_store %arg20[%c0_294, %c0_295], %1054 {strides = array<i32>} : memref<8x128xf32, #tpu.memory_space<vmem>>, vector<8x128xf32>,
    %1057 = arith.index_cast %c7_i32 : i32 to index
    %c0_296 = arith.constant 0 : index
    %c0_297 = arith.constant 0 : index
    %1058 = vector.load %arg13[%1057, %c0_296, %c0_297] : memref<8x8x128xf32, #tpu.memory_space<vmem>>, vector<1x8x128xf32>
    %1059 = vector.shape_cast %1058 : vector<1x8x128xf32> to vector<8x128xf32>
    %1060 = vector.shape_cast %1052 : vector<8x128xf32> to vector<1x8x128xf32>
    tpu.vector_store %arg13[%1057, %c0_296, %c0_297], %1060 {strides = array<i32>} : memref<8x8x128xf32, #tpu.memory_space<vmem>>, vector<1x8x128xf32>,
    %c1_i32_298 = arith.constant 1 : i32
    %1061 = vector.broadcast %c1_i32_298 : i32 to vector<8x1xi32>
    %1062 = arith.subi %12, %1061 : vector<8x1xi32>
    %1063 = vector.broadcast %1046 : i32 to vector<8x1xi32>
    %1064 = arith.cmpi eq, %1063, %1062 : vector<8x1xi32>
    %c0_299 = arith.constant 0 : index
    %c0_300 = arith.constant 0 : index
    %1065 = vector.load %arg21[%c0_299, %c0_300] : memref<8x128xf32, #tpu.memory_space<vmem>>, vector<8x128xf32>
    %1066 = vector.shape_cast %1064 : vector<8x1xi1> to vector<8x1xi1>
    %1067 = vector.broadcast %1066 : vector<8x1xi1> to vector<8x128xi1>
    %1068 = arith.select %1067, %1052, %1065 : vector<8x128xi1>, vector<8x128xf32>
    %c0_301 = arith.constant 0 : index
    %c0_302 = arith.constant 0 : index
    %1069 = vector.load %arg21[%c0_301, %c0_302] : memref<8x128xf32, #tpu.memory_space<vmem>>, vector<8x128xf32>
    tpu.vector_store %arg21[%c0_301, %c0_302], %1068 {strides = array<i32>} : memref<8x128xf32, #tpu.memory_space<vmem>>, vector<8x128xf32>,
    %c0_303 = arith.constant 0 : index
    %c0_304 = arith.constant 0 : index
    %1070 = vector.load %arg22[%c0_303, %c0_304] : memref<8x128xf32, #tpu.memory_space<vmem>>, vector<8x128xf32>
    %1071 = vector.shape_cast %1064 : vector<8x1xi1> to vector<8x1xi1>
    %1072 = vector.broadcast %1071 : vector<8x1xi1> to vector<8x128xi1>
    %1073 = arith.select %1072, %1054, %1070 : vector<8x128xi1>, vector<8x128xf32>
    %c0_305 = arith.constant 0 : index
    %c0_306 = arith.constant 0 : index
    %1074 = vector.load %arg22[%c0_305, %c0_306] : memref<8x128xf32, #tpu.memory_space<vmem>>, vector<8x128xf32>
    tpu.vector_store %arg22[%c0_305, %c0_306], %1073 {strides = array<i32>} : memref<8x128xf32, #tpu.memory_space<vmem>>, vector<8x128xf32>,
    %c8_i32_307 = arith.constant 8 : i32
    %c0_i32_308 = arith.constant 0 : i32
    %1075 = arith.cmpi eq, %arg1, %c0_i32_308 : i32
    %1076 = arith.extui %1075 : i1 to i32
    %c0_i32_309 = arith.constant 0 : i32
    %1077 = arith.cmpi ne, %1076, %c0_i32_309 : i32
    scf.if %1077 {
      %c0_310 = arith.constant 0 : index
      %c0_311 = arith.constant 0 : index
      %1078 = vector.load %arg21[%c0_310, %c0_311] : memref<8x128xf32, #tpu.memory_space<vmem>>, vector<8x128xf32>
      %c0_312 = arith.constant 0 : index
      %c0_313 = arith.constant 0 : index
      %1079 = vector.load %arg14[%c0_312, %c0_313] : memref<8x128xf32, #tpu.memory_space<vmem>>, vector<8x128xf32>
      tpu.vector_store %arg14[%c0_312, %c0_313], %1078 {strides = array<i32>} : memref<8x128xf32, #tpu.memory_space<vmem>>, vector<8x128xf32>,
      %c0_314 = arith.constant 0 : index
      %c0_315 = arith.constant 0 : index
      %1080 = vector.load %arg22[%c0_314, %c0_315] : memref<8x128xf32, #tpu.memory_space<vmem>>, vector<8x128xf32>
      %c0_316 = arith.constant 0 : index
      %c0_317 = arith.constant 0 : index
      %1081 = vector.load %arg15[%c0_316, %c0_317] : memref<8x128xf32, #tpu.memory_space<vmem>>, vector<8x128xf32>
      tpu.vector_store %arg15[%c0_316, %c0_317], %1080 {strides = array<i32>} : memref<8x128xf32, #tpu.memory_space<vmem>>, vector<8x128xf32>,
    } else {
    }
    return
  }
  func.func @transform_0(%arg0: i32, %arg1: i32) -> (i32, i32) {
    %c0_i32 = arith.constant 0 : i32
    %c0_i32_0 = arith.constant 0 : i32
    return %arg0, %c0_i32 : i32, i32
  }
  func.func @transform_1(%arg0: i32, %arg1: i32) -> (i32, i32, i32) {
    %c0_i32 = arith.constant 0 : i32
    %c0_i32_0 = arith.constant 0 : i32
    return %arg1, %arg0, %c0_i32 : i32, i32, i32
  }
  func.func @transform_4(%arg0: i32, %arg1: i32) -> (i32, i32) {
    %c0_i32 = arith.constant 0 : i32
    %c0_i32_0 = arith.constant 0 : i32
    %c0_i32_1 = arith.constant 0 : i32
    return %c0_i32, %c0_i32_0 : i32, i32
  }
  func.func @transform_5(%arg0: i32, %arg1: i32) -> (i32, i32) {
    %c0_i32 = arith.constant 0 : i32
    %c0_i32_0 = arith.constant 0 : i32
    %c0_i32_1 = arith.constant 0 : i32
    return %c0_i32, %c0_i32_0 : i32, i32
  }
  func.func @transform_6(%arg0: i32, %arg1: i32) -> (i32, i32) {
    %c0_i32 = arith.constant 0 : i32
    %c0_i32_0 = arith.constant 0 : i32
    %c0_i32_1 = arith.constant 0 : i32
    return %c0_i32, %c0_i32_0 : i32, i32
  }
  func.func @transform_7(%arg0: i32, %arg1: i32) -> (i32, i32) {
    %c0_i32 = arith.constant 0 : i32
    %c0_i32_0 = arith.constant 0 : i32
    %c0_i32_1 = arith.constant 0 : i32
    return %c0_i32, %c0_i32_0 : i32, i32
  }
  func.func @transform_8(%arg0: i32, %arg1: i32) -> (i32, i32) {
    %c0_i32 = arith.constant 0 : i32
    %c0_i32_0 = arith.constant 0 : i32
    %c0_i32_1 = arith.constant 0 : i32
    return %c0_i32, %c0_i32_0 : i32, i32
  }
  func.func @transform_9(%arg0: i32, %arg1: i32) -> (i32, i32) {
    %c0_i32 = arith.constant 0 : i32
    %c0_i32_0 = arith.constant 0 : i32
    %c0_i32_1 = arith.constant 0 : i32
    return %c0_i32, %c0_i32_0 : i32, i32
  }
  func.func @transform_10(%arg0: i32, %arg1: i32) -> (i32, i32) {
    %c0_i32 = arith.constant 0 : i32
    %c0_i32_0 = arith.constant 0 : i32
    %c0_i32_1 = arith.constant 0 : i32
    return %c0_i32, %c0_i32_0 : i32, i32
  }
  func.func @transform_11(%arg0: i32, %arg1: i32) -> (i32, i32, i32) {
    %c0_i32 = arith.constant 0 : i32
    %c0_i32_0 = arith.constant 0 : i32
    return %arg1, %arg0, %c0_i32 : i32, i32, i32
  }
  func.func @transform_12(%arg0: i32, %arg1: i32) -> (i32, i32) {
    %c0_i32 = arith.constant 0 : i32
    %c0_i32_0 = arith.constant 0 : i32
    return %arg0, %c0_i32 : i32, i32
  }
  func.func @transform_13(%arg0: i32, %arg1: i32) -> (i32, i32) {
    %c0_i32 = arith.constant 0 : i32
    %c0_i32_0 = arith.constant 0 : i32
    return %arg0, %c0_i32 : i32, i32
  }
}

</mosaic_0001>

<bundles_post_ra>
// kernel: _lambda_.1
= control target key start
LH: loop header
LB: loop body
LE: loop exit
PB: predicated region body
PF: predicated region fallthrough
CT: control target
= control target key end

     0   :  { %s6135_s0 = inlined_call_operand.vmem [shape: s32[8,1], index: 0, kind: input, shape index: {}]   ;;  %s6136_s1 = inlined_call_operand.vmem [shape: f32[8,8,16], index: 1, kind: input, shape index: {}]   ;;  %s6137_s2 = inlined_call_operand.vmem [shape: f32[16,512], index: 2, kind: input, shape index: {}]   ;;  %s6138_s3 = inlined_call_operand.hbm [shape: f32[128,512], index: 3, kind: input, shape index: {}]   ;;  %s6139_s4 = inlined_call_operand.vmem [shape: f32[1,512], index: 4, kind: input, shape index: {}]   ;;  %s6140_s5 = inlined_call_operand.vmem [shape: f32[1,512], index: 5, kind: input, shape index: {}]   ;;  %s6141_s6 = inlined_call_operand.vmem [shape: f32[1,512], index: 6, kind: input, shape index: {}, may-alias: {6,7}]   ;;  %s6142_s7 = inlined_call_operand.vmem [shape: f32[1,512], index: 7, kind: input, shape index: {}, may-alias: {6,7}]   ;;  %s6143_s8 = inlined_call_operand.vmem [shape: f32[1,512], index: 8, kind: input, shape index: {}]   ;;  %s6144_s9 = inlined_call_operand.vmem [shape: f32[1,128], index: 9, kind: input, shape index: {}]   ;;  %s6145_s10 = inlined_call_operand.vmem [shape: f32[1,128], index: 10, kind: input, shape index: {}]   ;;  %s6146_s11 = inlined_call_operand.vmem [shape: f32[8,8,128], index: 11, kind: output, shape index: {0}]   ;;  %s6147_s12 = inlined_call_operand.vmem [shape: f32[8,128], index: 12, kind: output, shape index: {1}]   ;;  %s6148_s13 = inlined_call_operand.vmem [shape: f32[8,128], index: 13, kind: output, shape index: {2}]  }
   0x1   :  { %v73_v0 = vld [vmem:[%s6137_s2] sm:$0xff]  ;;  %v75_v1 = vld [vmem:[%s6137_s2 + $0x8] sm:$0xff]  ;;  %v77_v2 = vld [vmem:[%s6137_s2 + $0x10] sm:$0xff] }
   0x2   :  { %v79_v3 = vld [vmem:[%s6137_s2 + $0x18] sm:$0xff]  ;;  %v81_v4 = vld [vmem:[%s6137_s2 + $0x20] sm:$0xff]  ;;  %v83_v5 = vld [vmem:[%s6137_s2 + $0x28] sm:$0xff] }
   0x3   :  { %v85_v6 = vld [vmem:[%s6137_s2 + $0x30] sm:$0xff]  ;;  %v87_v7 = vld [vmem:[%s6137_s2 + $0x38] sm:$0xff] }
   0x4   :  { %96 = vsyncadd [#allocation4], 1024  ;;  %s4776_s24 = smov [#allocation3]   ;;  %s4750_s28 = scalar_lea.hbm %s6138_s3, 8192 }
   0x5   :  { %s105_s25 = sshll.u32 %s4776_s24, 4  ;;  %p4751_p0 = scmp.ne.s32.totalorder %s6138_s3, %s4750_s28  ;;  %s106_s25 = int_to_ptr.vmem [resolvable:$true] %s105_s25 }
   0x6   :  { %p4754_p1 = scmp.lt.u32.totalorder %s4750_s28, %s6138_s3 }
   0x8   :  { %p4756_p2 = pnand %p4754_p1, %p4751_p0 }
   0xa   :  { %4759 = shalt.err (!%p4756_p2)  }
   0xb   :  { %s4760_s16 = scalar_lea.vmem %s106_s25, 8192  ;;  %p4765_p4 = scmp.lt.s32.totalorder %s106_s25, %s106_s25 }
   0xc   :  { %p4761_p3 = scmp.ne.s32.totalorder %s106_s25, %s4760_s16  ;;  %p4766_p5 = scmp.lt.s32.totalorder %s4760_s16, %s4760_s16 }
   0xe   :  { %p4767_p6 = por %p4766_p5, %p4765_p4 }
  0x10   :  { %p4768_p7 = pnand %p4767_p6, %p4761_p3 }
  0x12   :  { %4771 = shalt.err (!%p4768_p7)  }
  0x13   :  { %108 = dma.hbm_to_vmem [thread:$0]  %s6138_s3, 8192, %s106_s25, [#allocation4 + $0x1] }
  0x14   :  { %4772 = dma.done.wait [#allocation4], 1024 }
  0x15   :  { %4773 = vsyncadd [#allocation4], 4294966272 }
  0x16   :  { %4774 = dma.done.wait [#allocation4 + $0x1], 8192 }
  0x17   :  { %4775 = vsyncadd [#allocation4 + $0x1], 4294959104  ;;  %v4885_v8 = vpack.c.bf16 %v83_v5, %v75_v1  ;;  %v4887_v9 = vpack.c.bf16 %v81_v4, %v73_v0  ;;  %v4889_v10 = vpack.c.bf16 %v87_v7, %v79_v3  ;;  %v6149_v11 = vmov 0.0   ;;  %v269_v13 = vld [vmem:[%s6136_s1] sm:$0xff]  ;;  %v130_v14 = vld [vmem:[#allocation3 + $0x8] sm:$0xff] }
  0x18   :  { %359 = vmatprep.mubr.f32.mxu0 %v6149_v11  ;;  %v4892_v12 = vpack.c.bf16 %v85_v6, %v77_v2  ;;  %430 = vmatprep.mubr.f32.mxu1 %v6149_v11  ;;  %vm291_vm0 = vcmask 130048   ;;  %v134_v15 = vld [vmem:[#allocation3 + $0x28] sm:$0xff]  ;;  %v129_v17 = vld [vmem:[#allocation3] sm:$0xff]  ;;  %v132_v19 = vld [vmem:[#allocation3 + $0x18] sm:$0xff] }
  0x19   :  { %6250 = vst [vmem:[#allocation16_spill] sm:$0xff] %v4885_v8  ;;  %6251 = vst [vmem:[#allocation17_spill] sm:$0xff] %v4887_v9  ;;  %3983 = vmatprep.subr.bf16.mxu0 %v4885_v8  ;;  %3987 = vmatprep.subr.bf16.mxu1 %v4889_v10  ;;  %v4903_v16 = vpack.c.bf16 %v134_v15, %v130_v14  ;;  %v133_v18 = vld [vmem:[#allocation3 + $0x20] sm:$0xff]  ;;  %v136_v21 = vld [vmem:[#allocation3 + $0x38] sm:$0xff] }
  0x1a   :  { %6252 = vst [vmem:[#allocation18_spill] sm:$0xff] %v4889_v10  ;;  %6253 = vst [vmem:[#allocation19_spill] sm:$0xff] %v4892_v12  ;;  %3985 = vmatpush1.bf16.msra.mxu0 %v4887_v9  ;;  %3989 = vmatpush1.bf16.msra.mxu1 %v4892_v12  ;;  %v4906_v20 = vpack.c.bf16 %v133_v18, %v129_v17  ;;  %v131_v22 = vld [vmem:[#allocation3 + $0x10] sm:$0xff]  ;;  %v4911_v24 = vpack.c.bf16 %v136_v21, %v132_v19  ;;  %v138_v26 = vld [vmem:[#allocation3 + $0x48] sm:$0xff] }
  0x1b   :  { %6254 = vst [vmem:[#allocation20_spill] sm:$0xff] %v4903_v16  ;;  %v135_v23 = vld [vmem:[#allocation3 + $0x30] sm:$0xff]  ;;  %3991 = vmatprep.subr.bf16.mxu0 %v4903_v16  ;;  %v142_v27 = vld [vmem:[#allocation3 + $0x68] sm:$0xff]  ;;  %v137_v28 = vld [vmem:[#allocation3 + $0x40] sm:$0xff] }
  0x1c   :  { %6255 = vst [vmem:[#allocation21_spill] sm:$0xff] %v4911_v24  ;;  %v4913_v25 = vpack.c.bf16 %v135_v23, %v131_v22  ;;  %v4916_v29 = vpack.c.bf16 %v142_v27, %v138_v26  ;;  %v141_v30 = vld [vmem:[#allocation3 + $0x60] sm:$0xff]  ;;  %v140_v31 = vld [vmem:[#allocation3 + $0x58] sm:$0xff]  ;;  %4023 = vmatprep.subr.bf16.mxu1 %v4911_v24  ;;  %v139_v35 = vld [vmem:[#allocation3 + $0x50] sm:$0xff] }
  0x1d   :  { %3899 = vmatmul.mubr.msk.f32.vlgmr.msra.gmra.mrb[0].mxu0 %vm291_vm0, %v269_v13  ;;  %3900 = vmatmul.mubr.msk.f32.vlgmr.msra.gmra.mrb[0].mxu1 %vm291_vm0, %v269_v13  ;;  %v144_v32 = vld [vmem:[#allocation3 + $0x78] sm:$0xff]  ;;  %v4919_v33 = vpack.c.bf16 %v141_v30, %v137_v28  ;;  %v143_v36 = vld [vmem:[#allocation3 + $0x70] sm:$0xff]  ;;  %v146_v37 = vld [vmem:[#allocation3 + $0x88] sm:$0xff] }
  0x1e   :  { %522 = vmatprep.mubr.f32.mxu0 %v6149_v11  ;;  %593 = vmatprep.mubr.f32.mxu1 %v6149_v11  ;;  %v4921_v34 = vpack.c.bf16 %v144_v32, %v140_v31  ;;  %v4925_v38 = vpack.c.bf16 %v143_v36, %v139_v35  ;;  %v150_v39 = vld [vmem:[#allocation3 + $0xa8] sm:$0xff]  ;;  %v145_v40 = vld [vmem:[#allocation3 + $0x80] sm:$0xff]  ;;  %v148_v43 = vld [vmem:[#allocation3 + $0x98] sm:$0xff] }
  0x1f   :  { %3993 = vmatpush1.bf16.msra.mxu0 %v4906_v20  ;;  %4025 = vmatpush1.bf16.msra.mxu1 %v4913_v25  ;;  %v149_v41 = vld [vmem:[#allocation3 + $0xa0] sm:$0xff]  ;;  %v4928_v42 = vpack.c.bf16 %v150_v39, %v146_v37  ;;  %v152_v44 = vld [vmem:[#allocation3 + $0xb8] sm:$0xff]  ;;  %v147_v45 = vld [vmem:[#allocation3 + $0x90] sm:$0xff] }
  0x20   :  { %3995 = vmatprep.subr.bf16.mxu0 %v4916_v29  ;;  %4027 = vmatprep.subr.bf16.mxu1 %v4921_v34  ;;  %v4931_v46 = vpack.c.bf16 %v149_v41, %v145_v40  ;;  %v4933_v47 = vpack.c.bf16 %v152_v44, %v148_v43  ;;  %v151_v48 = vld [vmem:[#allocation3 + $0xb0] sm:$0xff]  ;;  %v154_v49 = vld [vmem:[#allocation3 + $0xc8] sm:$0xff]  ;;  %v153_v52 = vld [vmem:[#allocation3 + $0xc0] sm:$0xff] }
  0x21   :  { %v158_v50 = vld [vmem:[#allocation3 + $0xe8] sm:$0xff]  ;;  %v157_v53 = vld [vmem:[#allocation3 + $0xe0] sm:$0xff]  ;;  %v156_v54 = vld [vmem:[#allocation3 + $0xd8] sm:$0xff]  ;;  %v4939_v55 = vpack.c.bf16 %v151_v48, %v147_v45 }
  0x22   :  { %v4936_v51 = vpack.c.bf16 %v158_v50, %v154_v49  ;;  %v160_v56 = vld [vmem:[#allocation3 + $0xf8] sm:$0xff]  ;;  %v155_v57 = vld [vmem:[#allocation3 + $0xd0] sm:$0xff]  ;;  %v162_v60 = vld [vmem:[#allocation3 + $0x108] sm:$0xff]  ;;  %v4945_v62 = vpack.c.bf16 %v157_v53, %v153_v52 }
  0x23   :  { %3997 = vmatpush1.bf16.msra.mxu0 %v4919_v33  ;;  %4029 = vmatpush1.bf16.msra.mxu1 %v4925_v38  ;;  %v4942_v58 = vpack.c.bf16 %v160_v56, %v156_v54  ;;  %v159_v59 = vld [vmem:[#allocation3 + $0xf0] sm:$0xff]  ;;  %v166_v61 = vld [vmem:[#allocation3 + $0x128] sm:$0xff]  ;;  %v164_v63 = vld [vmem:[#allocation3 + $0x118] sm:$0xff] }
  0x24   :  { %3999 = vmatprep.subr.bf16.mxu0 %v4928_v42  ;;  %4031 = vmatprep.subr.bf16.mxu1 %v4933_v47  ;;  %v168_v0 = vld [vmem:[#allocation3 + $0x138] sm:$0xff]  ;;  %v4948_v1 = vpack.c.bf16 %v166_v61, %v162_v60  ;;  %v161_v2 = vld [vmem:[#allocation3 + $0x100] sm:$0xff]  ;;  %v4951_v4 = vpack.c.bf16 %v159_v59, %v155_v57  ;;  %v170_v5 = vld [vmem:[#allocation3 + $0x148] sm:$0xff] }
  0x25   :  { %v165_v3 = vld [vmem:[#allocation3 + $0x120] sm:$0xff]  ;;  %v174_v6 = vld [vmem:[#allocation3 + $0x168] sm:$0xff]  ;;  %v4954_v7 = vpack.c.bf16 %v168_v0, %v164_v63  ;;  %v163_v13 = vld [vmem:[#allocation3 + $0x110] sm:$0xff] }
  0x26   :  { %v167_v14 = vld [vmem:[#allocation3 + $0x130] sm:$0xff]  ;;  %v4957_v15 = vpack.c.bf16 %v165_v3, %v161_v2  ;;  %v172_v17 = vld [vmem:[#allocation3 + $0x158] sm:$0xff]  ;;  %v4960_v19 = vpack.c.bf16 %v174_v6, %v170_v5  ;;  %v169_v21 = vld [vmem:[#allocation3 + $0x140] sm:$0xff]  ;;  %v202_v3 = vlaneseq }
  0x27   :  { %4001 = vmatpush1.bf16.msra.mxu0 %v4931_v46  ;;  %4033 = vmatpush1.bf16.msra.mxu1 %v4939_v55  ;;  %v176_v18 = vld [vmem:[#allocation3 + $0x178] sm:$0xff]  ;;  %v173_v22 = vld [vmem:[#allocation3 + $0x160] sm:$0xff]  ;;  %v4963_v23 = vpack.c.bf16 %v167_v14, %v163_v13  ;;  %v178_v26 = vld [vmem:[#allocation3 + $0x188] sm:$0xff] }
  0x28   :  { %4003 = vmatprep.subr.bf16.mxu0 %v4936_v51  ;;  %4035 = vmatprep.subr.bf16.mxu1 %v4942_v58  ;;  %v182_v27 = vld [vmem:[#allocation3 + $0x1a8] sm:$0xff]  ;;  %v4966_v28 = vpack.c.bf16 %v176_v18, %v172_v17  ;;  %v171_v30 = vld [vmem:[#allocation3 + $0x150] sm:$0xff]  ;;  %v4969_v32 = vpack.c.bf16 %v173_v22, %v169_v21  ;;  %v180_v35 = vld [vmem:[#allocation3 + $0x198] sm:$0xff]  ;;  %v272_v5 = vshrl.u32 %v202_v3, 7 }
  0x29   :  { %v175_v31 = vld [vmem:[#allocation3 + $0x170] sm:$0xff]  ;;  %v184_v36 = vld [vmem:[#allocation3 + $0x1b8] sm:$0xff]  ;;  %v4972_v37 = vpack.c.bf16 %v182_v27, %v178_v26  ;;  %v177_v39 = vld [vmem:[#allocation3 + $0x180] sm:$0xff] }
  0x2a   :  { %v181_v40 = vld [vmem:[#allocation3 + $0x1a0] sm:$0xff]  ;;  %v4975_v41 = vpack.c.bf16 %v175_v31, %v171_v30  ;;  %v186_v43 = vld [vmem:[#allocation3 + $0x1c8] sm:$0xff]  ;;  %v4978_v45 = vpack.c.bf16 %v184_v36, %v180_v35  ;;  %v179_v48 = vld [vmem:[#allocation3 + $0x190] sm:$0xff]  ;;  %v5012_v6 = vsub.s32 0, %v272_v5  ;;  %v5017_v14 = vsub.s32 1, %v272_v5 }
  0x2b   :  { %4005 = vmatpush1.bf16.msra.mxu0 %v4945_v62  ;;  %4037 = vmatpush1.bf16.msra.mxu1 %v4951_v4  ;;  %v190_v44 = vld [vmem:[#allocation3 + $0x1e8] sm:$0xff]  ;;  %v183_v49 = vld [vmem:[#allocation3 + $0x1b0] sm:$0xff]  ;;  %v4981_v50 = vpack.c.bf16 %v181_v40, %v177_v39  ;;  %v188_v52 = vld [vmem:[#allocation3 + $0x1d8] sm:$0xff]  ;;  %v5019_v17 = vsub.s32 2, %v272_v5  ;;  %v5021_v18 = vsub.s32 3, %v272_v5 }
  0x2c   :  { %4007 = vmatprep.subr.bf16.mxu0 %v4948_v1  ;;  %4039 = vmatprep.subr.bf16.mxu1 %v4954_v7  ;;  %v192_v53 = vld [vmem:[#allocation3 + $0x1f8] sm:$0xff]  ;;  %v4984_v54 = vpack.c.bf16 %v190_v44, %v186_v43  ;;  %v185_v56 = vld [vmem:[#allocation3 + $0x1c0] sm:$0xff]  ;;  %v4987_v59 = vpack.c.bf16 %v183_v49, %v179_v48  ;;  %v187_v61 = vld [vmem:[#allocation3 + $0x1d0] sm:$0xff] }
  0x2d   :  { %v189_v57 = vld [vmem:[#allocation3 + $0x1e0] sm:$0xff]  ;;  %v4990_v60 = vpack.c.bf16 %v192_v53, %v188_v52  ;;  %v191_v63 = vld [vmem:[#allocation3 + $0x1f0] sm:$0xff]  ;;  %6260 = vst [vmem:[#allocation26_spill] sm:$0xff] %v5019_v17 }
  0x2e   :  { %6256 = vst [vmem:[#allocation22_spill] sm:$0xff] %v4984_v54  ;;  %v4993_v0 = vpack.c.bf16 %v189_v57, %v185_v56  ;;  %v4997_v2 = vpack.c.bf16 %v191_v63, %v187_v61  ;;  %v193_v13 = vld [vmem:[%s6139_s4] sm:$0xf] }
  0x2f   :  { %4009 = vmatpush1.bf16.msra.mxu0 %v4957_v15  ;;  %4041 = vmatpush1.bf16.msra.mxu1 %v4963_v23  ;;  %6257 = vst [vmem:[#allocation23_spill] sm:$0xff] %v4990_v60  ;;  %v5024_v21 = vrot.slane %v193_v13, %v5012_v6  ;;  %v5027_v22 = vrot.slane %v193_v13, %v5017_v14  ;;  %v194_v53 = vld [vmem:[%s6140_s5] sm:$0xf] }
  0x30   :  { %4011 = vmatprep.subr.bf16.mxu0 %v4960_v19  ;;  %4043 = vmatprep.subr.bf16.mxu1 %v4966_v28  ;;  %6258 = vst [vmem:[#allocation24_spill] sm:$0xff] %v4993_v0  ;;  %6259 = vst [vmem:[#allocation25_spill] sm:$0xff] %v4997_v2  ;;  %v5030_v26 = vrot.slane %v193_v13, %v5019_v17  ;;  %v5033_v31 = vrot.slane %v193_v13, %v5021_v18 }
  0x31   :  { %6261 = vst [vmem:[#allocation27_spill] sm:$0xff] %v5024_v21  ;;  %6262 = vst [vmem:[#allocation28_spill] sm:$0xff] %v5027_v22  ;;  %v5043_v56 = vrot.slane %v194_v53, %v5012_v6  ;;  %v5046_v57 = vrot.slane %v194_v53, %v5017_v14  ;;  %v5049_v61 = vrot.slane %v194_v53, %v5019_v17 }
  0x32   :  { %6263 = vst [vmem:[#allocation29_spill] sm:$0xff] %v5030_v26  ;;  %6264 = vst [vmem:[#allocation30_spill] sm:$0xff] %v5033_v31 }
  0x33   :  { %4013 = vmatpush1.bf16.msra.mxu0 %v4969_v32  ;;  %4045 = vmatpush1.bf16.msra.mxu1 %v4975_v41  ;;  %6265 = vst [vmem:[#allocation31_spill] sm:$0xff] %v5043_v56  ;;  %6266 = vst [vmem:[#allocation32_spill] sm:$0xff] %v5046_v57 }
  0x34   :  { %4015 = vmatprep.subr.bf16.mxu0 %v4972_v37  ;;  %4047 = vmatprep.subr.bf16.mxu1 %v4978_v45  ;;  %6267 = vst [vmem:[#allocation33_spill] sm:$0xff] %v5049_v61 }
  0x37   :  { %4017 = vmatpush1.bf16.msra.mxu0 %v4981_v50  ;;  %4049 = vmatpush1.bf16.msra.mxu1 %v4987_v59 }
  0x38   :  { %4019 = vmatprep.subr.bf16.mxu0 %v4984_v54  ;;  %4051 = vmatprep.subr.bf16.mxu1 %v4990_v60 }
  0x3b   :  { %4021 = vmatpush1.bf16.msra.mxu0 %v4993_v0  ;;  %4053 = vmatpush1.bf16.msra.mxu1 %v4997_v2 }
  0x3c   :  { %4055 = vmatprep.subr.bf16.mxu0 %v4885_v8  ;;  %4059 = vmatprep.subr.bf16.mxu1 %v4889_v10 }
  0x3e   :  { %523 = vmatmul.mubr.f32.vlgmr.msra.gmra.mrb[2].mxu0 %v6149_v11  ;;  %594 = vmatmul.mubr.f32.vlgmr.msra.gmra.mrb[2].mxu1 %v6149_v11 }
  0x3f   :  { %4057 = vmatpush1.bf16.msra.mxu0 %v4887_v9  ;;  %888 = vmatprep.mubr.f32.mxu0 %v6149_v11 }
  0x40   :  { %4063 = vmatprep.subr.bf16.mxu0 %v4903_v16  ;;  %4061 = vmatpush1.bf16.msra.mxu1 %v4892_v12  ;;  %v203_v16 = vand.u32 127, %v202_v3 }
  0x41   :  { %959 = vmatprep.mubr.f32.mxu1 %v6149_v11  ;;  %4095 = vmatprep.subr.bf16.mxu1 %v4911_v24 }
  0x42   :  { %v204_v12 = vadd.s32 128, %v203_v16  ;;  %v205_v9 = vadd.s32 256, %v203_v16  ;;  %vm255_vm1 = vcmp.lt.s32.totalorder %v203_v16, 32 }
  0xf0   :  { %v361_v27 = vpop.f32.mrb[0].mxu0  ;;  %v432_v30 = vpop.f32.mrb[0].mxu1 }
  0xf1   :  { %v362_v35 = vadd.f32 %v361_v27, %v5024_v21  ;;  %v363_v36 = vpop.f32.mrb[1].mxu0  ;;  %v434_v39 = vpop.f32.mrb[1].mxu1  ;;  %v433_v43 = vadd.f32 %v432_v30, %v5030_v26 }
  0xf2   :  { %v364_v40 = vadd.f32 %v363_v36, %v5027_v22  ;;  %v435_v48 = vadd.f32 %v434_v39, %v5033_v31  ;;  %v5054_v36 = vrot.slane %v194_v53, %v5021_v18  ;;  %v225_v31 = vand.u32 127, %v205_v9 }
  0xf4   :  { %v600_v44 = vadd.f32 %v364_v40, %v362_v35  ;;  %6268 = vst [vmem:[#allocation34_spill] sm:$0xff] %v5054_v36  ;;  %vm257_vm3 = vcmp.lt.s32.totalorder %v225_v31, 32 }
  0xf6   :  { %v601_v49 = vadd.f32 %v600_v44, %v433_v43 }
  0xf8   :  { %v602_v52 = vadd.f32 %v601_v49, %v435_v48 }
  0xfa   :  { %603 = vadd.xlane.f32.xlu0 %v602_v52 }
 0x111   :  { %v524_v63 = vpop.f32.mrb[2].mxu0  ;;  %v595_v30 = vpop.f32.mrb[2].mxu1 }
 0x112   :  { %v525_v5 = vadd.f32 %v524_v63, %v5043_v56  ;;  %v526_v13 = vpop.f32.mrb[3].mxu0  ;;  %v596_v39 = vadd.f32 %v595_v30, %v5049_v61  ;;  %v597_v44 = vpop.f32.mrb[3].mxu1  ;;  %v206_v63 = vadd.s32 384, %v203_v16  ;;  %v218_v56 = vand.u32 127, %v204_v12 }
 0x113   :  { %v527_v27 = vadd.f32 %v526_v13, %v5046_v57  ;;  %v598_v11 = vadd.f32 %v597_v44, %v5054_v36  ;;  %v6269_v61 = vmov 0.0  }
 0x114   :  { %v232_v13 = vand.u32 127, %v206_v63  ;;  %vm256_vm2 = vcmp.lt.s32.totalorder %v218_v56, 32  ;;  %v5059_v57 = vsel %vm255_vm1, 1.0, %v6269_v61 }
 0x115   :  { %v655_v49 = vadd.f32 %v527_v27, %v525_v5  ;;  %v5062_v44 = vsel %vm256_vm2, 1.0, %v6269_v61 }
 0x116   :  { %vm258_vm4 = vcmp.lt.s32.totalorder %v232_v13, 32 }
 0x117   :  { %v656_v52 = vadd.f32 %v655_v49, %v596_v39  ;;  %v5076_v31 = vsel %vm258_vm4, 1.0, %v6269_v61 }
 0x119   :  { %v657_v24 = vadd.f32 %v656_v52, %v598_v11 }
 0x11b   :  { %658 = vadd.xlane.f32.xlu0 %v657_v24  ;;  %v5065_v24 = vsel %vm257_vm3, 1.0, %v6269_v61 }
 0x187   :  { %v604_v53 = vpop.xlane.xlu0 %603 }
 0x188   :  { %v605_v30 = vmul.f32 0.0078125, %v604_v53 }
 0x18a   :  { %v5067_v3 = vsub.f32 %v362_v35, %v605_v30  ;;  %v5069_v12 = vsub.f32 %v364_v40, %v605_v30  ;;  %v5071_v9 = vsub.f32 %v433_v43, %v605_v30  ;;  %v5073_v16 = vsub.f32 %v435_v48, %v605_v30 }
 0x18c   :  { %6270 = vst [vmem:[#allocation35_spill] sm:$0xff] %v5071_v9  ;;  %v610_v56 = vmul.f32 %v5059_v57, %v5067_v3  ;;  %v611_v49 = vmul.f32 %v5062_v44, %v5069_v12  ;;  %v612_v52 = vmul.f32 %v5065_v24, %v5071_v9  ;;  %v613_v35 = vmul.f32 %v5076_v31, %v5073_v16 }
 0x18e   :  { %v614_v40 = vmul.f32 %v610_v56, %v610_v56  ;;  %v615_v43 = vmul.f32 %v611_v49, %v611_v49  ;;  %v616_v63 = vmul.f32 %v612_v52, %v612_v52  ;;  %v617_v13 = vmul.f32 %v613_v35, %v613_v35 }
 0x190   :  { %v618_v48 = vadd.f32 %v615_v43, %v614_v40 }
 0x192   :  { %v619_v53 = vadd.f32 %v618_v48, %v616_v63  ;;  %v6178_v63 = vmov 0  }
 0x193   :  { %4561 = vset.pattern.permute.xlu0 %v6178_v63  ;;  %4562 = vset.pattern.permute.xlu1 %v6178_v63 }
 0x194   :  { %v620_v30 = vadd.f32 %v619_v53, %v617_v13 }
 0x196   :  { %621 = vadd.xlane.f32.xlu1 %v620_v30 }
 0x1a8   :  { %v659_v36 = vpop.xlane.xlu0 %658 }
 0x1a9   :  { %v660_v26 = vmul.f32 0.0078125, %v659_v36 }
 0x1ab   :  { %v5086_v22 = vsub.f32 %v525_v5, %v660_v26  ;;  %v5088_v21 = vsub.f32 %v527_v27, %v660_v26  ;;  %v5090_v17 = vsub.f32 %v596_v39, %v660_v26  ;;  %v5092_v9 = vsub.f32 %v598_v11, %v660_v26  ;;  %v3910_v26 = vld [vmem:[%s6136_s1 + $0x8] sm:$0xff] }
 0x1ac   :  { %3911 = vmatmul.mubr.msk.f32.vlgmr.msra.gmra.mrb[4].mxu0 %vm291_vm0, %v3910_v26  ;;  %3912 = vmatmul.mubr.msk.f32.vlgmr.msra.gmra.mrb[4].mxu1 %vm291_vm0, %v3910_v26 }
 0x1ad   :  { %v665_v56 = vmul.f32 %v5059_v57, %v5086_v22  ;;  %v666_v49 = vmul.f32 %v5062_v44, %v5088_v21  ;;  %v667_v52 = vmul.f32 %v5065_v24, %v5090_v17  ;;  %v668_v36 = vmul.f32 %v5076_v31, %v5092_v9  ;;  %4065 = vmatpush1.bf16.msra.mxu0 %v4906_v20 }
 0x1ae   :  { %4097 = vmatpush1.bf16.msra.mxu1 %v4913_v25  ;;  %4067 = vmatprep.subr.bf16.mxu0 %v4916_v29 }
 0x1af   :  { %v669_v5 = vmul.f32 %v665_v56, %v665_v56  ;;  %v670_v35 = vmul.f32 %v666_v49, %v666_v49  ;;  %v671_v27 = vmul.f32 %v667_v52, %v667_v52  ;;  %v672_v39 = vmul.f32 %v668_v36, %v668_v36  ;;  %4099 = vmatprep.subr.bf16.mxu1 %v4921_v34  ;;  %v195_v52 = vld [vmem:[%s6141_s6] sm:$0xf] }
 0x1b0   :  { %1030 = vmatprep.mubr.f32.mxu0 %v6269_v61  ;;  %1101 = vmatprep.mubr.f32.mxu1 %v6269_v61 }
 0x1b1   :  { %v673_v40 = vadd.f32 %v670_v35, %v669_v5  ;;  %4069 = vmatpush1.bf16.msra.mxu0 %v4919_v33  ;;  %v196_v5 = vld [vmem:[%s6142_s7] sm:$0xf]  ;;  %v5150_v35 = vrot.slane %v195_v52, %v5012_v6 }
 0x1b2   :  { %4101 = vmatpush1.bf16.msra.mxu1 %v4925_v38  ;;  %4071 = vmatprep.subr.bf16.mxu0 %v4928_v42  ;;  %v5166_v26 = vrot.slane %v196_v5, %v5017_v14 }
 0x1b3   :  { %v674_v43 = vadd.f32 %v673_v40, %v671_v27  ;;  %4103 = vmatprep.subr.bf16.mxu1 %v4933_v47  ;;  %6271 = vst [vmem:[#allocation36_spill] sm:$0xff] %v5150_v35  ;;  %v5153_v27 = vrot.slane %v196_v5, %v5012_v6  ;;  %v5156_v40 = vrot.slane %v195_v52, %v5017_v14 }
 0x1b4   :  { %6274 = vst [vmem:[#allocation39_spill] sm:$0xff] %v5166_v26 }
 0x1b5   :  { %v675_v11 = vadd.f32 %v674_v43, %v672_v39  ;;  %4073 = vmatpush1.bf16.msra.mxu0 %v4931_v46  ;;  %6272 = vst [vmem:[#allocation37_spill] sm:$0xff] %v5153_v27  ;;  %6273 = vst [vmem:[#allocation38_spill] sm:$0xff] %v5156_v40 }
 0x1b6   :  { %4105 = vmatpush1.bf16.msra.mxu1 %v4939_v55  ;;  %4075 = vmatprep.subr.bf16.mxu0 %v4936_v51 }
 0x1b7   :  { %676 = vadd.xlane.f32.xlu1 %v675_v11  ;;  %4107 = vmatprep.subr.bf16.mxu1 %v4942_v58  ;;  %v5163_v11 = vld [vmem:[%s6143_s8] sm:$0xf] }
 0x1b9   :  { %4077 = vmatpush1.bf16.msra.mxu0 %v4945_v62 }
 0x1ba   :  { %4109 = vmatpush1.bf16.msra.mxu1 %v4951_v4  ;;  %4079 = vmatprep.subr.bf16.mxu0 %v4948_v1 }
 0x1bb   :  { %4111 = vmatprep.subr.bf16.mxu1 %v4954_v7 }
 0x1bd   :  { %4081 = vmatpush1.bf16.msra.mxu0 %v4957_v15 }
 0x1be   :  { %4113 = vmatpush1.bf16.msra.mxu1 %v4963_v23  ;;  %4083 = vmatprep.subr.bf16.mxu0 %v4960_v19 }
 0x1bf   :  { %4115 = vmatprep.subr.bf16.mxu1 %v4966_v28 }
 0x1c1   :  { %4085 = vmatpush1.bf16.msra.mxu0 %v4969_v32 }
 0x1c2   :  { %4117 = vmatpush1.bf16.msra.mxu1 %v4975_v41  ;;  %4087 = vmatprep.subr.bf16.mxu0 %v4972_v37 }
 0x1c3   :  { %4119 = vmatprep.subr.bf16.mxu1 %v4978_v45 }
 0x1c5   :  { %4089 = vmatpush1.bf16.msra.mxu0 %v4981_v50 }
 0x1c6   :  { %4121 = vmatpush1.bf16.msra.mxu1 %v4987_v59  ;;  %4091 = vmatprep.subr.bf16.mxu0 %v4984_v54 }
 0x1c7   :  { %4123 = vmatprep.subr.bf16.mxu1 %v4990_v60  ;;  %v6278_v60 = vld [vmem:[#allocation26_spill] sm:$0xff] }
 0x1c8   :  { %v5193_v54 = vrot.slane %v196_v5, %v6278_v60 }
 0x1c9   :  { %4093 = vmatpush1.bf16.msra.mxu0 %v4993_v0 }
 0x1ca   :  { %4125 = vmatpush1.bf16.msra.mxu1 %v4997_v2  ;;  %4127 = vmatprep.subr.bf16.mxu0 %v4885_v8  ;;  %6279 = vst [vmem:[#allocation26_spill] sm:$0xff] %v5193_v54 }
 0x1cb   :  { %4131 = vmatprep.subr.bf16.mxu1 %v4889_v10 }
 0x223   :  { %v622_v48 = vpop.xlane.xlu1 %621 }
 0x224   :  { %v623_v13 = vmul.f32 0.0078125, %v622_v48 }
 0x226   :  { %v624_v53 = vadd.f32 1e-05, %v623_v13  ;;  %v5170_v13 = vrot.slane %v195_v52, %v5021_v18 }
 0x228   :  { %4563 = vrsqrt.f32 %v624_v53  ;;  %6275 = vst [vmem:[#allocation40_spill] sm:$0xff] %v5170_v13  ;;  %v5173_v53 = vrot.slane %v196_v5, %v5021_v18 }
 0x232   :  { %v4564_v36 = vpop.eup %4563 }
 0x233   :  { %v626_v39 = vmul.f32 %v4564_v36, %v5067_v3  ;;  %v627_v43 = vmul.f32 %v4564_v36, %v5069_v12  ;;  %v629_v48 = vmul.f32 %v4564_v36, %v5073_v16  ;;  %v5184_v16 = vrot.slane %v5163_v11, %v5017_v14 }
 0x235   :  { %6277 = vst [vmem:[#allocation42_spill] sm:$0xff] %v5184_v16  ;;  %v651_v63 = vmul.f32 %v5150_v35, %v626_v39  ;;  %v652_v10 = vmul.f32 %v5156_v40, %v627_v43 }
 0x244   :  { %v677_v30 = vpop.xlane.xlu1 %676 }
 0x245   :  { %v678_v56 = vmul.f32 0.0078125, %v677_v30 }
 0x247   :  { %v679_v49 = vadd.f32 1e-05, %v678_v56 }
 0x249   :  { %4565 = vrsqrt.f32 %v679_v49  ;;  %v5180_v49 = vrot.slane %v5163_v11, %v5012_v6 }
 0x24b   :  { %6276 = vst [vmem:[#allocation41_spill] sm:$0xff] %v5180_v49 }
 0x253   :  { %v4566_v30 = vpop.eup %4565 }
 0x254   :  { %v681_v3 = vmul.f32 %v4566_v30, %v5086_v22  ;;  %v682_v12 = vmul.f32 %v4566_v30, %v5088_v21  ;;  %v684_v56 = vmul.f32 %v4566_v30, %v5092_v9  ;;  %v654_v21 = vmul.f32 %v5170_v13, %v629_v48 }
 0x255   :  { %v683_v14 = vmul.f32 %v4566_v30, %v5090_v17  ;;  %v5206_v17 = vrot.slane %v5163_v11, %v6278_v60 }
 0x256   :  { %v706_v8 = vmul.f32 %v5153_v27, %v681_v3  ;;  %v707_v22 = vmul.f32 %v5166_v26, %v682_v12  ;;  %v709_v9 = vmul.f32 %v5173_v53, %v684_v56  ;;  %v5199_v3 = vrot.slane %v195_v52, %v6278_v60  ;;  %v6281_v12 = vld [vmem:[#allocation35_spill] sm:$0xff] }
 0x257   :  { %v628_v26 = vmul.f32 %v4564_v36, %v6281_v12  ;;  %6282 = vst [vmem:[#allocation35_spill] sm:$0xff] %v5206_v17 }
 0x258   :  { %v710_v2 = vadd.f32 %v706_v8, %v651_v63  ;;  %v711_v0 = vadd.f32 %v707_v22, %v652_v10  ;;  %v713_v6 = vadd.f32 %v709_v9, %v654_v21  ;;  %6280 = vst [vmem:[#allocation43_spill] sm:$0xff] %v5199_v3  ;;  %v708_v8 = vmul.f32 %v5193_v54, %v683_v14  ;;  %v5215_v14 = vld [vmem:[%s6135_s0] sm:$0xff] }
 0x259   :  { %v653_v10 = vmul.f32 %v5199_v3, %v628_v26  ;;  %6284 = vst [vmem:[#allocation45_spill] sm:$0xff] %v5215_v14  ;;  %vm3906_vm5 = vcmp.gt.s32.totalorder %v5215_v14, 0 }
 0x25a   :  { %v735_v39 = vadd.f32 %v5180_v49, %v710_v2  ;;  %v736_v43 = vadd.f32 %v5184_v16, %v711_v0 }
 0x25b   :  { %v712_v2 = vadd.f32 %v708_v8, %v653_v10 }
 0x25c   :  { %v3901_v48 = vmul.f32 -1.442695, %v735_v39  ;;  %v3902_v13 = vmul.f32 -1.442695, %v736_v43  ;;  %v3907_v39 = vsel %vm3906_vm5, 1.0, %v6269_v61 }
 0x25d   :  { %v737_v0 = vadd.f32 %v5206_v17, %v712_v2 }
 0x25e   :  { %4567 = vpow2.f32 %v3901_v48  ;;  %v6285_v48 = vld [vmem:[#allocation27_spill] sm:$0xff] }
 0x25f   :  { %4569 = vpow2.f32 %v3902_v13 }
 0x260   :  { %4571 = vtanh.f32 %v737_v0  ;;  %v6286_v0 = vld [vmem:[#allocation28_spill] sm:$0xff] }
 0x268   :  { %v4568_v63 = vpop.eup %4567 }
 0x269   :  { %v4570_v52 = vpop.eup %4569  ;;  %v742_v5 = vadd.f32 1.0, %v4568_v63 }
 0x26a   :  { %v748_v30 = vadd.f32 1.0, %v4570_v52  ;;  %v4572_v36 = vpop.eup %4571  ;;  %v6287_v52 = vld [vmem:[#allocation29_spill] sm:$0xff] }
 0x26b   :  { %4573 = vrcp.f32 %v742_v5 }
 0x26c   :  { %4575 = vrcp.f32 %v748_v30 }
 0x275   :  { %v4574_v56 = vpop.eup %4573 }
 0x276   :  { %v4576_v22 = vpop.eup %4575  ;;  %v759_v13 = vmul.f32 %v4574_v56, %v4572_v36  ;;  %v6288_v36 = vld [vmem:[#allocation30_spill] sm:$0xff] }
 0x277   :  { %v758_v21 = vmul.f32 0.0, %v4576_v22 }
 0x279   :  { %v5209_v26 = vadd.f32 %v759_v13, %v758_v21  ;;  %v5225_v21 = vrot.slane %v5163_v11, %v5021_v18  ;;  %v5231_v18 = vld [vmem:[%s6144_s9] ss:$0 sm:$0xff] }
 0x27a   :  { %6290 = vst [vmem:[#allocation47_spill] sm:$0xff] %v5231_v18 }
 0x27b   :  { %6283 = vst [vmem:[#allocation44_spill] sm:$0xff] %v5209_v26  ;;  %4577 = vtanh.f32 %v5209_v26  ;;  %6289 = vst [vmem:[#allocation46_spill] sm:$0xff] %v5225_v21 }
 0x27f   :  { %v890_v43 = vpop.f32.mrb[4].mxu0  ;;  %v961_v12 = vpop.f32.mrb[4].mxu1 }
 0x280   :  { %v891_v8 = vadd.f32 %v890_v43, %v6285_v48  ;;  %v892_v10 = vpop.f32.mrb[5].mxu0  ;;  %v963_v2 = vpop.f32.mrb[5].mxu1  ;;  %v962_v5 = vadd.f32 %v961_v12, %v6287_v52 }
 0x281   :  { %v893_v63 = vadd.f32 %v892_v10, %v6286_v0  ;;  %v964_v56 = vadd.f32 %v963_v2, %v6288_v36 }
 0x283   :  { %v1108_v30 = vadd.f32 %v893_v63, %v891_v8 }
 0x285   :  { %v4578_v60 = vpop.eup %4577  ;;  %v1109_v22 = vadd.f32 %v1108_v30, %v962_v5 }
 0x286   :  { %762 = vadd.xlane.f32.xlu0 %v4578_v60  ;;  %v765_v9 = vmul.f32 %v4578_v60, %v4578_v60 }
 0x287   :  { %v1110_v13 = vadd.f32 %v1109_v22, %v964_v56 }
 0x288   :  { %766 = vadd.xlane.f32.xlu1 %v765_v9  ;;  %v738_v9 = vadd.f32 %v5225_v21, %v713_v6  ;;  %v5236_v6 = vld [vmem:[%s6145_s10] ss:$0 sm:$0xff] }
 0x289   :  { %6291 = vst [vmem:[#allocation48_spill] sm:$0xff] %v5236_v6 }
 0x28c   :  { %1111 = vadd.xlane.f32.xlu1 %v1110_v13 }
 0x29c   :  { %796 = vperm.xlu0 %4561, %v3907_v39   ;;  %v3903_v39 = vmul.f32 -1.442695, %v738_v9  ;;  %v6294_v9 = vld [vmem:[#allocation19_spill] sm:$0xff] }
 0x29e   :  { %4579 = vpow2.f32 %v3903_v39  ;;  %v6295_v39 = vld [vmem:[#allocation20_spill] sm:$0xff] }
 0x2a8   :  { %v4580_v26 = vpop.eup %4579 }
 0x2a9   :  { %v755_v2 = vadd.f32 1.0, %v4580_v26 }
 0x313   :  { %v763_v43 = vpop.xlane.xlu0 %762 }
 0x314   :  { %v764_v48 = vmul.f32 0.03125, %v763_v43  ;;  %v6296_v43 = vld [vmem:[#allocation21_spill] sm:$0xff] }
 0x315   :  { %v767_v14 = vpop.xlane.xlu1 %766 }
 0x316   :  { %v769_v10 = vmul.f32 %v764_v48, %v764_v48  ;;  %v768_v0 = vmul.f32 0.03125, %v767_v14  ;;  %v771_v30 = vsub.f32 %v4578_v60, %v764_v48  ;;  %v6293_v48 = vld [vmem:[#allocation17_spill] sm:$0xff] }
 0x318   :  { %v770_v12 = vsub.f32 %v768_v0, %v769_v10 }
 0x319   :  { %v1112_v10 = vpop.xlane.xlu1 %1111 }
 0x31a   :  { %v772_v52 = vadd.f32 1e-05, %v770_v12  ;;  %v1113_v12 = vmul.f32 0.0078125, %v1112_v10 }
 0x31b   :  { %v5240_v13 = vpop.permute.xlu0 %796 }
 0x31c   :  { %4581 = vrsqrt.f32 %v772_v52  ;;  %6292 = vst [vmem:[#allocation49_spill] sm:$0xff] %v5240_v13 }
 0x31d   :  { %4583 = vrcp.f32 %v755_v2  ;;  %v5252_v2 = vsub.f32 %v891_v8, %v1113_v12 }
 0x326   :  { %v4582_v22 = vpop.eup %4581 }
 0x327   :  { %v774_v11 = vmul.f32 %v4582_v22, %v771_v30  ;;  %v4584_v52 = vpop.eup %4583  ;;  %v5254_v30 = vsub.f32 %v893_v63, %v1113_v12  ;;  %v5256_v22 = vsub.f32 %v962_v5, %v1113_v12 }
 0x329   :  { %v781_v14 = vmul.f32 %v5231_v18, %v774_v11  ;;  %6297 = vst [vmem:[#allocation50_spill] sm:$0xff] %v5256_v22  ;;  %v1118_v11 = vmul.f32 %v5059_v57, %v5252_v2  ;;  %v6300_v18 = vld [vmem:[#allocation33_spill] sm:$0xff] }
 0x32b   :  { %v788_v0 = vadd.f32 %v5236_v6, %v781_v14  ;;  %v1119_v14 = vmul.f32 %v5062_v44, %v5254_v30  ;;  %v1122_v10 = vmul.f32 %v1118_v11, %v1118_v11 }
 0x32d   :  { %v789_v26 = vmul.f32 %v4584_v52, %v788_v0  ;;  %v5262_v0 = vsub.f32 %v964_v56, %v1113_v12  ;;  %v1123_v8 = vmul.f32 %v1119_v14, %v1119_v14 }
 0x32f   :  { %v799_v60 = vmul.f32 %v5240_v13, %v789_v26  ;;  %v1121_v6 = vmul.f32 %v5076_v31, %v5262_v0  ;;  %v1126_v36 = vadd.f32 %v1123_v8, %v1122_v10  ;;  %v6301_v13 = vld [vmem:[#allocation34_spill] sm:$0xff] }
 0x331   :  { %803 = vst [vmem:[%s6146_s11] sm:$0xff] %v799_v60  ;;  %1031 = vmatmul.mubr.f32.vlgmr.msra.gmra.mrb[6].mxu0 %v799_v60  ;;  %1102 = vmatmul.mubr.f32.vlgmr.msra.gmra.mrb[6].mxu1 %v799_v60  ;;  %v1120_v60 = vmul.f32 %v5065_v24, %v5256_v22  ;;  %v1125_v11 = vmul.f32 %v1121_v6, %v1121_v6 }
 0x332   :  { %4129 = vmatpush1.bf16.msra.mxu0 %v6293_v48  ;;  %1322 = vmatprep.mubr.f32.mxu0 %v6269_v61 }
 0x333   :  { %4133 = vmatpush1.bf16.msra.mxu1 %v6294_v9  ;;  %1393 = vmatprep.mubr.f32.mxu1 %v6269_v61  ;;  %v6299_v9 = vld [vmem:[#allocation32_spill] sm:$0xff]  ;;  %v1124_v12 = vmul.f32 %v1120_v60, %v1120_v60 }
 0x334   :  { %4135 = vmatprep.subr.bf16.mxu0 %v6295_v39  ;;  %4167 = vmatprep.subr.bf16.mxu1 %v6296_v43  ;;  %v6298_v43 = vld [vmem:[#allocation31_spill] sm:$0xff] }
 0x335   :  { %v1127_v14 = vadd.f32 %v1126_v36, %v1124_v12  ;;  %v6305_v12 = vld [vmem:[#allocation25_spill] sm:$0xff] }
 0x404   :  { %v1032_v52 = vpop.f32.mrb[6].mxu0  ;;  %v1103_v26 = vpop.f32.mrb[6].mxu1 }
 0x405   :  { %v1033_v63 = vadd.f32 %v1032_v52, %v6298_v43  ;;  %v1034_v39 = vpop.f32.mrb[7].mxu0  ;;  %v1105_v5 = vpop.f32.mrb[7].mxu1  ;;  %v1104_v21 = vadd.f32 %v1103_v26, %v6300_v18  ;;  %v1128_v52 = vadd.f32 %v1127_v14, %v1125_v11  ;;  %v6306_v11 = vld [vmem:[#allocation16_spill] sm:$0xff]  ;;  %v6307_v14 = vld [vmem:[#allocation18_spill] sm:$0xff] }
 0x406   :  { %v1035_v48 = vadd.f32 %v1034_v39, %v6299_v9  ;;  %v1106_v17 = vadd.f32 %v1105_v5, %v6301_v13  ;;  %v6303_v5 = vld [vmem:[#allocation23_spill] sm:$0xff] }
 0x408   :  { %v1142_v56 = vadd.f32 %v1035_v48, %v1033_v63 }
 0x40a   :  { %v1143_v3 = vadd.f32 %v1142_v56, %v1104_v21  ;;  %v6304_v56 = vld [vmem:[#allocation24_spill] sm:$0xff] }
 0x40c   :  { %v1144_v54 = vadd.f32 %v1143_v3, %v1106_v17 }
 0x40e   :  { %1145 = vadd.xlane.f32.xlu1 %v1144_v54 }
 0x412   :  { %1129 = vadd.xlane.f32.xlu1 %v1128_v52 }
 0x49b   :  { %v1146_v43 = vpop.xlane.xlu1 %1145 }
 0x49c   :  { %v1147_v22 = vmul.f32 0.0078125, %v1146_v43 }
 0x49e   :  { %v5272_v39 = vsub.f32 %v1033_v63, %v1147_v22  ;;  %v5274_v9 = vsub.f32 %v1035_v48, %v1147_v22  ;;  %v5276_v16 = vsub.f32 %v1104_v21, %v1147_v22  ;;  %v5278_v26 = vsub.f32 %v1106_v17, %v1147_v22  ;;  %v3920_v22 = vld [vmem:[%s6136_s1 + $0x10] sm:$0xff] }
 0x49f   :  { %3921 = vmatmul.mubr.msk.f32.vlgmr.msra.gmra.mrb[8].mxu0 %vm291_vm0, %v3920_v22  ;;  %3922 = vmatmul.mubr.msk.f32.vlgmr.msra.gmra.mrb[8].mxu1 %vm291_vm0, %v3920_v22  ;;  %v6302_v63 = vld [vmem:[#allocation22_spill] sm:$0xff]  ;;  %v1130_v52 = vpop.xlane.xlu1 %1129 }
 0x4a0   :  { %v1152_v60 = vmul.f32 %v5059_v57, %v5272_v39  ;;  %v1153_v3 = vmul.f32 %v5062_v44, %v5274_v9  ;;  %v1154_v54 = vmul.f32 %v5065_v24, %v5276_v16  ;;  %v1155_v36 = vmul.f32 %v5076_v31, %v5278_v26  ;;  %4137 = vmatpush1.bf16.msra.mxu0 %v4906_v20 }
 0x4a1   :  { %4169 = vmatpush1.bf16.msra.mxu1 %v4913_v25  ;;  %4139 = vmatprep.subr.bf16.mxu0 %v4916_v29 }
 0x4a2   :  { %v1156_v6 = vmul.f32 %v1152_v60, %v1152_v60  ;;  %v1157_v43 = vmul.f32 %v1153_v3, %v1153_v3  ;;  %v1158_v48 = vmul.f32 %v1154_v54, %v1154_v54  ;;  %v1159_v21 = vmul.f32 %v1155_v36, %v1155_v36  ;;  %4171 = vmatprep.subr.bf16.mxu1 %v4921_v34 }
 0x4a3   :  { %1464 = vmatprep.mubr.f32.mxu0 %v6269_v61  ;;  %1535 = vmatprep.mubr.f32.mxu1 %v6269_v61  ;;  %v1131_v60 = vmul.f32 0.0078125, %v1130_v52 }
 0x4a4   :  { %v1160_v10 = vadd.f32 %v1157_v43, %v1156_v6  ;;  %4141 = vmatpush1.bf16.msra.mxu0 %v4919_v33 }
 0x4a5   :  { %4173 = vmatpush1.bf16.msra.mxu1 %v4925_v38  ;;  %4143 = vmatprep.subr.bf16.mxu0 %v4928_v42  ;;  %v1132_v3 = vadd.f32 1e-05, %v1131_v60 }
 0x4a6   :  { %v1161_v8 = vadd.f32 %v1160_v10, %v1158_v48  ;;  %4175 = vmatprep.subr.bf16.mxu1 %v4933_v47 }
 0x4a7   :  { %4585 = vrsqrt.f32 %v1132_v3 }
 0x4a8   :  { %v1162_v17 = vadd.f32 %v1161_v8, %v1159_v21  ;;  %4145 = vmatpush1.bf16.msra.mxu0 %v4931_v46 }
 0x4a9   :  { %4177 = vmatpush1.bf16.msra.mxu1 %v4939_v55  ;;  %4147 = vmatprep.subr.bf16.mxu0 %v4936_v51 }
 0x4aa   :  { %1163 = vadd.xlane.f32.xlu1 %v1162_v17  ;;  %4179 = vmatprep.subr.bf16.mxu1 %v4942_v58 }
 0x4ac   :  { %4149 = vmatpush1.bf16.msra.mxu0 %v4945_v62 }
 0x4ad   :  { %4181 = vmatpush1.bf16.msra.mxu1 %v4951_v4  ;;  %4151 = vmatprep.subr.bf16.mxu0 %v4948_v1 }
 0x4ae   :  { %4183 = vmatprep.subr.bf16.mxu1 %v4954_v7 }
 0x4b0   :  { %4153 = vmatpush1.bf16.msra.mxu0 %v4957_v15 }
 0x4b1   :  { %4185 = vmatpush1.bf16.msra.mxu1 %v4963_v23  ;;  %4155 = vmatprep.subr.bf16.mxu0 %v4960_v19  ;;  %v4586_v43 = vpop.eup %4585 }
 0x4b2   :  { %4187 = vmatprep.subr.bf16.mxu1 %v4966_v28  ;;  %v1134_v48 = vmul.f32 %v4586_v43, %v5252_v2  ;;  %v1135_v10 = vmul.f32 %v4586_v43, %v5254_v30  ;;  %v1137_v21 = vmul.f32 %v4586_v43, %v5262_v0  ;;  %v6309_v2 = vld [vmem:[#allocation40_spill] sm:$0xff] }
 0x4b4   :  { %4157 = vmatpush1.bf16.msra.mxu0 %v4969_v32  ;;  %v1138_v60 = vmul.f32 %v1134_v48, %v5150_v35  ;;  %v1139_v3 = vmul.f32 %v1135_v10, %v5156_v40  ;;  %v6311_v48 = vld [vmem:[#allocation50_spill] sm:$0xff] }
 0x4b5   :  { %4189 = vmatpush1.bf16.msra.mxu1 %v4975_v41  ;;  %4159 = vmatprep.subr.bf16.mxu0 %v4972_v37  ;;  %v1136_v35 = vmul.f32 %v4586_v43, %v6311_v48  ;;  %v6319_v48 = vld [vmem:[#allocation45_spill] sm:$0xff] }
 0x4b6   :  { %4191 = vmatprep.subr.bf16.mxu1 %v4978_v45  ;;  %vm3916_vm6 = vcmp.gt.s32.totalorder %v6319_v48, 1 }
 0x4b8   :  { %4161 = vmatpush1.bf16.msra.mxu0 %v4981_v50 }
 0x4b9   :  { %4193 = vmatpush1.bf16.msra.mxu1 %v4987_v59  ;;  %4163 = vmatprep.subr.bf16.mxu0 %v6302_v63 }
 0x4ba   :  { %4195 = vmatprep.subr.bf16.mxu1 %v6303_v5 }
 0x4bc   :  { %4165 = vmatpush1.bf16.msra.mxu0 %v6304_v56 }
 0x4bd   :  { %4197 = vmatpush1.bf16.msra.mxu1 %v6305_v12  ;;  %4199 = vmatprep.subr.bf16.mxu0 %v6306_v11 }
 0x4be   :  { %4203 = vmatprep.subr.bf16.mxu1 %v6307_v14  ;;  %v1141_v14 = vmul.f32 %v1137_v21, %v6309_v2  ;;  %v6313_v21 = vld [vmem:[#allocation43_spill] sm:$0xff] }
 0x537   :  { %v1164_v54 = vpop.xlane.xlu1 %1163 }
 0x538   :  { %v1165_v36 = vmul.f32 0.0078125, %v1164_v54 }
 0x53a   :  { %v1166_v6 = vadd.f32 1e-05, %v1165_v36  ;;  %v6308_v36 = vld [vmem:[#allocation39_spill] sm:$0xff] }
 0x53c   :  { %4587 = vrsqrt.f32 %v1166_v6 }
 0x546   :  { %v4588_v8 = vpop.eup %4587 }
 0x547   :  { %v1168_v17 = vmul.f32 %v4588_v8, %v5272_v39  ;;  %v1169_v22 = vmul.f32 %v4588_v8, %v5274_v9  ;;  %v1171_v52 = vmul.f32 %v4588_v8, %v5278_v26  ;;  %v1170_v39 = vmul.f32 %v4588_v8, %v5276_v16  ;;  %v6310_v26 = vld [vmem:[#allocation42_spill] sm:$0xff] }
 0x549   :  { %v1172_v54 = vmul.f32 %v1168_v17, %v5153_v27  ;;  %v1173_v6 = vmul.f32 %v1169_v22, %v6308_v36  ;;  %v1175_v30 = vmul.f32 %v1171_v52, %v5173_v53  ;;  %v6312_v17 = vld [vmem:[#allocation26_spill] sm:$0xff]  ;;  %v1140_v22 = vmul.f32 %v1136_v35, %v6313_v21 }
 0x54a   :  { %v1174_v27 = vmul.f32 %v1170_v39, %v6312_v17 }
 0x54b   :  { %v1176_v0 = vadd.f32 %v1172_v54, %v1138_v60  ;;  %v1177_v11 = vadd.f32 %v1173_v6, %v1139_v3  ;;  %v1179_v12 = vadd.f32 %v1175_v30, %v1141_v14  ;;  %v6314_v60 = vld [vmem:[#allocation35_spill] sm:$0xff]  ;;  %v6315_v6 = vld [vmem:[#allocation44_spill] sm:$0xff] }
 0x54c   :  { %v1178_v52 = vadd.f32 %v1174_v27, %v1140_v22 }
 0x54d   :  { %v1180_v9 = vadd.f32 %v1176_v0, %v5180_v49  ;;  %v1181_v56 = vadd.f32 %v1177_v11, %v6310_v26 }
 0x54e   :  { %v1182_v3 = vadd.f32 %v1178_v52, %v6314_v60 }
 0x54f   :  { %v3913_v10 = vmul.f32 -1.442695, %v1180_v9  ;;  %v3914_v40 = vmul.f32 -1.442695, %v1181_v56  ;;  %v6316_v56 = vld [vmem:[#allocation49_spill] sm:$0xff] }
 0x550   :  { %v5348_v30 = vmul.f32 %v6316_v56, %v6315_v6 }
 0x551   :  { %4589 = vpow2.f32 %v3913_v10  ;;  %v3917_v10 = vsel %vm3916_vm6, 1.0, %v6269_v61 }
 0x552   :  { %4591 = vpow2.f32 %v3914_v40  ;;  %6317 = vst [vmem:[#allocation33_spill] sm:$0xff] %v5348_v30 }
 0x553   :  { %4593 = vtanh.f32 %v1182_v3  ;;  %v6320_v3 = vld [vmem:[#allocation27_spill] sm:$0xff] }
 0x55b   :  { %v4590_v14 = vpop.eup %4589 }
 0x55c   :  { %v4592_v54 = vpop.eup %4591  ;;  %v1187_v16 = vadd.f32 1.0, %v4590_v14 }
 0x55d   :  { %v1193_v8 = vadd.f32 1.0, %v4592_v54  ;;  %v4594_v11 = vpop.eup %4593 }
 0x55e   :  { %4595 = vrcp.f32 %v1187_v16 }
 0x55f   :  { %4597 = vrcp.f32 %v1193_v8  ;;  %v6321_v8 = vld [vmem:[#allocation28_spill] sm:$0xff] }
 0x568   :  { %v4596_v43 = vpop.eup %4595 }
 0x569   :  { %v4598_v0 = vpop.eup %4597  ;;  %v1204_v40 = vmul.f32 %v4596_v43, %v4594_v11  ;;  %v6322_v43 = vld [vmem:[#allocation29_spill] sm:$0xff] }
 0x56a   :  { %v1203_v35 = vmul.f32 %v4598_v0, %v5348_v30  ;;  %v6323_v0 = vld [vmem:[#allocation30_spill] sm:$0xff] }
 0x56b   :  { %v6324_v30 = vld [vmem:[#allocation46_spill] sm:$0xff] }
 0x56c   :  { %v5351_v27 = vadd.f32 %v1204_v40, %v1203_v35  ;;  %v1183_v48 = vadd.f32 %v1179_v12, %v6324_v30 }
 0x56e   :  { %6318 = vst [vmem:[#allocation34_spill] sm:$0xff] %v5351_v27  ;;  %4599 = vtanh.f32 %v5351_v27  ;;  %v3915_v27 = vmul.f32 -1.442695, %v1183_v48 }
 0x570   :  { %4601 = vpow2.f32 %v3915_v27 }
 0x572   :  { %v1324_v22 = vpop.f32.mrb[8].mxu0  ;;  %v1395_v52 = vpop.f32.mrb[8].mxu1 }
 0x573   :  { %v1325_v14 = vadd.f32 %v1324_v22, %v6320_v3  ;;  %v1326_v54 = vpop.f32.mrb[9].mxu0  ;;  %v1397_v16 = vpop.f32.mrb[9].mxu1  ;;  %v1396_v6 = vadd.f32 %v1395_v52, %v6322_v43 }
 0x574   :  { %v1327_v11 = vadd.f32 %v1326_v54, %v6321_v8  ;;  %v1398_v40 = vadd.f32 %v1397_v16, %v6323_v0  ;;  %v6326_v0 = vld [vmem:[#allocation48_spill] sm:$0xff] }
 0x576   :  { %v1542_v56 = vadd.f32 %v1327_v11, %v1325_v14 }
 0x578   :  { %v4600_v39 = vpop.eup %4599  ;;  %v1543_v35 = vadd.f32 %v1542_v56, %v1396_v6 }
 0x579   :  { %1207 = vadd.xlane.f32.xlu1 %v4600_v39  ;;  %v1210_v9 = vmul.f32 %v4600_v39, %v4600_v39 }
 0x57a   :  { %v4602_v54 = vpop.eup %4601 }
 0x57b   :  { %v1200_v52 = vadd.f32 1.0, %v4602_v54 }
 0x57d   :  { %1211 = vadd.xlane.f32.xlu1 %v1210_v9  ;;  %v1544_v9 = vadd.f32 %v1543_v35, %v1398_v40  ;;  %v6325_v35 = vld [vmem:[#allocation47_spill] sm:$0xff] }
 0x58e   :  { %1230 = vperm.xlu1 %4562, %v3917_v10  }
 0x5b2   :  { %1545 = vadd.xlane.f32.xlu1 %v1544_v9 }
 0x606   :  { %v1208_v10 = vpop.xlane.xlu1 %1207 }
 0x607   :  { %v1209_v60 = vmul.f32 0.03125, %v1208_v10 }
 0x609   :  { %v1214_v22 = vmul.f32 %v1209_v60, %v1209_v60  ;;  %v1216_v43 = vsub.f32 %v4600_v39, %v1209_v60  ;;  %v6331_v60 = vld [vmem:[#allocation21_spill] sm:$0xff] }
 0x60a   :  { %v1212_v21 = vpop.xlane.xlu1 %1211 }
 0x60b   :  { %v1213_v3 = vmul.f32 0.03125, %v1212_v21  ;;  %v6330_v21 = vld [vmem:[#allocation20_spill] sm:$0xff] }
 0x60d   :  { %v1215_v17 = vsub.f32 %v1213_v3, %v1214_v22 }
 0x60e   :  { %v5363_v27 = vpop.permute.xlu1 %1230 }
 0x60f   :  { %v1217_v26 = vadd.f32 1e-05, %v1215_v17  ;;  %6327 = vst [vmem:[#allocation22_spill] sm:$0xff] %v5363_v27  ;;  %v6329_v17 = vld [vmem:[#allocation19_spill] sm:$0xff] }
 0x611   :  { %4603 = vrsqrt.f32 %v1217_v26  ;;  %v6328_v26 = vld [vmem:[#allocation17_spill] sm:$0xff] }
 0x612   :  { %4605 = vrcp.f32 %v1200_v52 }
 0x61b   :  { %v4604_v16 = vpop.eup %4603 }
 0x61c   :  { %v1219_v56 = vmul.f32 %v4604_v16, %v1216_v43  ;;  %v4606_v48 = vpop.eup %4605 }
 0x61e   :  { %v1220_v9 = vmul.f32 %v6325_v35, %v1219_v56 }
 0x620   :  { %v1221_v12 = vadd.f32 %v6326_v0, %v1220_v9 }
 0x622   :  { %v1222_v30 = vmul.f32 %v4606_v48, %v1221_v12 }
 0x624   :  { %v1233_v10 = vmul.f32 %v5363_v27, %v1222_v30 }
 0x626   :  { %3918 = vst [vmem:[%s6146_s11 + $0x8] sm:$0xff] %v1233_v10  ;;  %1465 = vmatmul.mubr.f32.vlgmr.msra.gmra.mrb[10].mxu0 %v1233_v10  ;;  %1536 = vmatmul.mubr.f32.vlgmr.msra.gmra.mrb[10].mxu1 %v1233_v10  ;;  %v6333_v10 = vld [vmem:[#allocation31_spill] sm:$0xff] }
 0x627   :  { %4201 = vmatpush1.bf16.msra.mxu0 %v6328_v26  ;;  %1756 = vmatprep.mubr.f32.mxu0 %v6269_v61 }
 0x628   :  { %4205 = vmatpush1.bf16.msra.mxu1 %v6329_v17  ;;  %1827 = vmatprep.mubr.f32.mxu1 %v6269_v61 }
 0x629   :  { %4207 = vmatprep.subr.bf16.mxu0 %v6330_v21  ;;  %4239 = vmatprep.subr.bf16.mxu1 %v6331_v60  ;;  %v6334_v60 = vld [vmem:[#allocation32_spill] sm:$0xff] }
 0x63f   :  { %v1546_v39 = vpop.xlane.xlu1 %1545 }
 0x640   :  { %v1547_v30 = vmul.f32 0.0078125, %v1546_v39 }
 0x642   :  { %v5375_v3 = vsub.f32 %v1325_v14, %v1547_v30  ;;  %v5377_v43 = vsub.f32 %v1327_v11, %v1547_v30  ;;  %v5379_v22 = vsub.f32 %v1396_v6, %v1547_v30  ;;  %v5385_v16 = vsub.f32 %v1398_v40, %v1547_v30 }
 0x644   :  { %6332 = vst [vmem:[#allocation23_spill] sm:$0xff] %v5379_v22  ;;  %v1552_v54 = vmul.f32 %v5059_v57, %v5375_v3  ;;  %v1553_v52 = vmul.f32 %v5062_v44, %v5377_v43  ;;  %v1554_v12 = vmul.f32 %v5065_v24, %v5379_v22  ;;  %v1555_v17 = vmul.f32 %v5076_v31, %v5385_v16 }
 0x646   :  { %v1556_v48 = vmul.f32 %v1552_v54, %v1552_v54  ;;  %v1557_v14 = vmul.f32 %v1553_v52, %v1553_v52  ;;  %v1558_v30 = vmul.f32 %v1554_v12, %v1554_v12  ;;  %v1559_v54 = vmul.f32 %v1555_v17, %v1555_v17 }
 0x648   :  { %v1560_v0 = vadd.f32 %v1557_v14, %v1556_v48 }
 0x64a   :  { %v1561_v52 = vadd.f32 %v1560_v0, %v1558_v30  ;;  %v6338_v30 = vld [vmem:[#allocation18_spill] sm:$0xff] }
 0x6f9   :  { %v1466_v56 = vpop.f32.mrb[10].mxu0  ;;  %v1537_v9 = vpop.f32.mrb[10].mxu1 }
 0x6fa   :  { %v1467_v11 = vadd.f32 %v1466_v56, %v6333_v10  ;;  %v1468_v39 = vpop.f32.mrb[11].mxu0  ;;  %v1539_v6 = vpop.f32.mrb[11].mxu1  ;;  %v1538_v26 = vadd.f32 %v1537_v9, %v6300_v18  ;;  %v1562_v56 = vadd.f32 %v1561_v52, %v1559_v54 }
 0x6fb   :  { %v1469_v21 = vadd.f32 %v1468_v39, %v6334_v60  ;;  %v1540_v35 = vadd.f32 %v1539_v6, %v6301_v13  ;;  %v6336_v6 = vld [vmem:[#allocation25_spill] sm:$0xff] }
 0x6fd   :  { %v1576_v40 = vadd.f32 %v1469_v21, %v1467_v11 }
 0x6ff   :  { %v1577_v8 = vadd.f32 %v1576_v40, %v1538_v26  ;;  %v6337_v40 = vld [vmem:[#allocation16_spill] sm:$0xff] }
 0x701   :  { %v1578_v27 = vadd.f32 %v1577_v8, %v1540_v35 }
 0x703   :  { %1579 = vadd.xlane.f32.xlu0 %v1578_v27 }
 0x707   :  { %1563 = vadd.xlane.f32.xlu0 %v1562_v56 }
 0x790   :  { %v1580_v10 = vpop.xlane.xlu0 %1579 }
 0x791   :  { %v1581_v22 = vmul.f32 0.0078125, %v1580_v10 }
 0x793   :  { %v5395_v39 = vsub.f32 %v1467_v11, %v1581_v22  ;;  %v5397_v60 = vsub.f32 %v1469_v21, %v1581_v22  ;;  %v5399_v49 = vsub.f32 %v1538_v26, %v1581_v22  ;;  %v5401_v9 = vsub.f32 %v1540_v35, %v1581_v22  ;;  %v3930_v22 = vld [vmem:[%s6136_s1 + $0x18] sm:$0xff]  ;;  %v6335_v11 = vld [vmem:[#allocation24_spill] sm:$0xff] }
 0x794   :  { %3931 = vmatmul.mubr.msk.f32.vlgmr.msra.gmra.mrb[12].mxu0 %vm291_vm0, %v3930_v22  ;;  %3932 = vmatmul.mubr.msk.f32.vlgmr.msra.gmra.mrb[12].mxu1 %vm291_vm0, %v3930_v22  ;;  %v1564_v54 = vpop.xlane.xlu0 %1563  ;;  %v6339_v22 = vld [vmem:[#allocation36_spill] sm:$0xff] }
 0x795   :  { %v1586_v12 = vmul.f32 %v5059_v57, %v5395_v39  ;;  %v1587_v8 = vmul.f32 %v5062_v44, %v5397_v60  ;;  %v1588_v0 = vmul.f32 %v5065_v24, %v5399_v49  ;;  %v1589_v27 = vmul.f32 %v5076_v31, %v5401_v9  ;;  %4209 = vmatpush1.bf16.msra.mxu0 %v4906_v20 }
 0x796   :  { %4241 = vmatpush1.bf16.msra.mxu1 %v4913_v25  ;;  %4211 = vmatprep.subr.bf16.mxu0 %v4916_v29  ;;  %v1565_v52 = vmul.f32 0.0078125, %v1564_v54 }
 0x797   :  { %v1590_v17 = vmul.f32 %v1586_v12, %v1586_v12  ;;  %v1591_v48 = vmul.f32 %v1587_v8, %v1587_v8  ;;  %v1592_v21 = vmul.f32 %v1588_v0, %v1588_v0  ;;  %v1593_v26 = vmul.f32 %v1589_v27, %v1589_v27  ;;  %4243 = vmatprep.subr.bf16.mxu1 %v4921_v34 }
 0x798   :  { %1898 = vmatprep.mubr.f32.mxu0 %v6269_v61  ;;  %1969 = vmatprep.mubr.f32.mxu1 %v6269_v61  ;;  %v1566_v56 = vadd.f32 1e-05, %v1565_v52  ;;  %v6340_v52 = vld [vmem:[#allocation38_spill] sm:$0xff] }
 0x799   :  { %v1594_v14 = vadd.f32 %v1591_v48, %v1590_v17  ;;  %4213 = vmatpush1.bf16.msra.mxu0 %v4919_v33 }
 0x79a   :  { %4245 = vmatpush1.bf16.msra.mxu1 %v4925_v38  ;;  %4215 = vmatprep.subr.bf16.mxu0 %v4928_v42  ;;  %4607 = vrsqrt.f32 %v1566_v56 }
 0x79b   :  { %v1595_v10 = vadd.f32 %v1594_v14, %v1592_v21  ;;  %4247 = vmatprep.subr.bf16.mxu1 %v4933_v47 }
 0x79d   :  { %v1596_v35 = vadd.f32 %v1595_v10, %v1593_v26  ;;  %4217 = vmatpush1.bf16.msra.mxu0 %v4931_v46 }
 0x79e   :  { %4249 = vmatpush1.bf16.msra.mxu1 %v4939_v55  ;;  %4219 = vmatprep.subr.bf16.mxu0 %v4936_v51 }
 0x79f   :  { %1597 = vadd.xlane.f32.xlu1 %v1596_v35  ;;  %4251 = vmatprep.subr.bf16.mxu1 %v4942_v58 }
 0x7a1   :  { %4221 = vmatpush1.bf16.msra.mxu0 %v4945_v62 }
 0x7a2   :  { %4253 = vmatpush1.bf16.msra.mxu1 %v4951_v4  ;;  %4223 = vmatprep.subr.bf16.mxu0 %v4948_v1 }
 0x7a3   :  { %4255 = vmatprep.subr.bf16.mxu1 %v4954_v7 }
 0x7a4   :  { %v4608_v27 = vpop.eup %4607 }
 0x7a5   :  { %4225 = vmatpush1.bf16.msra.mxu0 %v4957_v15  ;;  %v1568_v17 = vmul.f32 %v4608_v27, %v5375_v3  ;;  %v1569_v48 = vmul.f32 %v4608_v27, %v5377_v43  ;;  %v1571_v21 = vmul.f32 %v4608_v27, %v5385_v16 }
 0x7a6   :  { %4257 = vmatpush1.bf16.msra.mxu1 %v4963_v23  ;;  %4227 = vmatprep.subr.bf16.mxu0 %v4960_v19 }
 0x7a7   :  { %4259 = vmatprep.subr.bf16.mxu1 %v4966_v28  ;;  %v1572_v54 = vmul.f32 %v1568_v17, %v6339_v22  ;;  %v1573_v56 = vmul.f32 %v1569_v48, %v6340_v52  ;;  %v1575_v3 = vmul.f32 %v1571_v21, %v6309_v2  ;;  %v6344_v17 = vld [vmem:[#allocation23_spill] sm:$0xff] }
 0x7a8   :  { %v1570_v22 = vmul.f32 %v4608_v27, %v6344_v17  ;;  %v6346_v21 = vld [vmem:[#allocation43_spill] sm:$0xff]  ;;  %v6352_v17 = vld [vmem:[#allocation45_spill] sm:$0xff] }
 0x7a9   :  { %4229 = vmatpush1.bf16.msra.mxu0 %v4969_v32  ;;  %vm3926_vm7 = vcmp.gt.s32.totalorder %v6352_v17, 2  ;;  %v6357_v17 = vld [vmem:[#allocation46_spill] sm:$0xff] }
 0x7aa   :  { %4261 = vmatpush1.bf16.msra.mxu1 %v4975_v41  ;;  %4231 = vmatprep.subr.bf16.mxu0 %v4972_v37 }
 0x7ab   :  { %4263 = vmatprep.subr.bf16.mxu1 %v4978_v45 }
 0x7ad   :  { %4233 = vmatpush1.bf16.msra.mxu0 %v4981_v50 }
 0x7ae   :  { %4265 = vmatpush1.bf16.msra.mxu1 %v4987_v59  ;;  %4235 = vmatprep.subr.bf16.mxu0 %v6302_v63 }
 0x7af   :  { %4267 = vmatprep.subr.bf16.mxu1 %v6303_v5 }
 0x7b1   :  { %4237 = vmatpush1.bf16.msra.mxu0 %v6335_v11 }
 0x7b2   :  { %4269 = vmatpush1.bf16.msra.mxu1 %v6336_v6  ;;  %4271 = vmatprep.subr.bf16.mxu0 %v6337_v40 }
 0x7b3   :  { %4275 = vmatprep.subr.bf16.mxu1 %v6338_v30 }
 0x82c   :  { %v1598_v12 = vpop.xlane.xlu1 %1597 }
 0x82d   :  { %v1599_v8 = vmul.f32 0.0078125, %v1598_v12  ;;  %v6341_v12 = vld [vmem:[#allocation37_spill] sm:$0xff] }
 0x82f   :  { %v1600_v0 = vadd.f32 1e-05, %v1599_v8 }
 0x831   :  { %4609 = vrsqrt.f32 %v1600_v0 }
 0x83b   :  { %v4610_v14 = vpop.eup %4609 }
 0x83c   :  { %v1602_v26 = vmul.f32 %v4610_v14, %v5395_v39  ;;  %v1603_v10 = vmul.f32 %v4610_v14, %v5397_v60  ;;  %v1605_v35 = vmul.f32 %v4610_v14, %v5401_v9  ;;  %v1604_v39 = vmul.f32 %v4610_v14, %v5399_v49  ;;  %v6342_v60 = vld [vmem:[#allocation41_spill] sm:$0xff]  ;;  %v6343_v9 = vld [vmem:[#allocation42_spill] sm:$0xff] }
 0x83e   :  { %v1606_v8 = vmul.f32 %v1602_v26, %v6341_v12  ;;  %v1607_v0 = vmul.f32 %v1603_v10, %v6308_v36  ;;  %v1609_v43 = vmul.f32 %v1605_v35, %v5173_v53  ;;  %v6345_v26 = vld [vmem:[#allocation26_spill] sm:$0xff]  ;;  %v1574_v10 = vmul.f32 %v1570_v22, %v6346_v21 }
 0x83f   :  { %v1608_v12 = vmul.f32 %v1604_v39, %v6345_v26 }
 0x840   :  { %v1610_v16 = vadd.f32 %v1606_v8, %v1572_v54  ;;  %v1611_v30 = vadd.f32 %v1607_v0, %v1573_v56  ;;  %v1613_v40 = vadd.f32 %v1609_v43, %v1575_v3  ;;  %v6347_v54 = vld [vmem:[#allocation35_spill] sm:$0xff] }
 0x841   :  { %v1612_v35 = vadd.f32 %v1608_v12, %v1574_v10 }
 0x842   :  { %v1614_v6 = vadd.f32 %v1610_v16, %v6342_v60  ;;  %v1615_v11 = vadd.f32 %v1611_v30, %v6343_v9 }
 0x843   :  { %v1616_v56 = vadd.f32 %v1612_v35, %v6347_v54 }
 0x844   :  { %v3923_v48 = vmul.f32 -1.442695, %v1614_v6  ;;  %v3924_v52 = vmul.f32 -1.442695, %v1615_v11  ;;  %v6348_v6 = vld [vmem:[#allocation34_spill] sm:$0xff] }
 0x845   :  { %v6349_v11 = vld [vmem:[#allocation22_spill] sm:$0xff] }
 0x846   :  { %4611 = vpow2.f32 %v3923_v48  ;;  %v5471_v3 = vmul.f32 %v6349_v11, %v6348_v6  ;;  %v3927_v48 = vsel %vm3926_vm7, 1.0, %v6269_v61 }
 0x847   :  { %4613 = vpow2.f32 %v3924_v52 }
 0x848   :  { %4615 = vtanh.f32 %v1616_v56  ;;  %6350 = vst [vmem:[#allocation39_spill] sm:$0xff] %v5471_v3  ;;  %v6353_v56 = vld [vmem:[#allocation27_spill] sm:$0xff] }
 0x850   :  { %v4612_v8 = vpop.eup %4611 }
 0x851   :  { %v4614_v0 = vpop.eup %4613  ;;  %v1621_v49 = vadd.f32 1.0, %v4612_v8 }
 0x852   :  { %v1627_v14 = vadd.f32 1.0, %v4614_v0  ;;  %v4616_v30 = vpop.eup %4615 }
 0x853   :  { %4617 = vrcp.f32 %v1621_v49 }
 0x854   :  { %4619 = vrcp.f32 %v1627_v14  ;;  %v6354_v14 = vld [vmem:[#allocation28_spill] sm:$0xff] }
 0x85d   :  { %v4618_v27 = vpop.eup %4617 }
 0x85e   :  { %v4620_v43 = vpop.eup %4619  ;;  %v1638_v52 = vmul.f32 %v4618_v27, %v4616_v30  ;;  %v6355_v27 = vld [vmem:[#allocation29_spill] sm:$0xff] }
 0x85f   :  { %v1637_v22 = vmul.f32 %v4620_v43, %v5471_v3  ;;  %v6356_v43 = vld [vmem:[#allocation30_spill] sm:$0xff]  ;;  %v1617_v3 = vadd.f32 %v1613_v40, %v6357_v17 }
 0x861   :  { %v5474_v12 = vadd.f32 %v1638_v52, %v1637_v22 }
 0x863   :  { %6351 = vst [vmem:[#allocation40_spill] sm:$0xff] %v5474_v12  ;;  %4621 = vtanh.f32 %v5474_v12  ;;  %v3925_v12 = vmul.f32 -1.442695, %v1617_v3 }
 0x865   :  { %4623 = vpow2.f32 %v3925_v12 }
 0x867   :  { %v1758_v10 = vpop.f32.mrb[12].mxu0  ;;  %v1829_v35 = vpop.f32.mrb[12].mxu1 }
 0x868   :  { %v1759_v8 = vadd.f32 %v1758_v10, %v6353_v56  ;;  %v1760_v0 = vpop.f32.mrb[13].mxu0  ;;  %v1831_v49 = vpop.f32.mrb[13].mxu1  ;;  %v1830_v6 = vadd.f32 %v1829_v35, %v6355_v27 }
 0x869   :  { %v1761_v30 = vadd.f32 %v1760_v0, %v6354_v14  ;;  %v1832_v52 = vadd.f32 %v1831_v49, %v6356_v43  ;;  %v6359_v43 = vld [vmem:[#allocation48_spill] sm:$0xff] }
 0x86b   :  { %v1976_v11 = vadd.f32 %v1761_v30, %v1759_v8 }
 0x86d   :  { %v4622_v16 = vpop.eup %4621  ;;  %v1977_v22 = vadd.f32 %v1976_v11, %v1830_v6 }
 0x86e   :  { %1641 = vadd.xlane.f32.xlu0 %v4622_v16  ;;  %v1644_v39 = vmul.f32 %v4622_v16, %v4622_v16 }
 0x86f   :  { %v4624_v0 = vpop.eup %4623 }
 0x870   :  { %1645 = vadd.xlane.f32.xlu1 %v1644_v39  ;;  %v1978_v39 = vadd.f32 %v1977_v22, %v1832_v52  ;;  %v1634_v35 = vadd.f32 1.0, %v4624_v0  ;;  %v6358_v22 = vld [vmem:[#allocation47_spill] sm:$0xff] }
 0x874   :  { %1979 = vadd.xlane.f32.xlu1 %v1978_v39 }
 0x884   :  { %1664 = vperm.xlu0 %4561, %v3927_v48  }
 0x8fb   :  { %v1642_v48 = vpop.xlane.xlu0 %1641 }
 0x8fc   :  { %v1643_v54 = vmul.f32 0.03125, %v1642_v48 }
 0x8fd   :  { %v1646_v21 = vpop.xlane.xlu1 %1645 }
 0x8fe   :  { %v1648_v10 = vmul.f32 %v1643_v54, %v1643_v54  ;;  %v1647_v56 = vmul.f32 0.03125, %v1646_v21  ;;  %v1650_v27 = vsub.f32 %v4622_v16, %v1643_v54  ;;  %v6363_v21 = vld [vmem:[#allocation20_spill] sm:$0xff]  ;;  %v6364_v54 = vld [vmem:[#allocation21_spill] sm:$0xff] }
 0x900   :  { %v1649_v26 = vsub.f32 %v1647_v56, %v1648_v10 }
 0x901   :  { %v1980_v16 = vpop.xlane.xlu1 %1979 }
 0x902   :  { %v1651_v9 = vadd.f32 1e-05, %v1649_v26  ;;  %v6362_v26 = vld [vmem:[#allocation19_spill] sm:$0xff]  ;;  %v1981_v56 = vmul.f32 0.0078125, %v1980_v16 }
 0x903   :  { %v5486_v17 = vpop.permute.xlu0 %1664 }
 0x904   :  { %4625 = vrsqrt.f32 %v1651_v9  ;;  %6360 = vst [vmem:[#allocation50_spill] sm:$0xff] %v5486_v17  ;;  %v6361_v9 = vld [vmem:[#allocation17_spill] sm:$0xff]  ;;  %v5502_v10 = vsub.f32 %v1830_v6, %v1981_v56 }
 0x905   :  { %4627 = vrcp.f32 %v1634_v35 }
 0x906   :  { %6365 = vst [vmem:[#allocation44_spill] sm:$0xff] %v5502_v10 }
 0x90e   :  { %v4626_v49 = vpop.eup %4625 }
 0x90f   :  { %v1653_v11 = vmul.f32 %v4626_v49, %v1650_v27  ;;  %v4628_v3 = vpop.eup %4627  ;;  %v5498_v27 = vsub.f32 %v1759_v8, %v1981_v56  ;;  %v5508_v49 = vsub.f32 %v1832_v52, %v1981_v56 }
 0x911   :  { %v1654_v39 = vmul.f32 %v6358_v22, %v1653_v11  ;;  %v1986_v0 = vmul.f32 %v5059_v57, %v5498_v27 }
 0x913   :  { %v1655_v40 = vadd.f32 %v6359_v43, %v1654_v39  ;;  %v5500_v43 = vsub.f32 %v1761_v30, %v1981_v56  ;;  %v1988_v39 = vmul.f32 %v5065_v24, %v5502_v10 }
 0x915   :  { %v1656_v12 = vmul.f32 %v4628_v3, %v1655_v40  ;;  %v1987_v35 = vmul.f32 %v5062_v44, %v5500_v43  ;;  %v1990_v40 = vmul.f32 %v1986_v0, %v1986_v0  ;;  %v6366_v3 = vld [vmem:[#allocation31_spill] sm:$0xff]  ;;  %v1992_v56 = vmul.f32 %v1988_v39, %v1988_v39 }
 0x917   :  { %v1667_v48 = vmul.f32 %v5486_v17, %v1656_v12  ;;  %v1991_v8 = vmul.f32 %v1987_v35, %v1987_v35 }
 0x919   :  { %3928 = vst [vmem:[%s6146_s11 + $0x10] sm:$0xff] %v1667_v48  ;;  %1899 = vmatmul.mubr.f32.vlgmr.msra.gmra.mrb[14].mxu0 %v1667_v48  ;;  %1970 = vmatmul.mubr.f32.vlgmr.msra.gmra.mrb[14].mxu1 %v1667_v48  ;;  %v6367_v48 = vld [vmem:[#allocation32_spill] sm:$0xff] }
 0x91a   :  { %4273 = vmatpush1.bf16.msra.mxu0 %v6361_v9  ;;  %2190 = vmatprep.mubr.f32.mxu0 %v6269_v61 }
 0x91b   :  { %4277 = vmatpush1.bf16.msra.mxu1 %v6362_v26  ;;  %2261 = vmatprep.mubr.f32.mxu1 %v6269_v61  ;;  %v1994_v26 = vadd.f32 %v1991_v8, %v1990_v40 }
 0x91c   :  { %4279 = vmatprep.subr.bf16.mxu0 %v6363_v21  ;;  %4311 = vmatprep.subr.bf16.mxu1 %v6364_v54  ;;  %v1989_v54 = vmul.f32 %v5076_v31, %v5508_v49 }
 0x91d   :  { %v1995_v35 = vadd.f32 %v1994_v26, %v1992_v56  ;;  %v6371_v56 = vld [vmem:[#allocation18_spill] sm:$0xff] }
 0x91e   :  { %v1993_v0 = vmul.f32 %v1989_v54, %v1989_v54 }
 0x9ec   :  { %v1900_v11 = vpop.f32.mrb[14].mxu0  ;;  %v1971_v22 = vpop.f32.mrb[14].mxu1 }
 0x9ed   :  { %v1901_v30 = vadd.f32 %v1900_v11, %v6366_v3  ;;  %v1902_v12 = vpop.f32.mrb[15].mxu0  ;;  %v1973_v6 = vpop.f32.mrb[15].mxu1  ;;  %v1972_v21 = vadd.f32 %v1971_v22, %v6300_v18  ;;  %v1996_v11 = vadd.f32 %v1995_v35, %v1993_v0 }
 0x9ee   :  { %v1903_v16 = vadd.f32 %v1902_v12, %v6367_v48  ;;  %v1974_v9 = vadd.f32 %v1973_v6, %v6301_v13  ;;  %v6368_v6 = vld [vmem:[#allocation24_spill] sm:$0xff] }
 0x9f0   :  { %v2010_v52 = vadd.f32 %v1903_v16, %v1901_v30 }
 0x9f2   :  { %v2011_v14 = vadd.f32 %v2010_v52, %v1972_v21  ;;  %v6370_v52 = vld [vmem:[#allocation16_spill] sm:$0xff] }
 0x9f4   :  { %v2012_v17 = vadd.f32 %v2011_v14, %v1974_v9 }
 0x9f6   :  { %2013 = vadd.xlane.f32.xlu1 %v2012_v17 }
 0x9fa   :  { %1997 = vadd.xlane.f32.xlu1 %v1996_v11 }
 0xa83   :  { %v2014_v3 = vpop.xlane.xlu1 %2013 }
 0xa84   :  { %v2015_v10 = vmul.f32 0.0078125, %v2014_v3 }
 0xa86   :  { %v5518_v12 = vsub.f32 %v1901_v30, %v2015_v10  ;;  %v5520_v48 = vsub.f32 %v1903_v16, %v2015_v10  ;;  %v5522_v60 = vsub.f32 %v1972_v21, %v2015_v10  ;;  %v5524_v22 = vsub.f32 %v1974_v9, %v2015_v10  ;;  %v3940_v10 = vld [vmem:[%s6136_s1 + $0x20] sm:$0xff]  ;;  %v6369_v16 = vld [vmem:[#allocation25_spill] sm:$0xff] }
 0xa87   :  { %3941 = vmatmul.mubr.msk.f32.vlgmr.msra.gmra.mrb[16].mxu0 %vm291_vm0, %v3940_v10  ;;  %3942 = vmatmul.mubr.msk.f32.vlgmr.msra.gmra.mrb[16].mxu1 %vm291_vm0, %v3940_v10  ;;  %v1998_v0 = vpop.xlane.xlu1 %1997  ;;  %v6372_v10 = vld [vmem:[#allocation36_spill] sm:$0xff] }
 0xa88   :  { %v2020_v39 = vmul.f32 %v5059_v57, %v5518_v12  ;;  %v2021_v14 = vmul.f32 %v5062_v44, %v5520_v48  ;;  %v2022_v17 = vmul.f32 %v5065_v24, %v5522_v60  ;;  %v2023_v26 = vmul.f32 %v5076_v31, %v5524_v22  ;;  %4281 = vmatpush1.bf16.msra.mxu0 %v4906_v20 }
 0xa89   :  { %4313 = vmatpush1.bf16.msra.mxu1 %v4913_v25  ;;  %4283 = vmatprep.subr.bf16.mxu0 %v4916_v29  ;;  %v1999_v35 = vmul.f32 0.0078125, %v1998_v0 }
 0xa8a   :  { %v2024_v54 = vmul.f32 %v2020_v39, %v2020_v39  ;;  %v2025_v40 = vmul.f32 %v2021_v14, %v2021_v14  ;;  %v2026_v8 = vmul.f32 %v2022_v17, %v2022_v17  ;;  %v2027_v21 = vmul.f32 %v2023_v26, %v2023_v26  ;;  %4315 = vmatprep.subr.bf16.mxu1 %v4921_v34 }
 0xa8b   :  { %2332 = vmatprep.mubr.f32.mxu0 %v6269_v61  ;;  %2403 = vmatprep.mubr.f32.mxu1 %v6269_v61  ;;  %v2000_v11 = vadd.f32 1e-05, %v1999_v35  ;;  %v6373_v35 = vld [vmem:[#allocation38_spill] sm:$0xff] }
 0xa8c   :  { %v2028_v3 = vadd.f32 %v2025_v40, %v2024_v54  ;;  %4285 = vmatpush1.bf16.msra.mxu0 %v4919_v33 }
 0xa8d   :  { %4317 = vmatpush1.bf16.msra.mxu1 %v4925_v38  ;;  %4287 = vmatprep.subr.bf16.mxu0 %v4928_v42  ;;  %4629 = vrsqrt.f32 %v2000_v11 }
 0xa8e   :  { %v2029_v30 = vadd.f32 %v2028_v3, %v2026_v8  ;;  %4319 = vmatprep.subr.bf16.mxu1 %v4933_v47 }
 0xa90   :  { %v2030_v9 = vadd.f32 %v2029_v30, %v2027_v21  ;;  %4289 = vmatpush1.bf16.msra.mxu0 %v4931_v46 }
 0xa91   :  { %4321 = vmatpush1.bf16.msra.mxu1 %v4939_v55  ;;  %4291 = vmatprep.subr.bf16.mxu0 %v4936_v51 }
 0xa92   :  { %2031 = vadd.xlane.f32.xlu1 %v2030_v9  ;;  %4323 = vmatprep.subr.bf16.mxu1 %v4942_v58 }
 0xa94   :  { %4293 = vmatpush1.bf16.msra.mxu0 %v4945_v62 }
 0xa95   :  { %4325 = vmatpush1.bf16.msra.mxu1 %v4951_v4  ;;  %4295 = vmatprep.subr.bf16.mxu0 %v4948_v1 }
 0xa96   :  { %4327 = vmatprep.subr.bf16.mxu1 %v4954_v7 }
 0xa97   :  { %v4630_v26 = vpop.eup %4629 }
 0xa98   :  { %4297 = vmatpush1.bf16.msra.mxu0 %v4957_v15  ;;  %v2002_v54 = vmul.f32 %v4630_v26, %v5498_v27  ;;  %v2003_v40 = vmul.f32 %v4630_v26, %v5500_v43  ;;  %v2005_v8 = vmul.f32 %v4630_v26, %v5508_v49 }
 0xa99   :  { %4329 = vmatpush1.bf16.msra.mxu1 %v4963_v23  ;;  %4299 = vmatprep.subr.bf16.mxu0 %v4960_v19 }
 0xa9a   :  { %4331 = vmatprep.subr.bf16.mxu1 %v4966_v28  ;;  %v2006_v0 = vmul.f32 %v2002_v54, %v6372_v10  ;;  %v2007_v11 = vmul.f32 %v2003_v40, %v6373_v35  ;;  %v2009_v27 = vmul.f32 %v2005_v8, %v6309_v2  ;;  %v6377_v54 = vld [vmem:[#allocation44_spill] sm:$0xff]  ;;  %v6379_v8 = vld [vmem:[#allocation43_spill] sm:$0xff] }
 0xa9b   :  { %v2004_v10 = vmul.f32 %v4630_v26, %v6377_v54  ;;  %v5603_v54 = vld [vmem:[%s6135_s0] sm:$0xff] }
 0xa9c   :  { %4301 = vmatpush1.bf16.msra.mxu0 %v4969_v32  ;;  %6385 = vst [vmem:[#allocation34_spill] sm:$0xff] %v5603_v54  ;;  %vm3936_vm8 = vcmp.gt.s32.totalorder %v5603_v54, 3 }
 0xa9d   :  { %4333 = vmatpush1.bf16.msra.mxu1 %v4975_v41  ;;  %4303 = vmatprep.subr.bf16.mxu0 %v4972_v37 }
 0xa9e   :  { %4335 = vmatprep.subr.bf16.mxu1 %v4978_v45 }
 0xaa0   :  { %4305 = vmatpush1.bf16.msra.mxu0 %v4981_v50 }
 0xaa1   :  { %4337 = vmatpush1.bf16.msra.mxu1 %v4987_v59  ;;  %4307 = vmatprep.subr.bf16.mxu0 %v6302_v63 }
 0xaa2   :  { %4339 = vmatprep.subr.bf16.mxu1 %v6303_v5 }
 0xaa4   :  { %4309 = vmatpush1.bf16.msra.mxu0 %v6368_v6 }
 0xaa5   :  { %4341 = vmatpush1.bf16.msra.mxu1 %v6369_v16  ;;  %4343 = vmatprep.subr.bf16.mxu0 %v6370_v52 }
 0xaa6   :  { %4347 = vmatprep.subr.bf16.mxu1 %v6371_v56 }
 0xb1f   :  { %v2032_v39 = vpop.xlane.xlu1 %2031 }
 0xb20   :  { %v2033_v14 = vmul.f32 0.0078125, %v2032_v39  ;;  %v6374_v39 = vld [vmem:[#allocation37_spill] sm:$0xff] }
 0xb22   :  { %v2034_v17 = vadd.f32 1e-05, %v2033_v14 }
 0xb24   :  { %4631 = vrsqrt.f32 %v2034_v17 }
 0xb2e   :  { %v4632_v3 = vpop.eup %4631 }
 0xb2f   :  { %v2036_v21 = vmul.f32 %v4632_v3, %v5518_v12  ;;  %v2037_v30 = vmul.f32 %v4632_v3, %v5520_v48  ;;  %v2039_v9 = vmul.f32 %v4632_v3, %v5524_v22  ;;  %v2038_v12 = vmul.f32 %v4632_v3, %v5522_v60  ;;  %v6375_v48 = vld [vmem:[#allocation41_spill] sm:$0xff]  ;;  %v6376_v22 = vld [vmem:[#allocation42_spill] sm:$0xff] }
 0xb31   :  { %v2040_v14 = vmul.f32 %v2036_v21, %v6374_v39  ;;  %v2041_v17 = vmul.f32 %v2037_v30, %v6308_v36  ;;  %v2043_v43 = vmul.f32 %v2039_v9, %v5173_v53  ;;  %v6378_v21 = vld [vmem:[#allocation26_spill] sm:$0xff]  ;;  %v2008_v30 = vmul.f32 %v2004_v10, %v6379_v8 }
 0xb32   :  { %v2042_v39 = vmul.f32 %v2038_v12, %v6378_v21 }
 0xb33   :  { %v2044_v49 = vadd.f32 %v2040_v14, %v2006_v0  ;;  %v2045_v56 = vadd.f32 %v2041_v17, %v2007_v11  ;;  %v2047_v52 = vadd.f32 %v2043_v43, %v2009_v27  ;;  %v6380_v0 = vld [vmem:[#allocation35_spill] sm:$0xff] }
 0xb34   :  { %v2046_v9 = vadd.f32 %v2042_v39, %v2008_v30 }
 0xb35   :  { %v2048_v16 = vadd.f32 %v2044_v49, %v6375_v48  ;;  %v2049_v6 = vadd.f32 %v2045_v56, %v6376_v22 }
 0xb36   :  { %v2050_v11 = vadd.f32 %v2046_v9, %v6380_v0 }
 0xb37   :  { %v3933_v40 = vmul.f32 -1.442695, %v2048_v16  ;;  %v3934_v35 = vmul.f32 -1.442695, %v2049_v6  ;;  %v6381_v16 = vld [vmem:[#allocation40_spill] sm:$0xff]  ;;  %v6382_v6 = vld [vmem:[#allocation50_spill] sm:$0xff] }
 0xb38   :  { %v5594_v27 = vmul.f32 %v6382_v6, %v6381_v16 }
 0xb39   :  { %4633 = vpow2.f32 %v3933_v40  ;;  %v3937_v40 = vsel %vm3936_vm8, 1.0, %v6269_v61 }
 0xb3a   :  { %4635 = vpow2.f32 %v3934_v35  ;;  %6383 = vst [vmem:[#allocation49_spill] sm:$0xff] %v5594_v27 }
 0xb3b   :  { %4637 = vtanh.f32 %v2050_v11  ;;  %v6386_v11 = vld [vmem:[#allocation27_spill] sm:$0xff] }
 0xb43   :  { %v4634_v14 = vpop.eup %4633 }
 0xb44   :  { %v4636_v17 = vpop.eup %4635  ;;  %v2055_v60 = vadd.f32 1.0, %v4634_v14 }
 0xb45   :  { %v2061_v3 = vadd.f32 1.0, %v4636_v17  ;;  %v4638_v56 = vpop.eup %4637 }
 0xb46   :  { %4639 = vrcp.f32 %v2055_v60 }
 0xb47   :  { %4641 = vrcp.f32 %v2061_v3  ;;  %v6387_v3 = vld [vmem:[#allocation28_spill] sm:$0xff] }
 0xb50   :  { %v4640_v26 = vpop.eup %4639 }
 0xb51   :  { %v4642_v43 = vpop.eup %4641  ;;  %v2072_v35 = vmul.f32 %v4640_v26, %v4638_v56  ;;  %v6388_v26 = vld [vmem:[#allocation29_spill] sm:$0xff] }
 0xb52   :  { %v2071_v10 = vmul.f32 %v4642_v43, %v5594_v27  ;;  %v6389_v43 = vld [vmem:[#allocation30_spill] sm:$0xff] }
 0xb53   :  { %v6390_v27 = vld [vmem:[#allocation46_spill] sm:$0xff] }
 0xb54   :  { %v5597_v39 = vadd.f32 %v2072_v35, %v2071_v10  ;;  %v2051_v54 = vadd.f32 %v2047_v52, %v6390_v27  ;;  %v5615_v52 = vld [vmem:[%s6144_s9] ss:$0 sm:$0xff] }
 0xb55   :  { %6391 = vst [vmem:[#allocation22_spill] sm:$0xff] %v5615_v52 }
 0xb56   :  { %6384 = vst [vmem:[#allocation23_spill] sm:$0xff] %v5597_v39  ;;  %4643 = vtanh.f32 %v5597_v39  ;;  %v3935_v39 = vmul.f32 -1.442695, %v2051_v54 }
 0xb58   :  { %4645 = vpow2.f32 %v3935_v39 }
 0xb5a   :  { %v2192_v30 = vpop.f32.mrb[16].mxu0  ;;  %v2263_v9 = vpop.f32.mrb[16].mxu1 }
 0xb5b   :  { %v2193_v14 = vadd.f32 %v2192_v30, %v6386_v11  ;;  %v2194_v17 = vpop.f32.mrb[17].mxu0  ;;  %v2265_v60 = vpop.f32.mrb[17].mxu1  ;;  %v2264_v16 = vadd.f32 %v2263_v9, %v6388_v26 }
 0xb5c   :  { %v2195_v56 = vadd.f32 %v2194_v17, %v6387_v3  ;;  %v2266_v35 = vadd.f32 %v2265_v60, %v6389_v43 }
 0xb5e   :  { %v2410_v6 = vadd.f32 %v2195_v56, %v2193_v14 }
 0xb60   :  { %v4644_v49 = vpop.eup %4643  ;;  %v2411_v10 = vadd.f32 %v2410_v6, %v2264_v16 }
 0xb61   :  { %2075 = vadd.xlane.f32.xlu1 %v4644_v49  ;;  %v2078_v12 = vmul.f32 %v4644_v49, %v4644_v49 }
 0xb62   :  { %v4646_v17 = vpop.eup %4645 }
 0xb63   :  { %2079 = vadd.xlane.f32.xlu0 %v2078_v12  ;;  %v2412_v12 = vadd.f32 %v2411_v10, %v2266_v35  ;;  %v2068_v9 = vadd.f32 1.0, %v4646_v17  ;;  %v6396_v10 = vld [vmem:[#allocation20_spill] sm:$0xff] }
 0xb72   :  { %2098 = vperm.xlu1 %4562, %v3937_v40  }
 0xb96   :  { %2413 = vadd.xlane.f32.xlu1 %v2412_v12  ;;  %v6397_v12 = vld [vmem:[#allocation21_spill] sm:$0xff] }
 0xbee   :  { %v2076_v40 = vpop.xlane.xlu1 %2075 }
 0xbef   :  { %v2077_v0 = vmul.f32 0.03125, %v2076_v40 }
 0xbf0   :  { %v2080_v8 = vpop.xlane.xlu0 %2079 }
 0xbf1   :  { %v2082_v30 = vmul.f32 %v2077_v0, %v2077_v0  ;;  %v2081_v11 = vmul.f32 0.03125, %v2080_v8  ;;  %v2084_v26 = vsub.f32 %v4644_v49, %v2077_v0  ;;  %v5621_v8 = vld [vmem:[%s6145_s10] ss:$0 sm:$0xff]  ;;  %v6394_v49 = vld [vmem:[#allocation17_spill] sm:$0xff] }
 0xbf2   :  { %6392 = vst [vmem:[#allocation45_spill] sm:$0xff] %v5621_v8 }
 0xbf3   :  { %v2083_v21 = vsub.f32 %v2081_v11, %v2082_v30  ;;  %v5624_v11 = vpop.permute.xlu1 %2098 }
 0xbf4   :  { %6393 = vst [vmem:[#allocation47_spill] sm:$0xff] %v5624_v11 }
 0xbf5   :  { %v2085_v22 = vadd.f32 1e-05, %v2083_v21 }
 0xbf7   :  { %4647 = vrsqrt.f32 %v2085_v22 }
 0xbf8   :  { %4649 = vrcp.f32 %v2068_v9 }
 0xc01   :  { %v4648_v60 = vpop.eup %4647 }
 0xc02   :  { %v2087_v6 = vmul.f32 %v4648_v60, %v2084_v26  ;;  %v4650_v22 = vpop.eup %4649  ;;  %v6395_v26 = vld [vmem:[#allocation19_spill] sm:$0xff] }
 0xc04   :  { %v2088_v39 = vmul.f32 %v5615_v52, %v2087_v6 }
 0xc06   :  { %v2089_v21 = vadd.f32 %v5621_v8, %v2088_v39 }
 0xc08   :  { %v2090_v54 = vmul.f32 %v4650_v22, %v2089_v21 }
 0xc0a   :  { %v2101_v0 = vmul.f32 %v5624_v11, %v2090_v54 }
 0xc0c   :  { %3938 = vst [vmem:[%s6146_s11 + $0x18] sm:$0xff] %v2101_v0  ;;  %2333 = vmatmul.mubr.f32.vlgmr.msra.gmra.mrb[18].mxu0 %v2101_v0  ;;  %2404 = vmatmul.mubr.f32.vlgmr.msra.gmra.mrb[18].mxu1 %v2101_v0 }
 0xc0d   :  { %4345 = vmatpush1.bf16.msra.mxu0 %v6394_v49  ;;  %2624 = vmatprep.mubr.f32.mxu0 %v6269_v61 }
 0xc0e   :  { %4349 = vmatpush1.bf16.msra.mxu1 %v6395_v26  ;;  %2695 = vmatprep.mubr.f32.mxu1 %v6269_v61  ;;  %v6400_v26 = vld [vmem:[#allocation32_spill] sm:$0xff] }
 0xc0f   :  { %4351 = vmatprep.subr.bf16.mxu0 %v6396_v10  ;;  %4383 = vmatprep.subr.bf16.mxu1 %v6397_v12  ;;  %v6399_v12 = vld [vmem:[#allocation31_spill] sm:$0xff] }
 0xc23   :  { %v2414_v40 = vpop.xlane.xlu1 %2413 }
 0xc24   :  { %v2415_v30 = vmul.f32 0.0078125, %v2414_v40 }
 0xc26   :  { %v5636_v17 = vsub.f32 %v2193_v14, %v2415_v30  ;;  %v5638_v9 = vsub.f32 %v2195_v56, %v2415_v30  ;;  %v5640_v60 = vsub.f32 %v2264_v16, %v2415_v30  ;;  %v5646_v21 = vsub.f32 %v2266_v35, %v2415_v30 }
 0xc28   :  { %6398 = vst [vmem:[#allocation48_spill] sm:$0xff] %v5640_v60  ;;  %v2420_v6 = vmul.f32 %v5059_v57, %v5636_v17  ;;  %v2421_v39 = vmul.f32 %v5062_v44, %v5638_v9  ;;  %v2422_v0 = vmul.f32 %v5065_v24, %v5640_v60  ;;  %v2423_v8 = vmul.f32 %v5076_v31, %v5646_v21 }
 0xc2a   :  { %v2424_v40 = vmul.f32 %v2420_v6, %v2420_v6  ;;  %v2425_v14 = vmul.f32 %v2421_v39, %v2421_v39  ;;  %v2426_v30 = vmul.f32 %v2422_v0, %v2422_v0  ;;  %v2427_v6 = vmul.f32 %v2423_v8, %v2423_v8 }
 0xc2c   :  { %v2428_v27 = vadd.f32 %v2425_v14, %v2424_v40 }
 0xc2e   :  { %v2429_v39 = vadd.f32 %v2428_v27, %v2426_v30  ;;  %v6404_v30 = vld [vmem:[#allocation18_spill] sm:$0xff] }
 0xcdf   :  { %v2334_v22 = vpop.f32.mrb[18].mxu0  ;;  %v2405_v54 = vpop.f32.mrb[18].mxu1 }
 0xce0   :  { %v2335_v56 = vadd.f32 %v2334_v22, %v6399_v12  ;;  %v2336_v10 = vpop.f32.mrb[19].mxu0  ;;  %v2407_v16 = vpop.f32.mrb[19].mxu1  ;;  %v2406_v52 = vadd.f32 %v2405_v54, %v6300_v18  ;;  %v2430_v22 = vadd.f32 %v2429_v39, %v2427_v6 }
 0xce1   :  { %v2337_v49 = vadd.f32 %v2336_v10, %v6400_v26  ;;  %v2408_v43 = vadd.f32 %v2407_v16, %v6301_v13  ;;  %v6402_v16 = vld [vmem:[#allocation25_spill] sm:$0xff] }
 0xce3   :  { %v2444_v35 = vadd.f32 %v2337_v49, %v2335_v56 }
 0xce5   :  { %v2445_v3 = vadd.f32 %v2444_v35, %v2406_v52  ;;  %v6403_v35 = vld [vmem:[#allocation16_spill] sm:$0xff] }
 0xce7   :  { %v2446_v11 = vadd.f32 %v2445_v3, %v2408_v43 }
 0xce9   :  { %2447 = vadd.xlane.f32.xlu0 %v2446_v11 }
 0xced   :  { %2431 = vadd.xlane.f32.xlu0 %v2430_v22 }
 0xd76   :  { %v2448_v12 = vpop.xlane.xlu0 %2447 }
 0xd77   :  { %v2449_v60 = vmul.f32 0.0078125, %v2448_v12 }
 0xd79   :  { %v5656_v10 = vsub.f32 %v2335_v56, %v2449_v60  ;;  %v5658_v26 = vsub.f32 %v2337_v49, %v2449_v60  ;;  %v5660_v48 = vsub.f32 %v2406_v52, %v2449_v60  ;;  %v5662_v54 = vsub.f32 %v2408_v43, %v2449_v60  ;;  %v3950_v60 = vld [vmem:[%s6136_s1 + $0x28] sm:$0xff]  ;;  %v6401_v56 = vld [vmem:[#allocation24_spill] sm:$0xff] }
 0xd7a   :  { %3951 = vmatmul.mubr.msk.f32.vlgmr.msra.gmra.mrb[20].mxu0 %vm291_vm0, %v3950_v60  ;;  %3952 = vmatmul.mubr.msk.f32.vlgmr.msra.gmra.mrb[20].mxu1 %vm291_vm0, %v3950_v60  ;;  %v2432_v6 = vpop.xlane.xlu0 %2431  ;;  %v6405_v60 = vld [vmem:[#allocation36_spill] sm:$0xff] }
 0xd7b   :  { %v2454_v0 = vmul.f32 %v5059_v57, %v5656_v10  ;;  %v2455_v3 = vmul.f32 %v5062_v44, %v5658_v26  ;;  %v2456_v27 = vmul.f32 %v5065_v24, %v5660_v48  ;;  %v2457_v8 = vmul.f32 %v5076_v31, %v5662_v54  ;;  %4353 = vmatpush1.bf16.msra.mxu0 %v4906_v20 }
 0xd7c   :  { %4385 = vmatpush1.bf16.msra.mxu1 %v4913_v25  ;;  %4355 = vmatprep.subr.bf16.mxu0 %v4916_v29  ;;  %v2433_v39 = vmul.f32 0.0078125, %v2432_v6 }
 0xd7d   :  { %v2458_v11 = vmul.f32 %v2454_v0, %v2454_v0  ;;  %v2459_v12 = vmul.f32 %v2455_v3, %v2455_v3  ;;  %v2460_v49 = vmul.f32 %v2456_v27, %v2456_v27  ;;  %v2461_v52 = vmul.f32 %v2457_v8, %v2457_v8  ;;  %4387 = vmatprep.subr.bf16.mxu1 %v4921_v34 }
 0xd7e   :  { %2766 = vmatprep.mubr.f32.mxu0 %v6269_v61  ;;  %2837 = vmatprep.mubr.f32.mxu1 %v6269_v61  ;;  %v2434_v22 = vadd.f32 1e-05, %v2433_v39  ;;  %v6406_v39 = vld [vmem:[#allocation38_spill] sm:$0xff] }
 0xd7f   :  { %v2462_v40 = vadd.f32 %v2459_v12, %v2458_v11  ;;  %4357 = vmatpush1.bf16.msra.mxu0 %v4919_v33 }
 0xd80   :  { %4389 = vmatpush1.bf16.msra.mxu1 %v4925_v38  ;;  %4359 = vmatprep.subr.bf16.mxu0 %v4928_v42  ;;  %4651 = vrsqrt.f32 %v2434_v22 }
 0xd81   :  { %v2463_v14 = vadd.f32 %v2462_v40, %v2460_v49  ;;  %4391 = vmatprep.subr.bf16.mxu1 %v4933_v47 }
 0xd83   :  { %v2464_v43 = vadd.f32 %v2463_v14, %v2461_v52  ;;  %4361 = vmatpush1.bf16.msra.mxu0 %v4931_v46 }
 0xd84   :  { %4393 = vmatpush1.bf16.msra.mxu1 %v4939_v55  ;;  %4363 = vmatprep.subr.bf16.mxu0 %v4936_v51 }
 0xd85   :  { %2465 = vadd.xlane.f32.xlu0 %v2464_v43  ;;  %4395 = vmatprep.subr.bf16.mxu1 %v4942_v58 }
 0xd87   :  { %4365 = vmatpush1.bf16.msra.mxu0 %v4945_v62 }
 0xd88   :  { %4397 = vmatpush1.bf16.msra.mxu1 %v4951_v4  ;;  %4367 = vmatprep.subr.bf16.mxu0 %v4948_v1 }
 0xd89   :  { %4399 = vmatprep.subr.bf16.mxu1 %v4954_v7 }
 0xd8a   :  { %v4652_v8 = vpop.eup %4651 }
 0xd8b   :  { %4369 = vmatpush1.bf16.msra.mxu0 %v4957_v15  ;;  %v2436_v11 = vmul.f32 %v4652_v8, %v5636_v17  ;;  %v2437_v12 = vmul.f32 %v4652_v8, %v5638_v9  ;;  %v2439_v49 = vmul.f32 %v4652_v8, %v5646_v21 }
 0xd8c   :  { %4401 = vmatpush1.bf16.msra.mxu1 %v4963_v23  ;;  %4371 = vmatprep.subr.bf16.mxu0 %v4960_v19 }
 0xd8d   :  { %4403 = vmatprep.subr.bf16.mxu1 %v4966_v28  ;;  %v2440_v6 = vmul.f32 %v2436_v11, %v6405_v60  ;;  %v2441_v22 = vmul.f32 %v2437_v12, %v6406_v39  ;;  %v2443_v17 = vmul.f32 %v2439_v49, %v6309_v2  ;;  %v6410_v11 = vld [vmem:[#allocation48_spill] sm:$0xff]  ;;  %v6412_v49 = vld [vmem:[#allocation43_spill] sm:$0xff] }
 0xd8e   :  { %v2438_v60 = vmul.f32 %v4652_v8, %v6410_v11  ;;  %v6418_v11 = vld [vmem:[#allocation34_spill] sm:$0xff] }
 0xd8f   :  { %4373 = vmatpush1.bf16.msra.mxu0 %v4969_v32  ;;  %vm3946_vm9 = vcmp.gt.s32.totalorder %v6418_v11, 4 }
 0xd90   :  { %4405 = vmatpush1.bf16.msra.mxu1 %v4975_v41  ;;  %4375 = vmatprep.subr.bf16.mxu0 %v4972_v37 }
 0xd91   :  { %4407 = vmatprep.subr.bf16.mxu1 %v4978_v45 }
 0xd93   :  { %4377 = vmatpush1.bf16.msra.mxu0 %v4981_v50 }
 0xd94   :  { %4409 = vmatpush1.bf16.msra.mxu1 %v4987_v59  ;;  %4379 = vmatprep.subr.bf16.mxu0 %v6302_v63 }
 0xd95   :  { %4411 = vmatprep.subr.bf16.mxu1 %v6303_v5 }
 0xd97   :  { %4381 = vmatpush1.bf16.msra.mxu0 %v6401_v56 }
 0xd98   :  { %4413 = vmatpush1.bf16.msra.mxu1 %v6402_v16  ;;  %4415 = vmatprep.subr.bf16.mxu0 %v6403_v35 }
 0xd99   :  { %4419 = vmatprep.subr.bf16.mxu1 %v6404_v30 }
 0xe12   :  { %v2466_v0 = vpop.xlane.xlu0 %2465 }
 0xe13   :  { %v2467_v3 = vmul.f32 0.0078125, %v2466_v0  ;;  %v6407_v0 = vld [vmem:[#allocation37_spill] sm:$0xff] }
 0xe15   :  { %v2468_v27 = vadd.f32 1e-05, %v2467_v3 }
 0xe17   :  { %4653 = vrsqrt.f32 %v2468_v27 }
 0xe21   :  { %v4654_v40 = vpop.eup %4653 }
 0xe22   :  { %v2470_v52 = vmul.f32 %v4654_v40, %v5656_v10  ;;  %v2471_v14 = vmul.f32 %v4654_v40, %v5658_v26  ;;  %v2473_v43 = vmul.f32 %v4654_v40, %v5662_v54  ;;  %v2472_v10 = vmul.f32 %v4654_v40, %v5660_v48  ;;  %v6408_v26 = vld [vmem:[#allocation41_spill] sm:$0xff]  ;;  %v6409_v54 = vld [vmem:[#allocation42_spill] sm:$0xff] }
 0xe24   :  { %v2474_v3 = vmul.f32 %v2470_v52, %v6407_v0  ;;  %v2475_v27 = vmul.f32 %v2471_v14, %v6308_v36  ;;  %v2477_v9 = vmul.f32 %v2473_v43, %v5173_v53  ;;  %v6411_v52 = vld [vmem:[#allocation26_spill] sm:$0xff]  ;;  %v2442_v14 = vmul.f32 %v2438_v60, %v6412_v49 }
 0xe25   :  { %v2476_v0 = vmul.f32 %v2472_v10, %v6411_v52 }
 0xe26   :  { %v2478_v21 = vadd.f32 %v2474_v3, %v2440_v6  ;;  %v2479_v30 = vadd.f32 %v2475_v27, %v2441_v22  ;;  %v2481_v35 = vadd.f32 %v2477_v9, %v2443_v17  ;;  %v6413_v6 = vld [vmem:[#allocation35_spill] sm:$0xff] }
 0xe27   :  { %v2480_v43 = vadd.f32 %v2476_v0, %v2442_v14 }
 0xe28   :  { %v2482_v16 = vadd.f32 %v2478_v21, %v6408_v26  ;;  %v2483_v56 = vadd.f32 %v2479_v30, %v6409_v54 }
 0xe29   :  { %v2484_v22 = vadd.f32 %v2480_v43, %v6413_v6 }
 0xe2a   :  { %v3943_v12 = vmul.f32 -1.442695, %v2482_v16  ;;  %v3944_v39 = vmul.f32 -1.442695, %v2483_v56  ;;  %v6414_v16 = vld [vmem:[#allocation23_spill] sm:$0xff] }
 0xe2b   :  { %v6415_v56 = vld [vmem:[#allocation47_spill] sm:$0xff] }
 0xe2c   :  { %4655 = vpow2.f32 %v3943_v12  ;;  %v5732_v17 = vmul.f32 %v6415_v56, %v6414_v16  ;;  %v3947_v12 = vsel %vm3946_vm9, 1.0, %v6269_v61 }
 0xe2d   :  { %4657 = vpow2.f32 %v3944_v39 }
 0xe2e   :  { %4659 = vtanh.f32 %v2484_v22  ;;  %6416 = vst [vmem:[#allocation44_spill] sm:$0xff] %v5732_v17  ;;  %v6419_v22 = vld [vmem:[#allocation27_spill] sm:$0xff] }
 0xe36   :  { %v4656_v3 = vpop.eup %4655 }
 0xe37   :  { %v4658_v27 = vpop.eup %4657  ;;  %v2489_v48 = vadd.f32 1.0, %v4656_v3 }
 0xe38   :  { %v2495_v40 = vadd.f32 1.0, %v4658_v27  ;;  %v4660_v30 = vpop.eup %4659 }
 0xe39   :  { %4661 = vrcp.f32 %v2489_v48 }
 0xe3a   :  { %4663 = vrcp.f32 %v2495_v40  ;;  %v6420_v40 = vld [vmem:[#allocation28_spill] sm:$0xff] }
 0xe43   :  { %v4662_v8 = vpop.eup %4661 }
 0xe44   :  { %v4664_v9 = vpop.eup %4663  ;;  %v2506_v39 = vmul.f32 %v4662_v8, %v4660_v30  ;;  %v6421_v8 = vld [vmem:[#allocation29_spill] sm:$0xff] }
 0xe45   :  { %v2505_v60 = vmul.f32 %v4664_v9, %v5732_v17  ;;  %v6422_v9 = vld [vmem:[#allocation30_spill] sm:$0xff] }
 0xe46   :  { %v6423_v17 = vld [vmem:[#allocation46_spill] sm:$0xff] }
 0xe47   :  { %v5735_v0 = vadd.f32 %v2506_v39, %v2505_v60  ;;  %v2485_v11 = vadd.f32 %v2481_v35, %v6423_v17 }
 0xe49   :  { %6417 = vst [vmem:[#allocation40_spill] sm:$0xff] %v5735_v0  ;;  %4665 = vtanh.f32 %v5735_v0  ;;  %v3945_v0 = vmul.f32 -1.442695, %v2485_v11 }
 0xe4b   :  { %4667 = vpow2.f32 %v3945_v0 }
 0xe4d   :  { %v2626_v14 = vpop.f32.mrb[20].mxu0  ;;  %v2697_v43 = vpop.f32.mrb[20].mxu1 }
 0xe4e   :  { %v2627_v3 = vadd.f32 %v2626_v14, %v6419_v22  ;;  %v2628_v27 = vpop.f32.mrb[21].mxu0  ;;  %v2699_v48 = vpop.f32.mrb[21].mxu1  ;;  %v2698_v16 = vadd.f32 %v2697_v43, %v6421_v8 }
 0xe4f   :  { %v2629_v30 = vadd.f32 %v2628_v27, %v6420_v40  ;;  %v2700_v39 = vadd.f32 %v2699_v48, %v6422_v9  ;;  %v6425_v9 = vld [vmem:[#allocation45_spill] sm:$0xff] }
 0xe51   :  { %v2844_v56 = vadd.f32 %v2629_v30, %v2627_v3 }
 0xe53   :  { %v4666_v21 = vpop.eup %4665  ;;  %v2845_v60 = vadd.f32 %v2844_v56, %v2698_v16 }
 0xe54   :  { %2509 = vadd.xlane.f32.xlu0 %v4666_v21  ;;  %v2512_v10 = vmul.f32 %v4666_v21, %v4666_v21 }
 0xe55   :  { %v4668_v27 = vpop.eup %4667 }
 0xe56   :  { %v2502_v43 = vadd.f32 1.0, %v4668_v27 }
 0xe58   :  { %2513 = vadd.xlane.f32.xlu0 %v2512_v10  ;;  %v2846_v10 = vadd.f32 %v2845_v60, %v2700_v39  ;;  %v6424_v60 = vld [vmem:[#allocation22_spill] sm:$0xff] }
 0xe5a   :  { %2847 = vadd.xlane.f32.xlu1 %v2846_v10 }
 0xe6e   :  { %2532 = vperm.xlu0 %4561, %v3947_v12  }
 0xee1   :  { %v2510_v12 = vpop.xlane.xlu0 %2509 }
 0xee2   :  { %v2511_v6 = vmul.f32 0.03125, %v2510_v12 }
 0xee4   :  { %v2516_v14 = vmul.f32 %v2511_v6, %v2511_v6  ;;  %v2518_v8 = vsub.f32 %v4666_v21, %v2511_v6  ;;  %v6430_v6 = vld [vmem:[#allocation21_spill] sm:$0xff] }
 0xee5   :  { %v2514_v49 = vpop.xlane.xlu0 %2513 }
 0xee6   :  { %v2515_v22 = vmul.f32 0.03125, %v2514_v49  ;;  %v6429_v49 = vld [vmem:[#allocation20_spill] sm:$0xff] }
 0xee7   :  { %v2848_v21 = vpop.xlane.xlu1 %2847 }
 0xee8   :  { %v2517_v52 = vsub.f32 %v2515_v22, %v2516_v14 }
 0xeea   :  { %v2519_v54 = vadd.f32 1e-05, %v2517_v52  ;;  %v6428_v52 = vld [vmem:[#allocation19_spill] sm:$0xff] }
 0xeec   :  { %4669 = vrsqrt.f32 %v2519_v54  ;;  %v6427_v54 = vld [vmem:[#allocation17_spill] sm:$0xff] }
 0xeed   :  { %4671 = vrcp.f32 %v2502_v43  ;;  %v5747_v0 = vpop.permute.xlu0 %2532 }
 0xeee   :  { %6426 = vst [vmem:[#allocation50_spill] sm:$0xff] %v5747_v0 }
 0xef6   :  { %v4670_v48 = vpop.eup %4669 }
 0xef7   :  { %v2521_v56 = vmul.f32 %v4670_v48, %v2518_v8  ;;  %v4672_v11 = vpop.eup %4671 }
 0xef9   :  { %v2522_v10 = vmul.f32 %v6424_v60, %v2521_v56 }
 0xefb   :  { %v2523_v35 = vadd.f32 %v6425_v9, %v2522_v10 }
 0xefd   :  { %v2524_v17 = vmul.f32 %v4672_v11, %v2523_v35 }
 0xeff   :  { %v2535_v12 = vmul.f32 %v5747_v0, %v2524_v17  ;;  %v2849_v17 = vmul.f32 0.0078125, %v2848_v21 }
 0xf01   :  { %3948 = vst [vmem:[%s6146_s11 + $0x20] sm:$0xff] %v2535_v12  ;;  %2767 = vmatmul.mubr.f32.vlgmr.msra.gmra.mrb[22].mxu0 %v2535_v12  ;;  %2838 = vmatmul.mubr.f32.vlgmr.msra.gmra.mrb[22].mxu1 %v2535_v12  ;;  %v5759_v22 = vsub.f32 %v2627_v3, %v2849_v17  ;;  %v5761_v8 = vsub.f32 %v2629_v30, %v2849_v17  ;;  %v6432_v12 = vld [vmem:[#allocation31_spill] sm:$0xff] }
 0xf02   :  { %4417 = vmatpush1.bf16.msra.mxu0 %v6427_v54  ;;  %3058 = vmatprep.mubr.f32.mxu0 %v6269_v61  ;;  %v5763_v14 = vsub.f32 %v2698_v16, %v2849_v17  ;;  %v5769_v48 = vsub.f32 %v2700_v39, %v2849_v17 }
 0xf03   :  { %4421 = vmatpush1.bf16.msra.mxu1 %v6428_v52  ;;  %3129 = vmatprep.mubr.f32.mxu1 %v6269_v61  ;;  %v2854_v27 = vmul.f32 %v5059_v57, %v5759_v22  ;;  %v2855_v43 = vmul.f32 %v5062_v44, %v5761_v8 }
 0xf04   :  { %4423 = vmatprep.subr.bf16.mxu0 %v6429_v49  ;;  %4455 = vmatprep.subr.bf16.mxu1 %v6430_v6  ;;  %6431 = vst [vmem:[#allocation48_spill] sm:$0xff] %v5763_v14  ;;  %v2856_v35 = vmul.f32 %v5065_v24, %v5763_v14  ;;  %v6433_v6 = vld [vmem:[#allocation32_spill] sm:$0xff]  ;;  %v2857_v52 = vmul.f32 %v5076_v31, %v5769_v48 }
 0xf05   :  { %v2858_v11 = vmul.f32 %v2854_v27, %v2854_v27  ;;  %v2859_v3 = vmul.f32 %v2855_v43, %v2855_v43 }
 0xf06   :  { %v2860_v17 = vmul.f32 %v2856_v35, %v2856_v35  ;;  %v2861_v27 = vmul.f32 %v2857_v52, %v2857_v52 }
 0xf07   :  { %v2862_v9 = vadd.f32 %v2859_v3, %v2858_v11 }
 0xf09   :  { %v2863_v43 = vadd.f32 %v2862_v9, %v2860_v17  ;;  %v6437_v17 = vld [vmem:[#allocation18_spill] sm:$0xff] }
 0xfd4   :  { %v2768_v56 = vpop.f32.mrb[22].mxu0  ;;  %v2839_v10 = vpop.f32.mrb[22].mxu1 }
 0xfd5   :  { %v2769_v30 = vadd.f32 %v2768_v56, %v6432_v12  ;;  %v2770_v21 = vpop.f32.mrb[23].mxu0  ;;  %v2841_v16 = vpop.f32.mrb[23].mxu1  ;;  %v2840_v54 = vadd.f32 %v2839_v10, %v6300_v18  ;;  %v2864_v56 = vadd.f32 %v2863_v43, %v2861_v27 }
 0xfd6   :  { %v2771_v49 = vadd.f32 %v2770_v21, %v6433_v6  ;;  %v2842_v60 = vadd.f32 %v2841_v16, %v6301_v13  ;;  %v6435_v16 = vld [vmem:[#allocation25_spill] sm:$0xff] }
 0xfd8   :  { %v2878_v39 = vadd.f32 %v2771_v49, %v2769_v30 }
 0xfda   :  { %v2879_v40 = vadd.f32 %v2878_v39, %v2840_v54  ;;  %v6436_v39 = vld [vmem:[#allocation16_spill] sm:$0xff] }
 0xfdc   :  { %v2880_v0 = vadd.f32 %v2879_v40, %v2842_v60 }
 0xfde   :  { %2881 = vadd.xlane.f32.xlu1 %v2880_v0 }
 0xfe2   :  { %2865 = vadd.xlane.f32.xlu1 %v2864_v56 }
0x106b   :  { %v2882_v12 = vpop.xlane.xlu1 %2881 }
0x106c   :  { %v2883_v14 = vmul.f32 0.0078125, %v2882_v12 }
0x106e   :  { %v5779_v21 = vsub.f32 %v2769_v30, %v2883_v14  ;;  %v5781_v6 = vsub.f32 %v2771_v49, %v2883_v14  ;;  %v5783_v26 = vsub.f32 %v2840_v54, %v2883_v14  ;;  %v5785_v10 = vsub.f32 %v2842_v60, %v2883_v14  ;;  %v3960_v14 = vld [vmem:[%s6136_s1 + $0x30] sm:$0xff]  ;;  %v6434_v30 = vld [vmem:[#allocation24_spill] sm:$0xff] }
0x106f   :  { %3961 = vmatmul.mubr.msk.f32.vlgmr.msra.gmra.mrb[24].mxu0 %vm291_vm0, %v3960_v14  ;;  %3962 = vmatmul.mubr.msk.f32.vlgmr.msra.gmra.mrb[24].mxu1 %vm291_vm0, %v3960_v14  ;;  %v2866_v27 = vpop.xlane.xlu1 %2865  ;;  %v6438_v14 = vld [vmem:[#allocation36_spill] sm:$0xff] }
0x1070   :  { %v2888_v35 = vmul.f32 %v5059_v57, %v5779_v21  ;;  %v2889_v40 = vmul.f32 %v5062_v44, %v5781_v6  ;;  %v2890_v9 = vmul.f32 %v5065_v24, %v5783_v26  ;;  %v2891_v0 = vmul.f32 %v5076_v31, %v5785_v10  ;;  %4425 = vmatpush1.bf16.msra.mxu0 %v4906_v20 }
0x1071   :  { %4457 = vmatpush1.bf16.msra.mxu1 %v4913_v25  ;;  %4427 = vmatprep.subr.bf16.mxu0 %v4916_v29  ;;  %v2867_v43 = vmul.f32 0.0078125, %v2866_v27 }
0x1072   :  { %v2892_v52 = vmul.f32 %v2888_v35, %v2888_v35  ;;  %v2893_v11 = vmul.f32 %v2889_v40, %v2889_v40  ;;  %v2894_v49 = vmul.f32 %v2890_v9, %v2890_v9  ;;  %v2895_v54 = vmul.f32 %v2891_v0, %v2891_v0  ;;  %4459 = vmatprep.subr.bf16.mxu1 %v4921_v34 }
0x1073   :  { %3200 = vmatprep.mubr.f32.mxu0 %v6269_v61  ;;  %3271 = vmatprep.mubr.f32.mxu1 %v6269_v61  ;;  %v2868_v56 = vadd.f32 1e-05, %v2867_v43  ;;  %v6440_v43 = vld [vmem:[#allocation37_spill] sm:$0xff] }
0x1074   :  { %v2896_v3 = vadd.f32 %v2893_v11, %v2892_v52  ;;  %4429 = vmatpush1.bf16.msra.mxu0 %v4919_v33 }
0x1075   :  { %4461 = vmatpush1.bf16.msra.mxu1 %v4925_v38  ;;  %4431 = vmatprep.subr.bf16.mxu0 %v4928_v42  ;;  %4673 = vrsqrt.f32 %v2868_v56 }
0x1076   :  { %v2897_v12 = vadd.f32 %v2896_v3, %v2894_v49  ;;  %4463 = vmatprep.subr.bf16.mxu1 %v4933_v47 }
0x1078   :  { %v2898_v60 = vadd.f32 %v2897_v12, %v2895_v54  ;;  %4433 = vmatpush1.bf16.msra.mxu0 %v4931_v46 }
0x1079   :  { %4465 = vmatpush1.bf16.msra.mxu1 %v4939_v55  ;;  %4435 = vmatprep.subr.bf16.mxu0 %v4936_v51 }
0x107a   :  { %2899 = vadd.xlane.f32.xlu1 %v2898_v60  ;;  %4467 = vmatprep.subr.bf16.mxu1 %v4942_v58 }
0x107c   :  { %4437 = vmatpush1.bf16.msra.mxu0 %v4945_v62 }
0x107d   :  { %4469 = vmatpush1.bf16.msra.mxu1 %v4951_v4  ;;  %4439 = vmatprep.subr.bf16.mxu0 %v4948_v1 }
0x107e   :  { %4471 = vmatprep.subr.bf16.mxu1 %v4954_v7 }
0x107f   :  { %v4674_v0 = vpop.eup %4673 }
0x1080   :  { %4441 = vmatpush1.bf16.msra.mxu0 %v4957_v15  ;;  %v2870_v52 = vmul.f32 %v4674_v0, %v5759_v22  ;;  %v2871_v11 = vmul.f32 %v4674_v0, %v5761_v8  ;;  %v2873_v49 = vmul.f32 %v4674_v0, %v5769_v48 }
0x1081   :  { %4473 = vmatpush1.bf16.msra.mxu1 %v4963_v23  ;;  %4443 = vmatprep.subr.bf16.mxu0 %v4960_v19 }
0x1082   :  { %4475 = vmatprep.subr.bf16.mxu1 %v4966_v28  ;;  %v2877_v22 = vmul.f32 %v2873_v49, %v6309_v2  ;;  %v6445_v49 = vld [vmem:[#allocation43_spill] sm:$0xff] }
0x1084   :  { %4445 = vmatpush1.bf16.msra.mxu0 %v4969_v32 }
0x1085   :  { %4477 = vmatpush1.bf16.msra.mxu1 %v4975_v41  ;;  %4447 = vmatprep.subr.bf16.mxu0 %v4972_v37 }
0x1086   :  { %4479 = vmatprep.subr.bf16.mxu1 %v4978_v45 }
0x1088   :  { %4449 = vmatpush1.bf16.msra.mxu0 %v4981_v50 }
0x1089   :  { %4481 = vmatpush1.bf16.msra.mxu1 %v4987_v59  ;;  %4451 = vmatprep.subr.bf16.mxu0 %v6302_v63 }
0x108a   :  { %4483 = vmatprep.subr.bf16.mxu1 %v6303_v5 }
0x108c   :  { %4453 = vmatpush1.bf16.msra.mxu0 %v6434_v30 }
0x108d   :  { %4485 = vmatpush1.bf16.msra.mxu1 %v6435_v16  ;;  %4487 = vmatprep.subr.bf16.mxu0 %v6436_v39  ;;  %v2874_v39 = vmul.f32 %v2870_v52, %v6438_v14  ;;  %v6443_v52 = vld [vmem:[#allocation48_spill] sm:$0xff] }
0x108e   :  { %4491 = vmatprep.subr.bf16.mxu1 %v6437_v17  ;;  %v6439_v17 = vld [vmem:[#allocation38_spill] sm:$0xff]  ;;  %v2872_v14 = vmul.f32 %v4674_v0, %v6443_v52 }
0x108f   :  { %v2875_v27 = vmul.f32 %v2871_v11, %v6439_v17  ;;  %v6451_v52 = vld [vmem:[#allocation34_spill] sm:$0xff] }
0x1090   :  { %vm3956_vm10 = vcmp.gt.s32.totalorder %v6451_v52, 5  ;;  %v6456_v52 = vld [vmem:[#allocation46_spill] sm:$0xff] }
0x1107   :  { %v2900_v35 = vpop.xlane.xlu1 %2899 }
0x1108   :  { %v2901_v40 = vmul.f32 0.0078125, %v2900_v35 }
0x110a   :  { %v2902_v9 = vadd.f32 1e-05, %v2901_v40 }
0x110c   :  { %4675 = vrsqrt.f32 %v2902_v9 }
0x1116   :  { %v4676_v3 = vpop.eup %4675 }
0x1117   :  { %v2904_v54 = vmul.f32 %v4676_v3, %v5779_v21  ;;  %v2905_v12 = vmul.f32 %v4676_v3, %v5781_v6  ;;  %v2907_v60 = vmul.f32 %v4676_v3, %v5785_v10  ;;  %v2906_v21 = vmul.f32 %v4676_v3, %v5783_v26  ;;  %v6441_v6 = vld [vmem:[#allocation41_spill] sm:$0xff]  ;;  %v6442_v10 = vld [vmem:[#allocation42_spill] sm:$0xff] }
0x1119   :  { %v2908_v56 = vmul.f32 %v2904_v54, %v6440_v43  ;;  %v2909_v35 = vmul.f32 %v2905_v12, %v6308_v36  ;;  %v2911_v8 = vmul.f32 %v2907_v60, %v5173_v53  ;;  %v6444_v54 = vld [vmem:[#allocation26_spill] sm:$0xff]  ;;  %v2876_v12 = vmul.f32 %v2872_v14, %v6445_v49 }
0x111a   :  { %v2910_v43 = vmul.f32 %v2906_v21, %v6444_v54 }
0x111b   :  { %v2912_v48 = vadd.f32 %v2908_v56, %v2874_v39  ;;  %v2913_v40 = vadd.f32 %v2909_v35, %v2875_v27  ;;  %v2915_v9 = vadd.f32 %v2911_v8, %v2877_v22  ;;  %v6446_v39 = vld [vmem:[#allocation35_spill] sm:$0xff] }
0x111c   :  { %v2914_v60 = vadd.f32 %v2910_v43, %v2876_v12 }
0x111d   :  { %v2916_v16 = vadd.f32 %v2912_v48, %v6441_v6  ;;  %v2917_v30 = vadd.f32 %v2913_v40, %v6442_v10 }
0x111e   :  { %v2918_v27 = vadd.f32 %v2914_v60, %v6446_v39 }
0x111f   :  { %v3953_v11 = vmul.f32 -1.442695, %v2916_v16  ;;  %v3954_v17 = vmul.f32 -1.442695, %v2917_v30  ;;  %v6447_v16 = vld [vmem:[#allocation40_spill] sm:$0xff]  ;;  %v6448_v30 = vld [vmem:[#allocation50_spill] sm:$0xff] }
0x1120   :  { %v5855_v8 = vmul.f32 %v6448_v30, %v6447_v16 }
0x1121   :  { %4677 = vpow2.f32 %v3953_v11  ;;  %v3957_v11 = vsel %vm3956_vm10, 1.0, %v6269_v61 }
0x1122   :  { %4679 = vpow2.f32 %v3954_v17  ;;  %6449 = vst [vmem:[#allocation23_spill] sm:$0xff] %v5855_v8 }
0x1123   :  { %4681 = vtanh.f32 %v2918_v27  ;;  %v6452_v27 = vld [vmem:[#allocation27_spill] sm:$0xff] }
0x112b   :  { %v4678_v56 = vpop.eup %4677 }
0x112c   :  { %v4680_v35 = vpop.eup %4679  ;;  %v2923_v26 = vadd.f32 1.0, %v4678_v56 }
0x112d   :  { %v2929_v3 = vadd.f32 1.0, %v4680_v35  ;;  %v4682_v22 = vpop.eup %4681 }
0x112e   :  { %4683 = vrcp.f32 %v2923_v26 }
0x112f   :  { %4685 = vrcp.f32 %v2929_v3  ;;  %v6453_v3 = vld [vmem:[#allocation28_spill] sm:$0xff] }
0x1138   :  { %v4684_v0 = vpop.eup %4683 }
0x1139   :  { %v4686_v48 = vpop.eup %4685  ;;  %v2940_v17 = vmul.f32 %v4684_v0, %v4682_v22  ;;  %v6454_v0 = vld [vmem:[#allocation29_spill] sm:$0xff] }
0x113a   :  { %v2939_v14 = vmul.f32 %v4686_v48, %v5855_v8  ;;  %v6455_v48 = vld [vmem:[#allocation30_spill] sm:$0xff]  ;;  %v2919_v8 = vadd.f32 %v2915_v9, %v6456_v52 }
0x113c   :  { %v5858_v43 = vadd.f32 %v2940_v17, %v2939_v14 }
0x113e   :  { %6450 = vst [vmem:[#allocation47_spill] sm:$0xff] %v5858_v43  ;;  %4687 = vtanh.f32 %v5858_v43  ;;  %v3955_v43 = vmul.f32 -1.442695, %v2919_v8 }
0x1140   :  { %4689 = vpow2.f32 %v3955_v43 }
0x1142   :  { %v3060_v12 = vpop.f32.mrb[24].mxu0  ;;  %v3131_v60 = vpop.f32.mrb[24].mxu1 }
0x1143   :  { %v3061_v56 = vadd.f32 %v3060_v12, %v6452_v27  ;;  %v3062_v35 = vpop.f32.mrb[25].mxu0  ;;  %v3133_v26 = vpop.f32.mrb[25].mxu1  ;;  %v3132_v16 = vadd.f32 %v3131_v60, %v6454_v0 }
0x1144   :  { %v3063_v22 = vadd.f32 %v3062_v35, %v6453_v3  ;;  %v3134_v17 = vadd.f32 %v3133_v26, %v6455_v48  ;;  %v6458_v48 = vld [vmem:[#allocation45_spill] sm:$0xff] }
0x1146   :  { %v3278_v30 = vadd.f32 %v3063_v22, %v3061_v56 }
0x1148   :  { %v4688_v40 = vpop.eup %4687  ;;  %v3279_v14 = vadd.f32 %v3278_v30, %v3132_v16 }
0x1149   :  { %2943 = vadd.xlane.f32.xlu1 %v4688_v40  ;;  %v2946_v21 = vmul.f32 %v4688_v40, %v4688_v40 }
0x114a   :  { %v4690_v35 = vpop.eup %4689 }
0x114b   :  { %2947 = vadd.xlane.f32.xlu0 %v2946_v21  ;;  %v3280_v21 = vadd.f32 %v3279_v14, %v3134_v17  ;;  %v2936_v60 = vadd.f32 1.0, %v4690_v35  ;;  %v6457_v14 = vld [vmem:[#allocation22_spill] sm:$0xff] }
0x115a   :  { %2966 = vperm.xlu1 %4562, %v3957_v11  }
0x117e   :  { %3281 = vadd.xlane.f32.xlu1 %v3280_v21 }
0x11d6   :  { %v2944_v11 = vpop.xlane.xlu1 %2943 }
0x11d7   :  { %v2945_v39 = vmul.f32 0.03125, %v2944_v11 }
0x11d8   :  { %v2948_v49 = vpop.xlane.xlu0 %2947 }
0x11d9   :  { %v2950_v12 = vmul.f32 %v2945_v39, %v2945_v39  ;;  %v2949_v27 = vmul.f32 0.03125, %v2948_v49  ;;  %v2952_v0 = vsub.f32 %v4688_v40, %v2945_v39  ;;  %v6463_v49 = vld [vmem:[#allocation20_spill] sm:$0xff]  ;;  %v6464_v39 = vld [vmem:[#allocation21_spill] sm:$0xff] }
0x11da   :  { %v5870_v52 = vpop.permute.xlu1 %2966 }
0x11db   :  { %v2951_v54 = vsub.f32 %v2949_v27, %v2950_v12  ;;  %6459 = vst [vmem:[#allocation16_spill] sm:$0xff] %v5870_v52 }
0x11dd   :  { %v2953_v10 = vadd.f32 1e-05, %v2951_v54  ;;  %v6462_v54 = vld [vmem:[#allocation19_spill] sm:$0xff] }
0x11df   :  { %4691 = vrsqrt.f32 %v2953_v10  ;;  %v6461_v10 = vld [vmem:[#allocation17_spill] sm:$0xff] }
0x11e0   :  { %4693 = vrcp.f32 %v2936_v60 }
0x11e9   :  { %v4692_v26 = vpop.eup %4691 }
0x11ea   :  { %v2955_v30 = vmul.f32 %v4692_v26, %v2952_v0  ;;  %v4694_v8 = vpop.eup %4693 }
0x11ec   :  { %v2956_v21 = vmul.f32 %v6457_v14, %v2955_v30 }
0x11ee   :  { %v2957_v9 = vadd.f32 %v6458_v48, %v2956_v21 }
0x11f0   :  { %v2958_v43 = vmul.f32 %v4694_v8, %v2957_v9  ;;  %v6466_v8 = vld [vmem:[#allocation31_spill] sm:$0xff] }
0x11f2   :  { %v5873_v11 = vmul.f32 %v5870_v52, %v2958_v43 }
0x11f4   :  { %6460 = vst [vmem:[#allocation18_spill] sm:$0xff] %v5873_v11  ;;  %3958 = vst [vmem:[%s6146_s11 + $0x28] sm:$0xff] %v5873_v11  ;;  %3201 = vmatmul.mubr.f32.vlgmr.msra.gmra.mrb[26].mxu0 %v5873_v11  ;;  %3272 = vmatmul.mubr.f32.vlgmr.msra.gmra.mrb[26].mxu1 %v5873_v11 }
0x11f5   :  { %4489 = vmatpush1.bf16.msra.mxu0 %v6461_v10  ;;  %3492 = vmatprep.mubr.f32.mxu0 %v6269_v61  ;;  %v6467_v10 = vld [vmem:[#allocation32_spill] sm:$0xff] }
0x11f6   :  { %4493 = vmatpush1.bf16.msra.mxu1 %v6462_v54  ;;  %3563 = vmatprep.mubr.f32.mxu1 %v6269_v61 }
0x11f7   :  { %4495 = vmatprep.subr.bf16.mxu0 %v6463_v49  ;;  %4527 = vmatprep.subr.bf16.mxu1 %v6464_v39 }
0x120b   :  { %v3282_v40 = vpop.xlane.xlu1 %3281 }
0x120c   :  { %v3283_v27 = vmul.f32 0.0078125, %v3282_v40 }
0x120e   :  { %v5887_v0 = vsub.f32 %v3061_v56, %v3283_v27  ;;  %v5889_v48 = vsub.f32 %v3063_v22, %v3283_v27  ;;  %v5891_v12 = vsub.f32 %v3132_v16, %v3283_v27  ;;  %v5897_v26 = vsub.f32 %v3134_v17, %v3283_v27 }
0x1210   :  { %6465 = vst [vmem:[#allocation48_spill] sm:$0xff] %v5891_v12  ;;  %v3288_v35 = vmul.f32 %v5059_v57, %v5887_v0  ;;  %v3289_v60 = vmul.f32 %v5062_v44, %v5889_v48  ;;  %v3290_v21 = vmul.f32 %v5065_v24, %v5891_v12  ;;  %v3291_v49 = vmul.f32 %v5076_v31, %v5897_v26 }
0x1212   :  { %v3292_v9 = vmul.f32 %v3288_v35, %v3288_v35  ;;  %v3293_v56 = vmul.f32 %v3289_v60, %v3289_v60  ;;  %v3294_v40 = vmul.f32 %v3290_v21, %v3290_v21  ;;  %v3295_v35 = vmul.f32 %v3291_v49, %v3291_v49 }
0x1214   :  { %v3296_v27 = vadd.f32 %v3293_v56, %v3292_v9 }
0x1216   :  { %v3297_v60 = vadd.f32 %v3296_v27, %v3294_v40 }
0x12c7   :  { %v3202_v30 = vpop.f32.mrb[26].mxu0  ;;  %v3273_v14 = vpop.f32.mrb[26].mxu1 }
0x12c8   :  { %v3203_v22 = vadd.f32 %v3202_v30, %v6466_v8  ;;  %v3204_v43 = vpop.f32.mrb[27].mxu0  ;;  %v3275_v16 = vpop.f32.mrb[27].mxu1  ;;  %v3274_v39 = vadd.f32 %v3273_v14, %v6300_v18  ;;  %v3298_v30 = vadd.f32 %v3297_v60, %v3295_v35  ;;  %v6476_v60 = vld [vmem:[#allocation26_spill] sm:$0xff] }
0x12c9   :  { %v3205_v54 = vadd.f32 %v3204_v43, %v6467_v10  ;;  %v3276_v11 = vadd.f32 %v3275_v16, %v6301_v13 }
0x12cb   :  { %v3312_v17 = vadd.f32 %v3205_v54, %v3203_v22 }
0x12cd   :  { %v3313_v3 = vadd.f32 %v3312_v17, %v3274_v39  ;;  %v6475_v17 = vld [vmem:[#allocation48_spill] sm:$0xff] }
0x12cf   :  { %v3314_v52 = vadd.f32 %v3313_v3, %v3276_v11 }
0x12d1   :  { %3315 = vadd.xlane.f32.xlu0 %v3314_v52 }
0x12d5   :  { %3299 = vadd.xlane.f32.xlu0 %v3298_v30 }
0x135e   :  { %v3316_v8 = vpop.xlane.xlu0 %3315 }
0x135f   :  { %v3317_v12 = vmul.f32 0.0078125, %v3316_v8 }
0x1361   :  { %v5907_v43 = vsub.f32 %v3203_v22, %v3317_v12  ;;  %v5909_v10 = vsub.f32 %v3205_v54, %v3317_v12  ;;  %v5911_v6 = vsub.f32 %v3274_v39, %v3317_v12  ;;  %v5913_v14 = vsub.f32 %v3276_v11, %v3317_v12  ;;  %v3970_v12 = vld [vmem:[%s6136_s1 + $0x38] sm:$0xff] }
0x1362   :  { %3971 = vmatmul.mubr.msk.f32.vlgmr.msra.gmra.mrb[28].mxu0 %vm291_vm0, %v3970_v12  ;;  %3972 = vmatmul.mubr.msk.f32.vlgmr.msra.gmra.mrb[28].mxu1 %vm291_vm0, %v3970_v12 }
0x1363   :  { %v3322_v21 = vmul.f32 %v5059_v57, %v5907_v43  ;;  %v3323_v3 = vmul.f32 %v5062_v44, %v5909_v10  ;;  %v3324_v52 = vmul.f32 %v5065_v24, %v5911_v6  ;;  %v3325_v9 = vmul.f32 %v5076_v31, %v5913_v14  ;;  %4497 = vmatpush1.bf16.msra.mxu0 %v4906_v20  ;;  %v6468_v20 = vld [vmem:[#allocation24_spill] sm:$0xff] }
0x1364   :  { %4529 = vmatpush1.bf16.msra.mxu1 %v4913_v25  ;;  %4499 = vmatprep.subr.bf16.mxu0 %v4916_v29  ;;  %v6469_v25 = vld [vmem:[#allocation25_spill] sm:$0xff]  ;;  %v3300_v29 = vpop.xlane.xlu0 %3299 }
0x1365   :  { %v3326_v56 = vmul.f32 %v3322_v21, %v3322_v21  ;;  %v3327_v8 = vmul.f32 %v3323_v3, %v3323_v3  ;;  %v3328_v22 = vmul.f32 %v3324_v52, %v3324_v52  ;;  %v3329_v54 = vmul.f32 %v3325_v9, %v3325_v9  ;;  %4531 = vmatprep.subr.bf16.mxu1 %v4921_v34  ;;  %v6478_v3 = vld [vmem:[#allocation35_spill] sm:$0xff] }
0x1366   :  { %3634 = vmatprep.mubr.f32.mxu0 %v6269_v61  ;;  %3705 = vmatprep.mubr.f32.mxu1 %v6269_v61 }
0x1367   :  { %v3330_v16 = vadd.f32 %v3327_v8, %v3326_v56  ;;  %4501 = vmatpush1.bf16.msra.mxu0 %v4919_v33  ;;  %v3301_v33 = vmul.f32 0.0078125, %v3300_v29 }
0x1368   :  { %4533 = vmatpush1.bf16.msra.mxu1 %v4925_v38  ;;  %4503 = vmatprep.subr.bf16.mxu0 %v4928_v42 }
0x1369   :  { %v3331_v49 = vadd.f32 %v3330_v16, %v3328_v22  ;;  %4535 = vmatprep.subr.bf16.mxu1 %v4933_v47  ;;  %v3302_v34 = vadd.f32 1e-05, %v3301_v33 }
0x136b   :  { %v3332_v11 = vadd.f32 %v3331_v49, %v3329_v54  ;;  %4505 = vmatpush1.bf16.msra.mxu0 %v4931_v46  ;;  %4695 = vrsqrt.f32 %v3302_v34  ;;  %v6479_v54 = vld [vmem:[#allocation47_spill] sm:$0xff]  ;;  %v6480_v49 = vld [vmem:[#allocation16_spill] sm:$0xff] }
0x136c   :  { %4537 = vmatpush1.bf16.msra.mxu1 %v4939_v55  ;;  %4507 = vmatprep.subr.bf16.mxu0 %v4936_v51 }
0x136d   :  { %3333 = vadd.xlane.f32.xlu0 %v3332_v11  ;;  %4539 = vmatprep.subr.bf16.mxu1 %v4942_v58  ;;  %v5981_v11 = vmul.f32 %v6480_v49, %v6479_v54 }
0x136f   :  { %4509 = vmatpush1.bf16.msra.mxu0 %v4945_v62 }
0x1370   :  { %4541 = vmatpush1.bf16.msra.mxu1 %v4951_v4  ;;  %4511 = vmatprep.subr.bf16.mxu0 %v4948_v1 }
0x1371   :  { %4543 = vmatprep.subr.bf16.mxu1 %v4954_v7 }
0x1373   :  { %4513 = vmatpush1.bf16.msra.mxu0 %v4957_v15  ;;  %v6470_v15 = vld [vmem:[#allocation36_spill] sm:$0xff] }
0x1374   :  { %4545 = vmatpush1.bf16.msra.mxu1 %v4963_v23  ;;  %4515 = vmatprep.subr.bf16.mxu0 %v4960_v19  ;;  %v6471_v23 = vld [vmem:[#allocation38_spill] sm:$0xff] }
0x1375   :  { %4547 = vmatprep.subr.bf16.mxu1 %v4966_v28  ;;  %v4696_v47 = vpop.eup %4695 }
0x1376   :  { %v3304_v51 = vmul.f32 %v4696_v47, %v5887_v0  ;;  %v3305_v55 = vmul.f32 %v4696_v47, %v5889_v48  ;;  %v3307_v58 = vmul.f32 %v4696_v47, %v5897_v26  ;;  %v6473_v48 = vld [vmem:[#allocation41_spill] sm:$0xff]  ;;  %v3306_v40 = vmul.f32 %v4696_v47, %v6475_v17 }
0x1377   :  { %4517 = vmatpush1.bf16.msra.mxu0 %v4969_v32  ;;  %v6472_v32 = vld [vmem:[#allocation37_spill] sm:$0xff] }
0x1378   :  { %4549 = vmatpush1.bf16.msra.mxu1 %v4975_v41  ;;  %4519 = vmatprep.subr.bf16.mxu0 %v4972_v37  ;;  %v3308_v19 = vmul.f32 %v3304_v51, %v6470_v15  ;;  %v3309_v28 = vmul.f32 %v3305_v55, %v6471_v23  ;;  %v6481_v51 = vld [vmem:[#allocation27_spill] sm:$0xff] }
0x1379   :  { %4551 = vmatprep.subr.bf16.mxu1 %v4978_v45  ;;  %v3311_v45 = vmul.f32 %v3307_v58, %v6309_v2 }
0x137b   :  { %4521 = vmatpush1.bf16.msra.mxu0 %v4981_v50 }
0x137c   :  { %4553 = vmatpush1.bf16.msra.mxu1 %v4987_v59  ;;  %4523 = vmatprep.subr.bf16.mxu0 %v6302_v63 }
0x137d   :  { %4555 = vmatprep.subr.bf16.mxu1 %v6303_v5 }
0x137f   :  { %4525 = vmatpush1.bf16.msra.mxu0 %v6468_v20 }
0x1380   :  { %4557 = vmatpush1.bf16.msra.mxu1 %v6469_v25 }
0x13fa   :  { %v3334_v38 = vpop.xlane.xlu0 %3333 }
0x13fb   :  { %v3335_v42 = vmul.f32 0.0078125, %v3334_v38  ;;  %v5990_v38 = vld [vmem:[%s6135_s0] sm:$0xff] }
0x13fc   :  { %vm3966_vm11 = vcmp.gt.s32.totalorder %v5990_v38, 6  ;;  %vm3976_vm2 = vcmp.gt.s32.totalorder %v5990_v38, 7 }
0x13fd   :  { %v3336_v46 = vadd.f32 1e-05, %v3335_v42  ;;  %v3967_v42 = vsel %vm3966_vm11, 1.0, %v6269_v61 }
0x13ff   :  { %4697 = vrsqrt.f32 %v3336_v46 }
0x1409   :  { %v4698_v62 = vpop.eup %4697 }
0x140a   :  { %v3338_v1 = vmul.f32 %v4698_v62, %v5907_v43  ;;  %v3339_v4 = vmul.f32 %v4698_v62, %v5909_v10  ;;  %v3341_v7 = vmul.f32 %v4698_v62, %v5913_v14  ;;  %v3340_v0 = vmul.f32 %v4698_v62, %v5911_v6  ;;  %v6474_v10 = vld [vmem:[#allocation42_spill] sm:$0xff]  ;;  %v6477_v43 = vld [vmem:[#allocation43_spill] sm:$0xff] }
0x140b   :  { %v3310_v14 = vmul.f32 %v3306_v40, %v6477_v43 }
0x140c   :  { %v3342_v37 = vmul.f32 %v3338_v1, %v6472_v32  ;;  %v3343_v41 = vmul.f32 %v3339_v4, %v6308_v36  ;;  %v3345_v50 = vmul.f32 %v3341_v7, %v5173_v53  ;;  %v3344_v30 = vmul.f32 %v3340_v0, %v6476_v60  ;;  %v6482_v1 = vld [vmem:[#allocation28_spill] sm:$0xff]  ;;  %v6483_v7 = vld [vmem:[#allocation29_spill] sm:$0xff] }
0x140e   :  { %v3346_v59 = vadd.f32 %v3342_v37, %v3308_v19  ;;  %v3347_v63 = vadd.f32 %v3343_v41, %v3309_v28  ;;  %v3349_v5 = vadd.f32 %v3345_v50, %v3311_v45  ;;  %v3348_v21 = vadd.f32 %v3344_v30, %v3310_v14  ;;  %v6484_v37 = vld [vmem:[#allocation30_spill] sm:$0xff] }
0x1410   :  { %v3350_v26 = vadd.f32 %v3346_v59, %v6473_v48  ;;  %v3351_v39 = vadd.f32 %v3347_v63, %v6474_v10  ;;  %v3352_v52 = vadd.f32 %v3348_v21, %v6478_v3  ;;  %v6485_v59 = vld [vmem:[#allocation46_spill] sm:$0xff] }
0x1411   :  { %v3353_v63 = vadd.f32 %v3349_v5, %v6485_v59  ;;  %v6002_v5 = vld [vmem:[%s6144_s9] ss:$0 sm:$0xff] }
0x1412   :  { %v3963_v27 = vmul.f32 -1.442695, %v3350_v26  ;;  %v3964_v35 = vmul.f32 -1.442695, %v3351_v39 }
0x1413   :  { %v3965_v0 = vmul.f32 -1.442695, %v3353_v63 }
0x1414   :  { %4699 = vpow2.f32 %v3963_v27 }
0x1415   :  { %4701 = vpow2.f32 %v3964_v35 }
0x1416   :  { %4703 = vtanh.f32 %v3352_v52 }
0x141e   :  { %v4700_v9 = vpop.eup %4699 }
0x141f   :  { %v4702_v56 = vpop.eup %4701  ;;  %v3357_v6 = vadd.f32 1.0, %v4700_v9 }
0x1420   :  { %v3363_v8 = vadd.f32 1.0, %v4702_v56  ;;  %v4704_v22 = vpop.eup %4703 }
0x1421   :  { %4705 = vrcp.f32 %v3357_v6 }
0x1422   :  { %4707 = vrcp.f32 %v3363_v8  ;;  %v6008_v8 = vld [vmem:[%s6145_s10] ss:$0 sm:$0xff] }
0x142b   :  { %v4706_v16 = vpop.eup %4705 }
0x142c   :  { %v4708_v12 = vpop.eup %4707  ;;  %v3374_v20 = vmul.f32 %v4706_v16, %v4704_v22 }
0x142d   :  { %v3373_v25 = vmul.f32 %v4708_v12, %v5981_v11 }
0x142f   :  { %v5984_v29 = vadd.f32 %v3374_v20, %v3373_v25 }
0x1431   :  { %4709 = vtanh.f32 %v5984_v29 }
0x1432   :  { %4711 = vpow2.f32 %v3965_v0 }
0x1435   :  { %v3494_v46 = vpop.f32.mrb[28].mxu0  ;;  %v3565_v47 = vpop.f32.mrb[28].mxu1 }
0x1436   :  { %v3495_v55 = vadd.f32 %v3494_v46, %v6481_v51  ;;  %v3496_v58 = vpop.f32.mrb[29].mxu0  ;;  %v3567_v62 = vpop.f32.mrb[29].mxu1  ;;  %v3566_v19 = vadd.f32 %v3565_v47, %v6483_v7 }
0x1437   :  { %v3497_v4 = vadd.f32 %v3496_v58, %v6482_v1  ;;  %v3568_v41 = vadd.f32 %v3567_v62, %v6484_v37 }
0x1439   :  { %v3712_v28 = vadd.f32 %v3497_v4, %v3495_v55 }
0x143b   :  { %v4710_v33 = vpop.eup %4709  ;;  %v3713_v45 = vadd.f32 %v3712_v28, %v3566_v19  ;;  %v6486_v28 = vld [vmem:[#allocation31_spill] sm:$0xff] }
0x143c   :  { %3377 = vadd.xlane.f32.xlu0 %v4710_v33  ;;  %v3380_v34 = vmul.f32 %v4710_v33, %v4710_v33  ;;  %v4712_v14 = vpop.eup %4711 }
0x143d   :  { %v3714_v50 = vadd.f32 %v3713_v45, %v3568_v41  ;;  %v3370_v21 = vadd.f32 1.0, %v4712_v14  ;;  %v6487_v45 = vld [vmem:[#allocation32_spill] sm:$0xff] }
0x143f   :  { %3715 = vadd.xlane.f32.xlu1 %v3714_v50 }
0x1440   :  { %3381 = vadd.xlane.f32.xlu0 %v3380_v34 }
0x1456   :  { %3400 = vperm.xlu0 %4561, %v3967_v42  }
0x14c9   :  { %v3378_v26 = vpop.xlane.xlu0 %3377 }
0x14ca   :  { %v3379_v39 = vmul.f32 0.03125, %v3378_v26 }
0x14cc   :  { %v3384_v40 = vmul.f32 %v3379_v39, %v3379_v39  ;;  %v3386_v52 = vsub.f32 %v4710_v33, %v3379_v39  ;;  %v3716_v20 = vpop.xlane.xlu1 %3715 }
0x14cd   :  { %v3382_v17 = vpop.xlane.xlu0 %3381  ;;  %v3717_v25 = vmul.f32 0.0078125, %v3716_v20 }
0x14ce   :  { %v3383_v27 = vmul.f32 0.03125, %v3382_v17 }
0x14cf   :  { %v6022_v33 = vsub.f32 %v3495_v55, %v3717_v25  ;;  %v6024_v34 = vsub.f32 %v3497_v4, %v3717_v25  ;;  %v6026_v42 = vsub.f32 %v3566_v19, %v3717_v25  ;;  %v6032_v51 = vsub.f32 %v3568_v41, %v3717_v25 }
0x14d0   :  { %v3385_v35 = vsub.f32 %v3383_v27, %v3384_v40 }
0x14d1   :  { %v3722_v46 = vmul.f32 %v5059_v57, %v6022_v33  ;;  %v3723_v47 = vmul.f32 %v5062_v44, %v6024_v34  ;;  %v3724_v1 = vmul.f32 %v5065_v24, %v6026_v42  ;;  %v3725_v63 = vmul.f32 %v5076_v31, %v6032_v51 }
0x14d2   :  { %v3387_v30 = vadd.f32 1e-05, %v3385_v35 }
0x14d3   :  { %v3726_v7 = vmul.f32 %v3722_v46, %v3722_v46  ;;  %v3727_v55 = vmul.f32 %v3723_v47, %v3723_v47  ;;  %v3728_v26 = vmul.f32 %v3724_v1, %v3724_v1  ;;  %v3729_v35 = vmul.f32 %v3725_v63, %v3725_v63 }
0x14d4   :  { %4713 = vrsqrt.f32 %v3387_v30 }
0x14d5   :  { %4715 = vrcp.f32 %v3370_v21  ;;  %v6011_v49 = vpop.permute.xlu0 %3400  ;;  %v3730_v39 = vadd.f32 %v3727_v55, %v3726_v7  ;;  %v6047_v7 = vadd.s32 4294967295, %v5990_v38 }
0x14d7   :  { %v3731_v30 = vadd.f32 %v3730_v39, %v3728_v26  ;;  %vm3909_vm12 = vcmp.eq.s32.totalorder %v6047_v7, 0  ;;  %vm3919_vm13 = vcmp.eq.s32.totalorder %v6047_v7, 1  ;;  %vm3929_vm14 = vcmp.eq.s32.totalorder %v6047_v7, 2 }
0x14d8   :  { %vm3939_vm15 = vcmp.eq.s32.totalorder %v6047_v7, 3  ;;  %vm3949_vm0 = vcmp.eq.s32.totalorder %v6047_v7, 4  ;;  %vm3969_vm1 = vcmp.eq.s32.totalorder %v6047_v7, 6  ;;  %vm3959_vm3 = vcmp.eq.s32.totalorder %v6047_v7, 5 }
0x14d9   :  { %v3732_v14 = vadd.f32 %v3731_v30, %v3729_v35  ;;  %vm3979_vm4 = vcmp.eq.s32.totalorder %v6047_v7, 7 }
0x14de   :  { %v4714_v9 = vpop.eup %4713 }
0x14df   :  { %v3389_v56 = vmul.f32 %v4714_v9, %v3386_v52  ;;  %v4716_v16 = vpop.eup %4715 }
0x14e1   :  { %v3390_v6 = vmul.f32 %v6002_v5, %v3389_v56 }
0x14e3   :  { %v3391_v22 = vadd.f32 %v6008_v8, %v3390_v6 }
0x14e5   :  { %v3392_v54 = vmul.f32 %v4716_v16, %v3391_v22 }
0x14e7   :  { %v6014_v12 = vmul.f32 %v6011_v49, %v3392_v54 }
0x14e9   :  { %3968 = vst [vmem:[%s6146_s11 + $0x30] sm:$0xff] %v6014_v12  ;;  %3635 = vmatmul.mubr.f32.vlgmr.msra.gmra.mrb[30].mxu0 %v6014_v12  ;;  %3706 = vmatmul.mubr.f32.vlgmr.msra.gmra.mrb[30].mxu1 %v6014_v12 }
0x15bc   :  { %v3636_v58 = vpop.f32.mrb[30].mxu0  ;;  %v3707_v62 = vpop.f32.mrb[30].mxu1 }
0x15bd   :  { %v3637_v4 = vadd.f32 %v3636_v58, %v6486_v28  ;;  %v3638_v37 = vpop.f32.mrb[31].mxu0  ;;  %v3709_v19 = vpop.f32.mrb[31].mxu1  ;;  %v3708_v0 = vadd.f32 %v3707_v62, %v6300_v18 }
0x15be   :  { %v3639_v50 = vadd.f32 %v3638_v37, %v6487_v45  ;;  %v3710_v17 = vadd.f32 %v3709_v19, %v6301_v13 }
0x15c0   :  { %v3746_v41 = vadd.f32 %v3639_v50, %v3637_v4 }
0x15c2   :  { %v3747_v40 = vadd.f32 %v3746_v41, %v3708_v0 }
0x15c4   :  { %v3748_v27 = vadd.f32 %v3747_v40, %v3710_v17 }
0x15c6   :  { %3749 = vadd.xlane.f32.xlu1 %v3748_v27 }
0x15ca   :  { %3733 = vadd.xlane.f32.xlu1 %v3732_v14 }
0x1653   :  { %v3750_v21 = vpop.xlane.xlu1 %3749 }
0x1654   :  { %v3751_v52 = vmul.f32 0.0078125, %v3750_v21 }
0x1656   :  { %v3752_v9 = vsub.f32 %v3637_v4, %v3751_v52  ;;  %v3753_v56 = vsub.f32 %v3639_v50, %v3751_v52  ;;  %v3754_v6 = vsub.f32 %v3708_v0, %v3751_v52  ;;  %v3755_v22 = vsub.f32 %v3710_v17, %v3751_v52 }
0x1657   :  { %v3734_v4 = vpop.xlane.xlu1 %3733 }
0x1658   :  { %v3756_v18 = vmul.f32 %v5059_v57, %v3752_v9  ;;  %v3757_v16 = vmul.f32 %v5062_v44, %v3753_v56  ;;  %v3758_v54 = vmul.f32 %v5065_v24, %v3754_v6  ;;  %v3759_v13 = vmul.f32 %v5076_v31, %v3755_v22 }
0x1659   :  { %v6488_v57 = vmov 0   ;;  %v3735_v37 = vmul.f32 0.0078125, %v3734_v4 }
0x165a   :  { %v3760_v20 = vmul.f32 %v3756_v18, %v3756_v18  ;;  %v3761_v25 = vmul.f32 %v3757_v16, %v3757_v16  ;;  %v3762_v46 = vmul.f32 %v3758_v54, %v3758_v54  ;;  %v3763_v58 = vmul.f32 %v3759_v13, %v3759_v13 }
0x165b   :  { %v807_v55 = vsel %vm3909_vm12, 1, %v6488_v57  ;;  %v1241_v44 = vsel %vm3919_vm13, 1, %v6488_v57  ;;  %v1675_v24 = vsel %vm3929_vm14, 1, %v6488_v57  ;;  %v2109_v31 = vsel %vm3939_vm15, 1, %v6488_v57 }
0x165c   :  { %v3764_v47 = vadd.f32 %v3761_v25, %v3760_v20  ;;  %v2543_v28 = vsel %vm3949_vm0, 1, %v6488_v57  ;;  %v3736_v19 = vadd.f32 1e-05, %v3735_v37 }
0x165e   :  { %v3765_v62 = vadd.f32 %v3764_v47, %v3762_v46  ;;  %4717 = vrsqrt.f32 %v3736_v19 }
0x1660   :  { %v3766_v1 = vadd.f32 %v3765_v62, %v3763_v58  ;;  %v3411_v62 = vsel %vm3969_vm1, 1, %v6488_v57 }
0x1662   :  { %3767 = vadd.xlane.f32.xlu1 %v3766_v1  ;;  %v3977_v1 = vsel %vm3976_vm2, 1.0, %v6269_v61 }
0x1668   :  { %v4718_v0 = vpop.eup %4717 }
0x1669   :  { %v3738_v41 = vmul.f32 %v4718_v0, %v6022_v33  ;;  %v3739_v26 = vmul.f32 %v4718_v0, %v6024_v34  ;;  %v3741_v17 = vmul.f32 %v4718_v0, %v6032_v51 }
0x166b   :  { %v3742_v30 = vmul.f32 %v3738_v41, %v6470_v15  ;;  %v3743_v14 = vmul.f32 %v3739_v26, %v6471_v23  ;;  %v3745_v18 = vmul.f32 %v3741_v17, %v6309_v2  ;;  %v3740_v15 = vmul.f32 %v4718_v0, %v6026_v42 }
0x166c   :  { %v3404_v42 = vmul.f32 %v6011_v49, %v5984_v29  ;;  %v2977_v29 = vsel %vm3959_vm3, 1, %v6488_v57  ;;  %v3845_v49 = vsel %vm3979_vm4, 1, %v6488_v57 }
0x1673   :  { %809 = vperm.xlu1 %4562, %v807_v55  }
0x1677   :  { %1243 = vperm.xlu1 %4562, %v1241_v44  }
0x167b   :  { %1677 = vperm.xlu1 %4562, %v1675_v24  }
0x167f   :  { %2111 = vperm.xlu1 %4562, %v2109_v31  }
0x1683   :  { %2545 = vperm.xlu1 %4562, %v2543_v28  }
0x16ef   :  { %v3768_v45 = vpop.xlane.xlu1 %3767 }
0x16f0   :  { %v3769_v50 = vmul.f32 0.0078125, %v3768_v45 }
0x16f2   :  { %v3770_v63 = vadd.f32 1e-05, %v3769_v50 }
0x16f3   :  { %v810_v55 = vpop.permute.xlu1 %809 }
0x16f4   :  { %4719 = vrsqrt.f32 %v3770_v63  ;;  %vm811_vm5 = vcmp.eq.s32.totalorder %v810_v55, 1  ;;  %v6489_v63 = vld [vmem:[#allocation33_spill] sm:$0xff] }
0x16f5   :  { %v815_v0 = vsel %vm811_vm5, %v6489_v63, 0.0 }
0x16f7   :  { %v1244_v44 = vpop.permute.xlu1 %1243 }
0x16f8   :  { %vm1245_vm6 = vcmp.eq.s32.totalorder %v1244_v44, 1 }
0x16fb   :  { %v1678_v24 = vpop.permute.xlu1 %1677 }
0x16fc   :  { %vm1679_vm7 = vcmp.eq.s32.totalorder %v1678_v24, 1 }
0x16fe   :  { %v4720_v39 = vpop.eup %4719 }
0x16ff   :  { %v3772_v40 = vmul.f32 %v4720_v39, %v3752_v9  ;;  %v3773_v27 = vmul.f32 %v4720_v39, %v3753_v56  ;;  %v3775_v35 = vmul.f32 %v4720_v39, %v3755_v22  ;;  %v3774_v13 = vmul.f32 %v4720_v39, %v3754_v6  ;;  %v2112_v31 = vpop.permute.xlu1 %2111 }
0x1700   :  { %vm2113_vm8 = vcmp.eq.s32.totalorder %v2112_v31, 1 }
0x1701   :  { %v3776_v21 = vmul.f32 %v3772_v40, %v6472_v32  ;;  %v3777_v52 = vmul.f32 %v3773_v27, %v6308_v36  ;;  %v3779_v33 = vmul.f32 %v3775_v35, %v5173_v53  ;;  %v3778_v32 = vmul.f32 %v3774_v13, %v6476_v60  ;;  %v6491_v40 = vld [vmem:[#allocation49_spill] sm:$0xff]  ;;  %v6492_v35 = vld [vmem:[#allocation44_spill] sm:$0xff] }
0x1702   :  { %v3744_v36 = vmul.f32 %v3740_v15, %v6477_v43 }
0x1703   :  { %v3780_v16 = vadd.f32 %v3776_v21, %v3742_v30  ;;  %v3781_v34 = vadd.f32 %v3777_v52, %v3743_v14  ;;  %v3783_v54 = vadd.f32 %v3779_v33, %v3745_v18  ;;  %v2546_v4 = vpop.permute.xlu1 %2545  ;;  %v6493_v21 = vld [vmem:[#allocation23_spill] sm:$0xff] }
0x1704   :  { %v3782_v2 = vadd.f32 %v3778_v32, %v3744_v36  ;;  %vm2547_vm9 = vcmp.eq.s32.totalorder %v2546_v4, 1 }
0x1705   :  { %v3784_v51 = vadd.f32 %v3780_v16, %v6473_v48  ;;  %v3785_v9 = vadd.f32 %v3781_v34, %v6474_v10  ;;  %v3787_v38 = vadd.f32 %v3783_v54, %v6485_v59  ;;  %v6490_v59 = vld [vmem:[#allocation39_spill] sm:$0xff] }
0x1706   :  { %v3786_v53 = vadd.f32 %v3782_v2, %v6478_v3  ;;  %v1249_v39 = vsel %vm1245_vm6, %v6490_v59, %v815_v0  ;;  %v4747_v2 = vld [vmem:[%s6146_s11 + $0x10] sm:$0xff] }
0x1707   :  { %v3973_v56 = vmul.f32 -1.442695, %v3784_v51  ;;  %v3974_v23 = vmul.f32 -1.442695, %v3785_v9  ;;  %v3975_v28 = vmul.f32 -1.442695, %v3787_v38  ;;  %v1683_v27 = vsel %vm1679_vm7, %v6491_v40, %v1249_v39 }
0x1708   :  { %v2117_v30 = vsel %vm2113_vm8, %v6492_v35, %v1683_v27 }
0x1709   :  { %4721 = vpow2.f32 %v3973_v56  ;;  %v2551_v52 = vsel %vm2547_vm9, %v6493_v21, %v2117_v30  ;;  %v4745_v56 = vld [vmem:[%s6146_s11] sm:$0xff] }
0x170a   :  { %4723 = vpow2.f32 %v3974_v23  ;;  %v4746_v23 = vld [vmem:[%s6146_s11 + $0x8] sm:$0xff] }
0x170b   :  { %4725 = vtanh.f32 %v3786_v53 }
0x1713   :  { %v4722_v22 = vpop.eup %4721 }
0x1714   :  { %v4724_v20 = vpop.eup %4723  ;;  %v3791_v6 = vadd.f32 1.0, %v4722_v22  ;;  %v4748_v22 = vld [vmem:[%s6146_s11 + $0x18] sm:$0xff] }
0x1715   :  { %v3797_v25 = vadd.f32 1.0, %v4724_v20  ;;  %v4726_v48 = vpop.eup %4725 }
0x1716   :  { %4727 = vrcp.f32 %v3791_v6 }
0x1717   :  { %4729 = vrcp.f32 %v3797_v25 }
0x1720   :  { %v4728_v10 = vpop.eup %4727 }
0x1721   :  { %v4730_v60 = vpop.eup %4729  ;;  %v3808_v46 = vmul.f32 %v4728_v10, %v4726_v48  ;;  %v4749_v48 = vld [vmem:[%s6146_s11 + $0x20] sm:$0xff] }
0x1722   :  { %v3807_v47 = vmul.f32 %v4730_v60, %v3404_v42 }
0x1724   :  { %v3809_v58 = vadd.f32 %v3808_v46, %v3807_v47 }
0x1726   :  { %4731 = vtanh.f32 %v3809_v58 }
0x1727   :  { %4733 = vpow2.f32 %v3975_v28 }
0x1730   :  { %v4732_v43 = vpop.eup %4731 }
0x1731   :  { %3811 = vadd.xlane.f32.xlu1 %v4732_v43  ;;  %v3814_v3 = vmul.f32 %v4732_v43, %v4732_v43  ;;  %v4734_v26 = vpop.eup %4733 }
0x1732   :  { %v3804_v18 = vadd.f32 1.0, %v4734_v26 }
0x1733   :  { %3815 = vadd.xlane.f32.xlu0 %v3814_v3 }
0x1742   :  { %3413 = vperm.xlu1 %4562, %v3411_v62  }
0x1746   :  { %3834 = vperm.xlu1 %4562, %v3977_v1  }
0x1749   :  { %2979 = vperm.xlu0 %4561, %v2977_v29  }
0x174a   :  { %3847 = vperm.xlu1 %4562, %v3845_v49  }
0x17be   :  { %v3812_v61 = vpop.xlane.xlu1 %3811 }
0x17bf   :  { %v3813_v37 = vmul.f32 0.03125, %v3812_v61 }
0x17c0   :  { %v3816_v19 = vpop.xlane.xlu0 %3815 }
0x17c1   :  { %v3818_v7 = vmul.f32 %v3813_v37, %v3813_v37  ;;  %v3817_v45 = vmul.f32 0.03125, %v3816_v19  ;;  %v3820_v51 = vsub.f32 %v4732_v43, %v3813_v37 }
0x17c2   :  { %v3414_v50 = vpop.permute.xlu1 %3413 }
0x17c3   :  { %v3819_v57 = vsub.f32 %v3817_v45, %v3818_v7  ;;  %vm3415_vm11 = vcmp.eq.s32.totalorder %v3414_v50, 1 }
0x17c5   :  { %v3821_v41 = vadd.f32 1e-05, %v3819_v57 }
0x17c6   :  { %v3835_v17 = vpop.permute.xlu1 %3834 }
0x17c7   :  { %4735 = vrsqrt.f32 %v3821_v41  ;;  %v3838_v33 = vmul.f32 %v3835_v17, %v3809_v58 }
0x17c8   :  { %v2980_v14 = vpop.permute.xlu0 %2979  ;;  %4737 = vrcp.f32 %v3804_v18 }
0x17c9   :  { %vm2981_vm10 = vcmp.eq.s32.totalorder %v2980_v14, 1 }
0x17ca   :  { %v2985_v16 = vsel %vm2981_vm10, %v5981_v11, %v2551_v52  ;;  %v3848_v34 = vpop.permute.xlu1 %3847  ;;  %v812_v11 = vsel %vm811_vm5, %v4745_v56, 0.0 }
0x17cb   :  { %v3419_v54 = vsel %vm3415_vm11, %v3404_v42, %v2985_v16  ;;  %vm3849_vm12 = vcmp.eq.s32.totalorder %v3848_v34, 1  ;;  %v1246_v32 = vsel %vm1245_vm6, %v4746_v23, %v812_v11  ;;  %v6494_v42 = vld [vmem:[#allocation18_spill] sm:$0xff] }
0x17cc   :  { %v3853_v13 = vsel %vm3849_vm12, %v3838_v33, %v3419_v54  ;;  %v1680_v53 = vsel %vm1679_vm7, %v4747_v2, %v1246_v32 }
0x17cd   :  { %3861 = vst [vmem:[%s6148_s13] sm:$0xff] %v3853_v13  ;;  %v2114_v20 = vsel %vm2113_vm8, %v4748_v22, %v1680_v53 }
0x17d1   :  { %v4736_v9 = vpop.eup %4735 }
0x17d2   :  { %v3823_v15 = vmul.f32 %v4736_v9, %v3820_v51  ;;  %v4738_v25 = vpop.eup %4737 }
0x17d4   :  { %v3824_v36 = vmul.f32 %v6002_v5, %v3823_v15  ;;  %v2548_v5 = vsel %vm2547_vm9, %v4749_v48, %v2114_v20 }
0x17d5   :  { %v2982_v60 = vsel %vm2981_vm10, %v6494_v42, %v2548_v5 }
0x17d6   :  { %v3825_v6 = vadd.f32 %v6008_v8, %v3824_v36  ;;  %v3416_v47 = vsel %vm3415_vm11, %v6014_v12, %v2982_v60 }
0x17d8   :  { %v3826_v10 = vmul.f32 %v4738_v25, %v3825_v6 }
0x17da   :  { %v3837_v46 = vmul.f32 %v3835_v17, %v3826_v10 }
0x17dc   :  { %3978 = vst [vmem:[%s6146_s11 + $0x38] sm:$0xff] %v3837_v46  ;;  %v3850_v8 = vsel %vm3849_vm12, %v3837_v46, %v3416_v47 }
0x17dd   :  { %3859 = vst [vmem:[%s6147_s12] sm:$0xff] %v3850_v8 }
0x17de   :  { %3874 = vsyncmov [#allocation4] }
0x17e1   :  { %s3875_s16 = vpop.sfrf %3874 }
0x17e2   :  { %p3980_p8 = scmp.ne.s32.totalorder %s3875_s16, 0 }
0x17e4   :  { %3879 = shalt.err (%p3980_p8)  }
0x17e5   :  { %3881 = vsyncmov [#allocation4 + $0x1] }
0x17e8   :  { %s3882_s2 = vpop.sfrf %3881 }
0x17e9   :  { %p3981_p9 = scmp.ne.s32.totalorder %s3882_s2, 0 }
0x17eb   :  { %3886 = shalt.err (%p3981_p9)  }

</bundles_post_ra>
